<compile_context>
chip_gen: v7x
topology: tpu7x:2x2x1
jax: 0.10.0
libtpu: 0.0.40
codegen_flags: <defaults>
</compile_context>

<pallas_src>
import functools

import jax
import jax.numpy as jnp
from jax.experimental import pallas as pl
from jax.experimental.pallas import tpu as pltpu

BN_EPS = 1e-5
LANES = 128  # output channels are zero-padded up to one full lane tile


def block_kernel(inv_cnt, x_ref, w_ref, b_ref, g_ref, beta_ref, out_ref,
                 xpad_ref, patches_ref, conv_ref, s_ref, ss_ref,
                 scale_ref, shift_ref):
    """Fused BLOCK forward.

    grid = (phase, n):
      phase 0 (per image): in-kernel zero-pad, im2col, one matmul, bias+ReLU,
                           BN batch-stat accumulation, stash conv result.
      phase 1 (per image): finalize BN scale/shift once, normalize, 2x2 maxpool,
                           write lane-dense output block.
    """
    phase = pl.program_id(0)
    n = pl.program_id(1)

    _, H, W, Cin = x_ref.shape
    Hh, Wh = H // 2, W // 2
    CP = w_ref.shape[-1]  # lane-padded output channels (128)

    @pl.when(jnp.logical_and(phase == 0, n == 0))
    def _init():
        xpad_ref[...] = jnp.zeros_like(xpad_ref)   # zero borders once, reused for all n
        s_ref[...] = jnp.zeros_like(s_ref)
        ss_ref[...] = jnp.zeros_like(ss_ref)

    @pl.when(phase == 0)
    def _conv_and_stats():
        # Zero-padding inside the kernel: only the interior is rewritten per
        # image, the border stays zero from _init (no jnp.pad HBM round-trip).
        xpad_ref[pl.ds(1, H), pl.ds(1, W), :] = x_ref[0]

        # im2col: all 9 taps along the contraction dim -> a single matmul.
        for t in range(9):
            ky, kx = t // 3, t % 3
            patches_ref[:, pl.ds(t * Cin, Cin)] = (
                xpad_ref[pl.ds(ky, H), pl.ds(kx, W), :].reshape(H * W, Cin))

        acc = jnp.dot(patches_ref[...], w_ref[...],
                      preferred_element_type=jnp.float32)       # (H*W, CP) lane-dense
        acc = jnp.maximum(acc + b_ref[...], 0.0)                # bias + ReLU

        # BatchNorm batch statistics fused into the conv pass (single pass,
        # no re-read of conv_ref).
        s_ref[...] += jnp.sum(acc, axis=0, keepdims=True)
        ss_ref[...] += jnp.sum(acc * acc, axis=0, keepdims=True)

        conv_ref[n] = acc

    @pl.when(phase == 1)
    def _normalize_and_pool():
        @pl.when(n == 0)
        def _finalize_stats():  # hoisted: computed once, reused for every image
            mean = s_ref[...] * inv_cnt
            # Biased variance (PyTorch training-mode BN).
            # TODO(synk): E[x^2]-E[x]^2 can cancel for very large activations;
            # a two-pass/Welford form would be safer beyond toy magnitudes.
            var = ss_ref[...] * inv_cnt - mean * mean
            scale = g_ref[...] * jax.lax.rsqrt(var + BN_EPS)
            scale_ref[...] = scale
            shift_ref[...] = beta_ref[...] - mean * scale

        y = conv_ref[n] * scale_ref[...] + shift_ref[...]       # (H*W, CP)
        # 2x2/stride-2 max-pool entirely in vregs: no staging buffer, no
        # strided VMEM reads. Rows of y are (h, w) row-major.
        v = jnp.max(y.reshape(Hh, 2, W, CP), axis=1)            # vertical pairs
        out_ref[0] = jnp.max(v.reshape(Hh, Wh, 2, CP), axis=2)  # horizontal pairs

    # TODO(synk): BatchNorm running_mean / running_var buffer updates are module
    # state, not part of the forward output, so they are not materialized here.


@jax.jit
def block_forward(x_nchw, weight, bias, gamma, beta):
    """Wrapper: NCHW in / NCHW out, matching the PyTorch BLOCK module."""
    N, Cin, H, W = x_nchw.shape
    Cout = weight.shape[0]
    Hh, Wh = H // 2, W // 2
    CP = LANES
    pad = CP - Cout

    x = jnp.transpose(x_nchw, (0, 2, 3, 1)).astype(jnp.float32)          # NHWC
    # TODO(synk): if upstream tensors are bf16, keep them bf16 here (f32 accumulate
    # via preferred_element_type) to halve the dominant input DMA bytes on v6e/v7x.
    w_mat = jnp.transpose(weight.astype(jnp.float32),
                          (2, 3, 1, 0)).reshape(9 * Cin, Cout)           # (ky,kx,cin)->rows
    w_mat = jnp.pad(w_mat, ((0, 0), (0, pad)))                           # lane-pad Cout->128
    b_p = jnp.pad(bias.astype(jnp.float32).reshape(1, Cout), ((0, 0), (0, pad)))
    g_p = jnp.pad(gamma.astype(jnp.float32).reshape(1, Cout), ((0, 0), (0, pad)))
    be_p = jnp.pad(beta.astype(jnp.float32).reshape(1, Cout), ((0, 0), (0, pad)))

    kernel = functools.partial(block_kernel, 1.0 / float(N * H * W))

    out = pl.pallas_call(
        kernel,
        out_shape=jax.ShapeDtypeStruct((N, Hh, Wh, CP), jnp.float32),
        grid=(2, N),  # (phase, image): phase 0 = conv+stats, phase 1 = norm+pool
        in_specs=[
            # image n only needed in phase 0; phase 1 just keeps block 0 around
            pl.BlockSpec((1, H, W, Cin), lambda p, n: (n * (1 - p), 0, 0, 0)),
            pl.BlockSpec((9 * Cin, CP), lambda p, n: (0, 0)),
            pl.BlockSpec((1, CP), lambda p, n: (0, 0)),
            pl.BlockSpec((1, CP), lambda p, n: (0, 0)),
            pl.BlockSpec((1, CP), lambda p, n: (0, 0)),
        ],
        # p*n keeps the output block index constant through phase 0, so nothing
        # is flushed to HBM until phase 1 has written real data for that image.
        out_specs=pl.BlockSpec((1, Hh, Wh, CP), lambda p, n: (p * n, 0, 0, 0)),
        scratch_shapes=[
            pltpu.VMEM((H + 2, W + 2, Cin), jnp.float32),   # zero-padded image
            pltpu.VMEM((H * W, 9 * Cin), jnp.float32),      # im2col patches
            # TODO(synk): for large N*H*W (v7x has 64 MiB VMEM) tile H and stream
            # the conv result through HBM (two pallas_calls) instead of holding
            # the whole batch here.
            pltpu.VMEM((N, H * W, CP), jnp.float32),        # relu(conv) per image
            pltpu.VMEM((1, CP), jnp.float32),               # BN sum
            pltpu.VMEM((1, CP), jnp.float32),               # BN sum of squares
            pltpu.VMEM((1, CP), jnp.float32),               # BN scale
            pltpu.VMEM((1, CP), jnp.float32),               # BN shift
        ],
        # Both axes are sequential: BN batch stats couple all images and phase 1
        # depends on all of phase 0, so no megacore "parallel" axis is safe here.
        compiler_params=pltpu.CompilerParams(
            dimension_semantics=("arbitrary", "arbitrary")),
    )(x, w_mat, b_p, g_p, be_p)

    out = out[..., :Cout]                                  # drop lane padding
    return jnp.transpose(out, (0, 3, 1, 2))                # back to NCHW


def reference(x, weight, bias, gamma, beta):
    """Pure-JAX reference of the PyTorch BLOCK forward (training-mode BN)."""
    y = jax.lax.conv_general_dilated(
        x, weight, window_strides=(1, 1), padding=((1, 1), (1, 1)),
        dimension_numbers=("NCHW", "OIHW", "NCHW"))
    y = y + bias[None, :, None, None]
    y = jnp.maximum(y, 0.0)
    mean = jnp.mean(y, axis=(0, 2, 3), keepdims=True)
    var = jnp.mean(jnp.square(y - mean), axis=(0, 2, 3), keepdims=True)
    y = (y - mean) * jax.lax.rsqrt(var + BN_EPS)
    y = y * gamma[None, :, None, None] + beta[None, :, None, None]
    y = jax.lax.reduce_window(y, -jnp.inf, jax.lax.max,
                              (1, 1, 2, 2), (1, 1, 2, 2), "VALID")
    return y


if __name__ == "__main__":
    # Small shapes consistent with BLOCK(input_channels=4, output_channels=8)
    N, Cin, H, W = 2, 4, 16, 16
    Cout = 8

    key = jax.random.PRNGKey(0)
    kx_, kw, kb, kg, kbe = jax.random.split(key, 5)
    x = jax.random.normal(kx_, (N, Cin, H, W), dtype=jnp.float32)
    weight = 0.1 * jax.random.normal(kw, (Cout, Cin, 3, 3), dtype=jnp.float32)
    bias = 0.1 * jax.random.normal(kb, (Cout,), dtype=jnp.float32)
    gamma = 1.0 + 0.1 * jax.random.normal(kg, (Cout,), dtype=jnp.float32)
    beta = 0.1 * jax.random.normal(kbe, (Cout,), dtype=jnp.float32)

    out = block_forward(x, weight, bias, gamma, beta)
    out = jax.block_until_ready(out)

    ref = reference(x, weight, bias, gamma, beta)
    assert out.shape == (N, Cout, H // 2, W // 2), out.shape
    assert jnp.allclose(out, ref, rtol=1e-4, atol=1e-4), (
        float(jnp.max(jnp.abs(out - ref))))

    print("KERNEL_OK")
</pallas_src>

<mosaic_0001>
module attributes {stable_mosaic.version = 11 : i64} {
  func.func @block_kernel(%arg0: i32, %arg1: i32, %arg2: memref<1x16x16x4xf32, #tpu.memory_space<vmem>>, %arg3: memref<36x128xf32, #tpu.memory_space<vmem>>, %arg4: memref<1x128xf32, #tpu.memory_space<vmem>>, %arg5: memref<1x128xf32, #tpu.memory_space<vmem>>, %arg6: memref<1x128xf32, #tpu.memory_space<vmem>>, %arg7: memref<1x8x8x128xf32, #tpu.memory_space<vmem>>, %arg8: memref<18x18x4xf32, #tpu.memory_space<vmem>>, %arg9: memref<256x36xf32, #tpu.memory_space<vmem>>, %arg10: memref<2x256x128xf32, #tpu.memory_space<vmem>>, %arg11: memref<1x128xf32, #tpu.memory_space<vmem>>, %arg12: memref<1x128xf32, #tpu.memory_space<vmem>>, %arg13: memref<1x128xf32, #tpu.memory_space<vmem>>, %arg14: memref<1x128xf32, #tpu.memory_space<vmem>>) attributes {dimension_semantics = [#tpu.dimension_semantics<arbitrary>, #tpu.dimension_semantics<arbitrary>], iteration_bounds = array<i64: 2, 2>, scalar_prefetch = 0 : i64, scratch_operands = 7 : i64, tpu.core_type = #tpu.core_type<tc>, window_params = [{transform_indices = @transform_0, window_bounds = array<i64: 1, 16, 16, 4>}, {pipeline_mode = #tpu.pipeline_mode<synchronous>, transform_indices = @transform_1, window_bounds = array<i64: 36, 128>}, {pipeline_mode = #tpu.pipeline_mode<synchronous>, transform_indices = @transform_2, window_bounds = array<i64: 1, 128>}, {pipeline_mode = #tpu.pipeline_mode<synchronous>, transform_indices = @transform_3, window_bounds = array<i64: 1, 128>}, {pipeline_mode = #tpu.pipeline_mode<synchronous>, transform_indices = @transform_4, window_bounds = array<i64: 1, 128>}, {transform_indices = @transform_5, window_bounds = array<i64: 1, 8, 8, 128>}]} {
    %c0_i32 = arith.constant 0 : i32
    %0 = arith.cmpi eq, %arg0, %c0_i32 : i32
    %c0_i32_0 = arith.constant 0 : i32
    %1 = arith.cmpi eq, %arg1, %c0_i32_0 : i32
    %2 = arith.andi %0, %1 : i1
    %3 = arith.extui %2 : i1 to i32
    %c0_i32_1 = arith.constant 0 : i32
    %4 = arith.cmpi ne, %3, %c0_i32_1 : i32
    scf.if %4 {
      %cst = arith.constant 0.000000e+00 : f32
      %11 = vector.broadcast %cst : f32 to vector<18x18x4xf32>
      %c0 = arith.constant 0 : index
      %c0_5 = arith.constant 0 : index
      %c0_6 = arith.constant 0 : index
      %12 = vector.load %arg8[%c0, %c0_5, %c0_6] : memref<18x18x4xf32, #tpu.memory_space<vmem>>, vector<18x18x4xf32>
      tpu.vector_store %arg8[%c0, %c0_5, %c0_6], %11 {strides = array<i32>} : memref<18x18x4xf32, #tpu.memory_space<vmem>>, vector<18x18x4xf32>,
      %cst_7 = arith.constant 0.000000e+00 : f32
      %13 = vector.broadcast %cst_7 : f32 to vector<1x128xf32>
      %c0_8 = arith.constant 0 : index
      %c0_9 = arith.constant 0 : index
      %14 = vector.load %arg11[%c0_8, %c0_9] : memref<1x128xf32, #tpu.memory_space<vmem>>, vector<1x128xf32>
      tpu.vector_store %arg11[%c0_8, %c0_9], %13 {strides = array<i32>} : memref<1x128xf32, #tpu.memory_space<vmem>>, vector<1x128xf32>,
      %cst_10 = arith.constant 0.000000e+00 : f32
      %15 = vector.broadcast %cst_10 : f32 to vector<1x128xf32>
      %c0_11 = arith.constant 0 : index
      %c0_12 = arith.constant 0 : index
      %16 = vector.load %arg12[%c0_11, %c0_12] : memref<1x128xf32, #tpu.memory_space<vmem>>, vector<1x128xf32>
      tpu.vector_store %arg12[%c0_11, %c0_12], %15 {strides = array<i32>} : memref<1x128xf32, #tpu.memory_space<vmem>>, vector<1x128xf32>,
    } else {
    }
    %c0_i32_2 = arith.constant 0 : i32
    %5 = arith.cmpi eq, %arg0, %c0_i32_2 : i32
    %6 = arith.extui %5 : i1 to i32
    %c0_i32_3 = arith.constant 0 : i32
    %7 = arith.cmpi ne, %6, %c0_i32_3 : i32
    scf.if %7 {
      %c0 = arith.constant 0 : index
      %c0_5 = arith.constant 0 : index
      %c0_6 = arith.constant 0 : index
      %c0_7 = arith.constant 0 : index
      %11 = vector.load %arg2[%c0, %c0_5, %c0_6, %c0_7] : memref<1x16x16x4xf32, #tpu.memory_space<vmem>>, vector<1x16x16x4xf32>
      %12 = vector.shape_cast %11 : vector<1x16x16x4xf32> to vector<16x16x4xf32>
      %c1 = arith.constant 1 : index
      %c1_8 = arith.constant 1 : index
      %c0_9 = arith.constant 0 : index
      %13 = vector.load %arg8[%c1, %c1_8, %c0_9] : memref<18x18x4xf32, #tpu.memory_space<vmem>>, vector<16x16x4xf32>
      tpu.vector_store %arg8[%c1, %c1_8, %c0_9], %12 {strides = array<i32>} : memref<18x18x4xf32, #tpu.memory_space<vmem>>, vector<16x16x4xf32>,
      %c0_10 = arith.constant 0 : index
      %c0_11 = arith.constant 0 : index
      %c0_12 = arith.constant 0 : index
      %14 = vector.load %arg8[%c0_10, %c0_11, %c0_12] : memref<18x18x4xf32, #tpu.memory_space<vmem>>, vector<16x16x4xf32>
      %15 = vector.shape_cast %14 : vector<16x16x4xf32> to vector<256x4xf32>
      %c0_13 = arith.constant 0 : index
      %c0_14 = arith.constant 0 : index
      %16 = vector.load %arg9[%c0_13, %c0_14] : memref<256x36xf32, #tpu.memory_space<vmem>>, vector<256x4xf32>
      tpu.vector_store %arg9[%c0_13, %c0_14], %15 {strides = array<i32>} : memref<256x36xf32, #tpu.memory_space<vmem>>, vector<256x4xf32>,
      %c0_15 = arith.constant 0 : index
      %c1_16 = arith.constant 1 : index
      %c0_17 = arith.constant 0 : index
      %17 = vector.load %arg8[%c0_15, %c1_16, %c0_17] : memref<18x18x4xf32, #tpu.memory_space<vmem>>, vector<16x16x4xf32>
      %18 = vector.shape_cast %17 : vector<16x16x4xf32> to vector<256x4xf32>
      %c0_18 = arith.constant 0 : index
      %c4 = arith.constant 4 : index
      %19 = vector.load %arg9[%c0_18, %c4] : memref<256x36xf32, #tpu.memory_space<vmem>>, vector<256x4xf32>
      tpu.vector_store %arg9[%c0_18, %c4], %18 {strides = array<i32>} : memref<256x36xf32, #tpu.memory_space<vmem>>, vector<256x4xf32>,
      %c0_19 = arith.constant 0 : index
      %c2 = arith.constant 2 : index
      %c0_20 = arith.constant 0 : index
      %20 = vector.load %arg8[%c0_19, %c2, %c0_20] : memref<18x18x4xf32, #tpu.memory_space<vmem>>, vector<16x16x4xf32>
      %21 = vector.shape_cast %20 : vector<16x16x4xf32> to vector<256x4xf32>
      %c0_21 = arith.constant 0 : index
      %c8 = arith.constant 8 : index
      %22 = vector.load %arg9[%c0_21, %c8] : memref<256x36xf32, #tpu.memory_space<vmem>>, vector<256x4xf32>
      tpu.vector_store %arg9[%c0_21, %c8], %21 {strides = array<i32>} : memref<256x36xf32, #tpu.memory_space<vmem>>, vector<256x4xf32>,
      %c1_22 = arith.constant 1 : index
      %c0_23 = arith.constant 0 : index
      %c0_24 = arith.constant 0 : index
      %23 = vector.load %arg8[%c1_22, %c0_23, %c0_24] : memref<18x18x4xf32, #tpu.memory_space<vmem>>, vector<16x16x4xf32>
      %24 = vector.shape_cast %23 : vector<16x16x4xf32> to vector<256x4xf32>
      %c0_25 = arith.constant 0 : index
      %c12 = arith.constant 12 : index
      %25 = vector.load %arg9[%c0_25, %c12] : memref<256x36xf32, #tpu.memory_space<vmem>>, vector<256x4xf32>
      tpu.vector_store %arg9[%c0_25, %c12], %24 {strides = array<i32>} : memref<256x36xf32, #tpu.memory_space<vmem>>, vector<256x4xf32>,
      %c1_26 = arith.constant 1 : index
      %c1_27 = arith.constant 1 : index
      %c0_28 = arith.constant 0 : index
      %26 = vector.load %arg8[%c1_26, %c1_27, %c0_28] : memref<18x18x4xf32, #tpu.memory_space<vmem>>, vector<16x16x4xf32>
      %27 = vector.shape_cast %26 : vector<16x16x4xf32> to vector<256x4xf32>
      %c0_29 = arith.constant 0 : index
      %c16 = arith.constant 16 : index
      %28 = vector.load %arg9[%c0_29, %c16] : memref<256x36xf32, #tpu.memory_space<vmem>>, vector<256x4xf32>
      tpu.vector_store %arg9[%c0_29, %c16], %27 {strides = array<i32>} : memref<256x36xf32, #tpu.memory_space<vmem>>, vector<256x4xf32>,
      %c1_30 = arith.constant 1 : index
      %c2_31 = arith.constant 2 : index
      %c0_32 = arith.constant 0 : index
      %29 = vector.load %arg8[%c1_30, %c2_31, %c0_32] : memref<18x18x4xf32, #tpu.memory_space<vmem>>, vector<16x16x4xf32>
      %30 = vector.shape_cast %29 : vector<16x16x4xf32> to vector<256x4xf32>
      %c0_33 = arith.constant 0 : index
      %c20 = arith.constant 20 : index
      %31 = vector.load %arg9[%c0_33, %c20] : memref<256x36xf32, #tpu.memory_space<vmem>>, vector<256x4xf32>
      tpu.vector_store %arg9[%c0_33, %c20], %30 {strides = array<i32>} : memref<256x36xf32, #tpu.memory_space<vmem>>, vector<256x4xf32>,
      %c2_34 = arith.constant 2 : index
      %c0_35 = arith.constant 0 : index
      %c0_36 = arith.constant 0 : index
      %32 = vector.load %arg8[%c2_34, %c0_35, %c0_36] : memref<18x18x4xf32, #tpu.memory_space<vmem>>, vector<16x16x4xf32>
      %33 = vector.shape_cast %32 : vector<16x16x4xf32> to vector<256x4xf32>
      %c0_37 = arith.constant 0 : index
      %c24 = arith.constant 24 : index
      %34 = vector.load %arg9[%c0_37, %c24] : memref<256x36xf32, #tpu.memory_space<vmem>>, vector<256x4xf32>
      tpu.vector_store %arg9[%c0_37, %c24], %33 {strides = array<i32>} : memref<256x36xf32, #tpu.memory_space<vmem>>, vector<256x4xf32>,
      %c2_38 = arith.constant 2 : index
      %c1_39 = arith.constant 1 : index
      %c0_40 = arith.constant 0 : index
      %35 = vector.load %arg8[%c2_38, %c1_39, %c0_40] : memref<18x18x4xf32, #tpu.memory_space<vmem>>, vector<16x16x4xf32>
      %36 = vector.shape_cast %35 : vector<16x16x4xf32> to vector<256x4xf32>
      %c0_41 = arith.constant 0 : index
      %c28 = arith.constant 28 : index
      %37 = vector.load %arg9[%c0_41, %c28] : memref<256x36xf32, #tpu.memory_space<vmem>>, vector<256x4xf32>
      tpu.vector_store %arg9[%c0_41, %c28], %36 {strides = array<i32>} : memref<256x36xf32, #tpu.memory_space<vmem>>, vector<256x4xf32>,
      %c2_42 = arith.constant 2 : index
      %c2_43 = arith.constant 2 : index
      %c0_44 = arith.constant 0 : index
      %38 = vector.load %arg8[%c2_42, %c2_43, %c0_44] : memref<18x18x4xf32, #tpu.memory_space<vmem>>, vector<16x16x4xf32>
      %39 = vector.shape_cast %38 : vector<16x16x4xf32> to vector<256x4xf32>
      %c0_45 = arith.constant 0 : index
      %c32 = arith.constant 32 : index
      %40 = vector.load %arg9[%c0_45, %c32] : memref<256x36xf32, #tpu.memory_space<vmem>>, vector<256x4xf32>
      tpu.vector_store %arg9[%c0_45, %c32], %39 {strides = array<i32>} : memref<256x36xf32, #tpu.memory_space<vmem>>, vector<256x4xf32>,
      %c0_46 = arith.constant 0 : index
      %c0_47 = arith.constant 0 : index
      %41 = vector.load %arg9[%c0_46, %c0_47] : memref<256x36xf32, #tpu.memory_space<vmem>>, vector<256x36xf32>
      %c0_48 = arith.constant 0 : index
      %c0_49 = arith.constant 0 : index
      %42 = vector.load %arg3[%c0_48, %c0_49] : memref<36x128xf32, #tpu.memory_space<vmem>>, vector<36x128xf32>
      %cst = arith.constant dense<0.000000e+00> : vector<256x128xf32>
      %43 = tpu.matmul %41, %42, %cst {dimension_numbers = #tpu.dot_dimension_numbers<[1], [0], [0], [1], [0, 0, 1, 1], [], []>} : vector<256x36xf32>, vector<36x128xf32>, vector<256x128xf32> -> vector<256x128xf32>
      %c0_50 = arith.constant 0 : index
      %c0_51 = arith.constant 0 : index
      %44 = vector.load %arg4[%c0_50, %c0_51] : memref<1x128xf32, #tpu.memory_space<vmem>>, vector<1x128xf32>
      %45 = vector.broadcast %44 : vector<1x128xf32> to vector<256x128xf32>
      %46 = arith.addf %43, %45 : vector<256x128xf32>
      %cst_52 = arith.constant 0.000000e+00 : f32
      %47 = vector.broadcast %cst_52 : f32 to vector<256x128xf32>
      %48 = arith.maximumf %46, %47 : vector<256x128xf32>
      %c0_53 = arith.constant 0 : index
      %c0_54 = arith.constant 0 : index
      %49 = vector.load %arg11[%c0_53, %c0_54] : memref<1x128xf32, #tpu.memory_space<vmem>>, vector<1x128xf32>
      %cst_55 = arith.constant dense<0.000000e+00> : vector<128xf32>
      %50 = vector.multi_reduction <add>, %48, %cst_55 [0] : vector<256x128xf32> to vector<128xf32>
      %51 = vector.shape_cast %50 : vector<128xf32> to vector<1x128xf32>
      %52 = arith.addf %49, %51 : vector<1x128xf32>
      %c0_56 = arith.constant 0 : index
      %c0_57 = arith.constant 0 : index
      %53 = vector.load %arg11[%c0_56, %c0_57] : memref<1x128xf32, #tpu.memory_space<vmem>>, vector<1x128xf32>
      tpu.vector_store %arg11[%c0_56, %c0_57], %52 {strides = array<i32>} : memref<1x128xf32, #tpu.memory_space<vmem>>, vector<1x128xf32>,
      %c0_58 = arith.constant 0 : index
      %c0_59 = arith.constant 0 : index
      %54 = vector.load %arg12[%c0_58, %c0_59] : memref<1x128xf32, #tpu.memory_space<vmem>>, vector<1x128xf32>
      %55 = arith.mulf %48, %48 : vector<256x128xf32>
      %cst_60 = arith.constant dense<0.000000e+00> : vector<128xf32>
      %56 = vector.multi_reduction <add>, %55, %cst_60 [0] : vector<256x128xf32> to vector<128xf32>
      %57 = vector.shape_cast %56 : vector<128xf32> to vector<1x128xf32>
      %58 = arith.addf %54, %57 : vector<1x128xf32>
      %c0_61 = arith.constant 0 : index
      %c0_62 = arith.constant 0 : index
      %59 = vector.load %arg12[%c0_61, %c0_62] : memref<1x128xf32, #tpu.memory_space<vmem>>, vector<1x128xf32>
      tpu.vector_store %arg12[%c0_61, %c0_62], %58 {strides = array<i32>} : memref<1x128xf32, #tpu.memory_space<vmem>>, vector<1x128xf32>,
      %60 = arith.index_cast %arg1 : i32 to index
      %c0_63 = arith.constant 0 : index
      %c0_64 = arith.constant 0 : index
      %61 = vector.load %arg10[%60, %c0_63, %c0_64] : memref<2x256x128xf32, #tpu.memory_space<vmem>>, vector<1x256x128xf32>
      %62 = vector.shape_cast %61 : vector<1x256x128xf32> to vector<256x128xf32>
      %63 = vector.shape_cast %48 : vector<256x128xf32> to vector<1x256x128xf32>
      tpu.vector_store %arg10[%60, %c0_63, %c0_64], %63 {strides = array<i32>} : memref<2x256x128xf32, #tpu.memory_space<vmem>>, vector<1x256x128xf32>,
    } else {
    }
    %c1_i32 = arith.constant 1 : i32
    %8 = arith.cmpi eq, %arg0, %c1_i32 : i32
    %9 = arith.extui %8 : i1 to i32
    %c0_i32_4 = arith.constant 0 : i32
    %10 = arith.cmpi ne, %9, %c0_i32_4 : i32
    scf.if %10 {
      %c0_i32_5 = arith.constant 0 : i32
      %11 = arith.cmpi eq, %arg1, %c0_i32_5 : i32
      %12 = arith.extui %11 : i1 to i32
      %c0_i32_6 = arith.constant 0 : i32
      %13 = arith.cmpi ne, %12, %c0_i32_6 : i32
      scf.if %13 {
        %c0_17 = arith.constant 0 : index
        %c0_18 = arith.constant 0 : index
        %30 = vector.load %arg11[%c0_17, %c0_18] : memref<1x128xf32, #tpu.memory_space<vmem>>, vector<1x128xf32>
        %cst_19 = arith.constant 0.001953125 : f32
        %31 = vector.broadcast %cst_19 : f32 to vector<1x128xf32>
        %32 = arith.mulf %30, %31 : vector<1x128xf32>
        %c0_20 = arith.constant 0 : index
        %c0_21 = arith.constant 0 : index
        %33 = vector.load %arg12[%c0_20, %c0_21] : memref<1x128xf32, #tpu.memory_space<vmem>>, vector<1x128xf32>
        %cst_22 = arith.constant 0.001953125 : f32
        %34 = vector.broadcast %cst_22 : f32 to vector<1x128xf32>
        %35 = arith.mulf %33, %34 : vector<1x128xf32>
        %36 = arith.mulf %32, %32 : vector<1x128xf32>
        %37 = arith.subf %35, %36 : vector<1x128xf32>
        %c0_23 = arith.constant 0 : index
        %c0_24 = arith.constant 0 : index
        %38 = vector.load %arg5[%c0_23, %c0_24] : memref<1x128xf32, #tpu.memory_space<vmem>>, vector<1x128xf32>
        %cst_25 = arith.constant 9.99999974E-6 : f32
        %39 = vector.broadcast %cst_25 : f32 to vector<1x128xf32>
        %40 = arith.addf %37, %39 : vector<1x128xf32>
        %41 = math.rsqrt %40 : vector<1x128xf32>
        %42 = arith.mulf %38, %41 : vector<1x128xf32>
        %c0_26 = arith.constant 0 : index
        %c0_27 = arith.constant 0 : index
        %43 = vector.load %arg13[%c0_26, %c0_27] : memref<1x128xf32, #tpu.memory_space<vmem>>, vector<1x128xf32>
        tpu.vector_store %arg13[%c0_26, %c0_27], %42 {strides = array<i32>} : memref<1x128xf32, #tpu.memory_space<vmem>>, vector<1x128xf32>,
        %c0_28 = arith.constant 0 : index
        %c0_29 = arith.constant 0 : index
        %44 = vector.load %arg6[%c0_28, %c0_29] : memref<1x128xf32, #tpu.memory_space<vmem>>, vector<1x128xf32>
        %45 = arith.mulf %32, %42 : vector<1x128xf32>
        %46 = arith.subf %44, %45 : vector<1x128xf32>
        %c0_30 = arith.constant 0 : index
        %c0_31 = arith.constant 0 : index
        %47 = vector.load %arg14[%c0_30, %c0_31] : memref<1x128xf32, #tpu.memory_space<vmem>>, vector<1x128xf32>
        tpu.vector_store %arg14[%c0_30, %c0_31], %46 {strides = array<i32>} : memref<1x128xf32, #tpu.memory_space<vmem>>, vector<1x128xf32>,
      } else {
      }
      %14 = arith.index_cast %arg1 : i32 to index
      %c0 = arith.constant 0 : index
      %c0_7 = arith.constant 0 : index
      %15 = vector.load %arg10[%14, %c0, %c0_7] : memref<2x256x128xf32, #tpu.memory_space<vmem>>, vector<1x256x128xf32>
      %16 = vector.shape_cast %15 : vector<1x256x128xf32> to vector<256x128xf32>
      %c0_8 = arith.constant 0 : index
      %c0_9 = arith.constant 0 : index
      %17 = vector.load %arg13[%c0_8, %c0_9] : memref<1x128xf32, #tpu.memory_space<vmem>>, vector<1x128xf32>
      %18 = vector.broadcast %17 : vector<1x128xf32> to vector<256x128xf32>
      %19 = arith.mulf %16, %18 : vector<256x128xf32>
      %c0_10 = arith.constant 0 : index
      %c0_11 = arith.constant 0 : index
      %20 = vector.load %arg14[%c0_10, %c0_11] : memref<1x128xf32, #tpu.memory_space<vmem>>, vector<1x128xf32>
      %21 = vector.broadcast %20 : vector<1x128xf32> to vector<256x128xf32>
      %22 = arith.addf %19, %21 : vector<256x128xf32>
      %23 = vector.shape_cast %22 : vector<256x128xf32> to vector<8x2x16x128xf32>
      %cst = arith.constant dense<0xFF800000> : vector<8x16x128xf32>
      %24 = vector.multi_reduction <maximumf>, %23, %cst [1] : vector<8x2x16x128xf32> to vector<8x16x128xf32>
      %25 = vector.shape_cast %24 : vector<8x16x128xf32> to vector<8x8x2x128xf32>
      %cst_12 = arith.constant dense<0xFF800000> : vector<8x8x128xf32>
      %26 = vector.multi_reduction <maximumf>, %25, %cst_12 [2] : vector<8x8x2x128xf32> to vector<8x8x128xf32>
      %c0_13 = arith.constant 0 : index
      %c0_14 = arith.constant 0 : index
      %c0_15 = arith.constant 0 : index
      %c0_16 = arith.constant 0 : index
      %27 = vector.load %arg7[%c0_13, %c0_14, %c0_15, %c0_16] : memref<1x8x8x128xf32, #tpu.memory_space<vmem>>, vector<1x8x8x128xf32>
      %28 = vector.shape_cast %27 : vector<1x8x8x128xf32> to vector<8x8x128xf32>
      %29 = vector.shape_cast %26 : vector<8x8x128xf32> to vector<1x8x8x128xf32>
      tpu.vector_store %arg7[%c0_13, %c0_14, %c0_15, %c0_16], %29 {strides = array<i32>} : memref<1x8x8x128xf32, #tpu.memory_space<vmem>>, vector<1x8x8x128xf32>,
    } else {
    }
    return
  }
  func.func @transform_0(%arg0: i32, %arg1: i32) -> (i32, i32, i32, i32) {
    %c1_i32 = arith.constant 1 : i32
    %0 = arith.subi %c1_i32, %arg0 : i32
    %1 = arith.muli %arg1, %0 : i32
    %c0_i32 = arith.constant 0 : i32
    %c0_i32_0 = arith.constant 0 : i32
    %c0_i32_1 = arith.constant 0 : i32
    %c0_i32_2 = arith.constant 0 : i32
    return %1, %c0_i32, %c0_i32_0, %c0_i32_1 : i32, i32, i32, i32
  }
  func.func @transform_1(%arg0: i32, %arg1: i32) -> (i32, i32) {
    %c0_i32 = arith.constant 0 : i32
    %c0_i32_0 = arith.constant 0 : i32
    %c0_i32_1 = arith.constant 0 : i32
    return %c0_i32, %c0_i32_0 : i32, i32
  }
  func.func @transform_2(%arg0: i32, %arg1: i32) -> (i32, i32) {
    %c0_i32 = arith.constant 0 : i32
    %c0_i32_0 = arith.constant 0 : i32
    %c0_i32_1 = arith.constant 0 : i32
    return %c0_i32, %c0_i32_0 : i32, i32
  }
  func.func @transform_3(%arg0: i32, %arg1: i32) -> (i32, i32) {
    %c0_i32 = arith.constant 0 : i32
    %c0_i32_0 = arith.constant 0 : i32
    %c0_i32_1 = arith.constant 0 : i32
    return %c0_i32, %c0_i32_0 : i32, i32
  }
  func.func @transform_4(%arg0: i32, %arg1: i32) -> (i32, i32) {
    %c0_i32 = arith.constant 0 : i32
    %c0_i32_0 = arith.constant 0 : i32
    %c0_i32_1 = arith.constant 0 : i32
    return %c0_i32, %c0_i32_0 : i32, i32
  }
  func.func @transform_5(%arg0: i32, %arg1: i32) -> (i32, i32, i32, i32) {
    %0 = arith.muli %arg0, %arg1 : i32
    %c0_i32 = arith.constant 0 : i32
    %c0_i32_0 = arith.constant 0 : i32
    %c0_i32_1 = arith.constant 0 : i32
    %c0_i32_2 = arith.constant 0 : i32
    return %0, %c0_i32, %c0_i32_0, %c0_i32_1 : i32, i32, i32, i32
  }
}

</mosaic_0001>

<bundles_post_ra>
// kernel: block_forward.1
= control target key start
LH: loop header
LB: loop body
LE: loop exit
PB: predicated region body
PF: predicated region fallthrough
CT: control target
= control target key end

     0   :  { %s4009_s18 = smov 0   ;;  %s4011_s19 = smov 0   ;;  %s5868_s0 = inlined_call_operand.vmem [shape: f32[2,16,16,4], index: 0, kind: input, shape index: {}]   ;;  %s5869_s1 = inlined_call_operand.vmem [shape: f32[36,128], index: 1, kind: input, shape index: {}]   ;;  %s5870_s2 = inlined_call_operand.vmem [shape: f32[1,128], index: 2, kind: input, shape index: {}]   ;;  %s5871_s3 = inlined_call_operand.vmem [shape: f32[1,128], index: 3, kind: input, shape index: {}]   ;;  %s5872_s4 = inlined_call_operand.vmem [shape: f32[1,128], index: 4, kind: input, shape index: {}]   ;;  %s5873_s5 = inlined_call_operand.vmem [shape: f32[2,8,8,128], index: 5, kind: output, shape index: {}]  }
   0x1   :  { %s4013_s20 = smov 0   ;;  %s4015_s21 = smov 0  }
   0x2   :  { %s4017_s22 = smov 0  }
   0x3 LB: > { %s24_s23 = sadd.s32 1, %s3959_s20  ;;  %s27_s24 = sadd.s32 1, %s3963_s21  ;;  %s3967_s22 = sphi %s4017_s22, %s15_s22   ;;  %s3963_s21 = sphi %s4015_s21, %s5948_s21   ;;  %s3959_s20 = sphi %s4013_s20, %s5947_s20   ;;  %s3955_s19 = sphi %s4011_s19, %s5946_s19   ;;  %s3951_s18 = sphi %s4009_s18, %s5945_s18  }
   0x4   : > { %p25_p0 = scmp.ge.s32.totalorder %s24_s23, 2  ;;  %p3718_p1 = scmp.ge.s32.totalorder %s3967_s22, 1 }
   0x5   : > { %p209_p2 = scmp.lt.s32.totalorder %s3967_s22, 5 }
   0x6   : > { %s5950_s23 = smov (%p25_p0, %s24_s23), 0  ;;  %s5952_s24 = smov (!%p25_p0, %s27_s24), %s3963_s21 }
   0x7   : > { %p210_p3 = pnand %p3718_p1, %p209_p2  ;;  %p29_p4 = scmp.ge.s32.totalorder %s5952_s24, 2 }
   0x8   : > { %s240_s25 = ssub.s32 (!%p210_p3), 1, %s3955_s19  ;;  %s249_s26 = smul.u32 (!%p210_p3), %s3951_s18, %s3955_s19 }
   0x9   : > { %s5954_s24 = smov (%p29_p4, %s5952_s24), 0  ;;  %213 = sbr.rel (%p210_p3) target bundleno = 1139 (0x473), region = 40 }
   0xa   : > { %s241_s27 = smul.u32 (!%p210_p3), %s3951_s18, %s240_s25  ;;  %p256_p5 = scmp.eq.s32.totalorder (!%p210_p3), %s3955_s19, 0 }
   0xb   : > { %p250_p6 = scmp.lt.s32.totalorder (!%p210_p3), %s249_s26, 1  ;;  %p257_p7 = scmp.eq.s32.totalorder (!%p210_p3), %s3951_s18, 0 }
   0xc   : > { %p242_p8 = scmp.lt.s32.totalorder (!%p210_p3), %s241_s27, 1 }
   0xd   : > { %p258_p9 = pnand (!%p210_p3), %p257_p7, %p256_p5 }
  0x10   : > { %s5956_s26 = smov (!%p250_p6, %s249_s26), 1  ;;  %s5958_s27 = smov (!%p242_p8, %s241_s27), 1 }
  0x11   : > { %s3767_s28 = sshll.u32 %s5956_s26, 6  ;;  %s3766_s29 = sshll.u32 %s5958_s27, 8  ;;  %vm262_vm0 = vcmask (!%p258_p9), 31744   ;;  %vm265_vm1 = vcmask (!%p258_p9), 25600   ;;  %v3969_v0 = vmov (!%p258_p9), 0.0  }
  0x12   : > { %s4052_s7 = scalar_lea.vmem %s5873_s5, %s3767_s28  ;;  %s4057_s10 = scalar_lea.vmem %s5868_s0, %s3766_s29  ;;  %263 = vst.msk [vmem:[#allocation2] sm:$0xff] (!%p258_p9), %vm262_vm0, %v3969_v0  ;;  %264 = vst.msk [vmem:[#allocation2 + $0x8] sm:$0xff] (!%p258_p9), %vm262_vm0, %v3969_v0 }
  0x13   : > { %261 = sbr.rel (%p258_p9) target bundleno = 46 (0x2e), region = 44  ;;  %267 = vst.msk [vmem:[#allocation2 + $0x18] sm:$0xff] (!%p258_p9), %vm262_vm0, %v3969_v0  ;;  %268 = vst.msk [vmem:[#allocation2 + $0x20] sm:$0xff] (!%p258_p9), %vm262_vm0, %v3969_v0 }
  0x14   : > { %270 = vst.msk [vmem:[#allocation2 + $0x30] sm:$0xff] (!%p258_p9), %vm262_vm0, %v3969_v0  ;;  %271 = vst.msk [vmem:[#allocation2 + $0x38] sm:$0xff] (!%p258_p9), %vm262_vm0, %v3969_v0 }
  0x15   : > { %273 = vst.msk [vmem:[#allocation2 + $0x48] sm:$0xff] (!%p258_p9), %vm262_vm0, %v3969_v0  ;;  %274 = vst.msk [vmem:[#allocation2 + $0x50] sm:$0xff] (!%p258_p9), %vm262_vm0, %v3969_v0 }
  0x16   : > { %276 = vst.msk [vmem:[#allocation2 + $0x60] sm:$0xff] (!%p258_p9), %vm262_vm0, %v3969_v0  ;;  %277 = vst.msk [vmem:[#allocation2 + $0x68] sm:$0xff] (!%p258_p9), %vm262_vm0, %v3969_v0 }
  0x17   : > { %279 = vst.msk [vmem:[#allocation2 + $0x78] sm:$0xff] (!%p258_p9), %vm262_vm0, %v3969_v0  ;;  %280 = vst.msk [vmem:[#allocation2 + $0x80] sm:$0xff] (!%p258_p9), %vm262_vm0, %v3969_v0 }
  0x18   : > { %282 = vst.msk [vmem:[#allocation2 + $0x90] sm:$0xff] (!%p258_p9), %vm262_vm0, %v3969_v0  ;;  %283 = vst.msk [vmem:[#allocation2 + $0x98] sm:$0xff] (!%p258_p9), %vm262_vm0, %v3969_v0 }
  0x19   : > { %285 = vst.msk [vmem:[#allocation2 + $0xa8] sm:$0xff] (!%p258_p9), %vm262_vm0, %v3969_v0  ;;  %286 = vst.msk [vmem:[#allocation2 + $0xb0] sm:$0xff] (!%p258_p9), %vm262_vm0, %v3969_v0 }
  0x1a   : > { %288 = vst.msk [vmem:[#allocation2 + $0xc0] sm:$0xff] %vm262_vm0, %v3969_v0  ;;  %289 = vst.msk [vmem:[#allocation2 + $0xc8] sm:$0xff] %vm262_vm0, %v3969_v0 }
  0x1b   : > { %291 = vst.msk [vmem:[#allocation2 + $0xd8] sm:$0xff] %vm262_vm0, %v3969_v0  ;;  %292 = vst.msk [vmem:[#allocation2 + $0xe0] sm:$0xff] %vm262_vm0, %v3969_v0 }
  0x1c   : > { %294 = vst.msk [vmem:[#allocation2 + $0xf0] sm:$0xff] %vm262_vm0, %v3969_v0  ;;  %295 = vst.msk [vmem:[#allocation2 + $0xf8] sm:$0xff] %vm262_vm0, %v3969_v0 }
  0x1d   : > { %297 = vst.msk [vmem:[#allocation2 + $0x108] sm:$0xff] %vm262_vm0, %v3969_v0  ;;  %298 = vst.msk [vmem:[#allocation2 + $0x110] sm:$0xff] %vm262_vm0, %v3969_v0 }
  0x1e   : > { %300 = vst.msk [vmem:[#allocation2 + $0x120] sm:$0xff] %vm262_vm0, %v3969_v0  ;;  %301 = vst.msk [vmem:[#allocation2 + $0x128] sm:$0xff] %vm262_vm0, %v3969_v0 }
  0x1f   : > { %303 = vst.msk [vmem:[#allocation2 + $0x138] sm:$0xff] %vm262_vm0, %v3969_v0  ;;  %304 = vst.msk [vmem:[#allocation2 + $0x140] sm:$0xff] %vm262_vm0, %v3969_v0 }
  0x20   : > { %306 = vst.msk [vmem:[#allocation2 + $0x150] sm:$0xff] %vm262_vm0, %v3969_v0  ;;  %307 = vst.msk [vmem:[#allocation2 + $0x158] sm:$0xff] %vm262_vm0, %v3969_v0 }
  0x21   : > { %309 = vst.msk [vmem:[#allocation2 + $0x168] sm:$0xff] %vm262_vm0, %v3969_v0  ;;  %310 = vst.msk [vmem:[#allocation2 + $0x170] sm:$0xff] %vm262_vm0, %v3969_v0 }
  0x22   : > { %312 = vst.msk [vmem:[#allocation2 + $0x180] sm:$0xff] %vm262_vm0, %v3969_v0  ;;  %313 = vst.msk [vmem:[#allocation2 + $0x188] sm:$0xff] %vm262_vm0, %v3969_v0 }
  0x23   : > { %315 = vst.msk [vmem:[#allocation2 + $0x198] sm:$0xff] %vm262_vm0, %v3969_v0  ;;  %316 = vst.msk [vmem:[#allocation2 + $0x1a0] sm:$0xff] %vm262_vm0, %v3969_v0 }
  0x24   : > { %318 = vst [vmem:[#allocation5] sm:$0x1] %v3969_v0  ;;  %319 = vst [vmem:[#allocation6] sm:$0x1] %v3969_v0 }
  0x25   : > { %266 = vst.msk [vmem:[#allocation2 + $0x10] sm:$0x3] %vm265_vm1, %v3969_v0  ;;  %269 = vst.msk [vmem:[#allocation2 + $0x28] sm:$0x3] %vm265_vm1, %v3969_v0 }
  0x26   : > { %272 = vst.msk [vmem:[#allocation2 + $0x40] sm:$0x3] %vm265_vm1, %v3969_v0  ;;  %275 = vst.msk [vmem:[#allocation2 + $0x58] sm:$0x3] %vm265_vm1, %v3969_v0 }
  0x27   : > { %278 = vst.msk [vmem:[#allocation2 + $0x70] sm:$0x3] %vm265_vm1, %v3969_v0  ;;  %281 = vst.msk [vmem:[#allocation2 + $0x88] sm:$0x3] %vm265_vm1, %v3969_v0 }
  0x28   : > { %284 = vst.msk [vmem:[#allocation2 + $0xa0] sm:$0x3] %vm265_vm1, %v3969_v0  ;;  %287 = vst.msk [vmem:[#allocation2 + $0xb8] sm:$0x3] %vm265_vm1, %v3969_v0 }
  0x29   : > { %290 = vst.msk [vmem:[#allocation2 + $0xd0] sm:$0x3] %vm265_vm1, %v3969_v0  ;;  %293 = vst.msk [vmem:[#allocation2 + $0xe8] sm:$0x3] %vm265_vm1, %v3969_v0 }
  0x2a   : > { %296 = vst.msk [vmem:[#allocation2 + $0x100] sm:$0x3] %vm265_vm1, %v3969_v0  ;;  %299 = vst.msk [vmem:[#allocation2 + $0x118] sm:$0x3] %vm265_vm1, %v3969_v0 }
  0x2b   : > { %302 = vst.msk [vmem:[#allocation2 + $0x130] sm:$0x3] %vm265_vm1, %v3969_v0  ;;  %305 = vst.msk [vmem:[#allocation2 + $0x148] sm:$0x3] %vm265_vm1, %v3969_v0 }
  0x2c   : > { %308 = vst.msk [vmem:[#allocation2 + $0x160] sm:$0x3] %vm265_vm1, %v3969_v0  ;;  %311 = vst.msk [vmem:[#allocation2 + $0x178] sm:$0x3] %vm265_vm1, %v3969_v0 }
  0x2d   : > { %314 = vst.msk [vmem:[#allocation2 + $0x190] sm:$0x3] %vm265_vm1, %v3969_v0  ;;  %317 = vst.msk [vmem:[#allocation2 + $0x1a8] sm:$0x3] %vm265_vm1, %v3969_v0 }
  0x2e PF: > { %p3723_p10 = scmp.ne.s32.totalorder %s3955_s19, 0 }
  0x2f   : > { %v453_v1 = vld [vmem:[#allocation2 + $0x1] sm:$0xff] (!%p3723_p10)  ;;  %v454_v2 = vld [vmem:[#allocation2 + $0x9] sm:$0xff] (!%p3723_p10)  ;;  %vm356_vm2 = vcmask (!%p3723_p10), 31744   ;;  %s3970_s11 = smov (!%p3723_p10), 4   ;;  %v326_v7 = vld [vmem:[%s4057_s10 + $0x18] sm:$0xff] (!%p3723_p10)  ;;  %s3971_s12 = smov (!%p3723_p10), 8  }
  0x30   : > { %322 = sbr.rel (%p3723_p10) target bundleno = 928 (0x3a0), region = 48  ;;  %v323_v3 = vld [vmem:[%s4057_s10] sm:$0xff] (!%p3723_p10)  ;;  %517 = vrot.lane.b32.xlu0 (!%p3723_p10), %v453_v1, %s3970_s11  ;;  %v325_v4 = vld [vmem:[%s4057_s10 + $0x10] sm:$0xff] (!%p3723_p10)  ;;  %v324_v5 = vld [vmem:[%s4057_s10 + $0x8] sm:$0xff] (!%p3723_p10)  ;;  %360 = vst.msk [vmem:[#allocation2 + $0x39] sm:$0xff] (!%p3723_p10), %vm356_vm2, %v326_v7  ;;  %vm613_vm3 = vcmask (!%p3723_p10), 64544  }
  0x31   : > { %357 = vst.msk [vmem:[#allocation2 + $0x19] sm:$0xff] (!%p3723_p10), %vm356_vm2, %v323_v3  ;;  %v327_v6 = vld [vmem:[%s4057_s10 + $0x20] sm:$0xff] (!%p3723_p10)  ;;  %359 = vst.msk [vmem:[#allocation2 + $0x31] sm:$0xff] (!%p3723_p10), %vm356_vm2, %v325_v4  ;;  %v329_v8 = vld [vmem:[%s4057_s10 + $0x30] sm:$0xff] (!%p3723_p10)  ;;  %s3972_s13 = smov (!%p3723_p10), 12   ;;  %s3973_s14 = smov (!%p3723_p10), 16  }
  0x32   : > { %358 = vst.msk [vmem:[#allocation2 + $0x21] sm:$0xff] (!%p3723_p10), %vm356_vm2, %v324_v5  ;;  %361 = vst.msk [vmem:[#allocation2 + $0x49] sm:$0xff] (!%p3723_p10), %vm356_vm2, %v327_v6  ;;  %v328_v9 = vld [vmem:[%s4057_s10 + $0x28] sm:$0xff] (!%p3723_p10)  ;;  %v331_v10 = vld [vmem:[%s4057_s10 + $0x40] sm:$0xff] (!%p3723_p10)  ;;  %s3974_s15 = smov (!%p3723_p10), 20   ;;  %s3975_s16 = smov (!%p3723_p10), 24  }
  0x33   : > { %363 = vst.msk [vmem:[#allocation2 + $0x61] sm:$0xff] (!%p3723_p10), %vm356_vm2, %v329_v8  ;;  %362 = vst.msk [vmem:[#allocation2 + $0x51] sm:$0xff] (!%p3723_p10), %vm356_vm2, %v328_v9  ;;  %v330_v11 = vld [vmem:[%s4057_s10 + $0x38] sm:$0xff] (!%p3723_p10)  ;;  %v333_v12 = vld [vmem:[%s4057_s10 + $0x50] sm:$0xff] (!%p3723_p10)  ;;  %s3976_s28 = smov (!%p3723_p10), 28   ;;  %vm2139_vm4 = vcmask (!%p3723_p10), 1043456  }
  0x34   : > { %365 = vst.msk [vmem:[#allocation2 + $0x79] sm:$0xff] (!%p3723_p10), %vm356_vm2, %v331_v10  ;;  %364 = vst.msk [vmem:[#allocation2 + $0x69] sm:$0xff] (!%p3723_p10), %vm356_vm2, %v330_v11  ;;  %v332_v13 = vld [vmem:[%s4057_s10 + $0x48] sm:$0xff] (!%p3723_p10)  ;;  %v335_v14 = vld [vmem:[%s4057_s10 + $0x60] sm:$0xff] (!%p3723_p10)  ;;  %519 = vrot.lane.b32.xlu0 (!%p3723_p10), %v454_v2, %s3970_s11  ;;  %vm806_vm5 = vcmask (!%p3723_p10), 97344   ;;  %vm999_vm6 = vcmask (!%p3723_p10), 130144  }
  0x35   : > { %367 = vst.msk [vmem:[#allocation2 + $0x91] sm:$0xff] (!%p3723_p10), %vm356_vm2, %v333_v12  ;;  %v334_v15 = vld [vmem:[%s4057_s10 + $0x58] sm:$0xff] (!%p3723_p10)  ;;  %366 = vst.msk [vmem:[#allocation2 + $0x81] sm:$0xff] (!%p3723_p10), %vm356_vm2, %v332_v13  ;;  %v337_v16 = vld [vmem:[%s4057_s10 + $0x70] sm:$0xff] (!%p3723_p10)  ;;  %vm1192_vm7 = vcmask (!%p3723_p10), 162944   ;;  %vm1385_vm8 = vcmask (!%p3723_p10), 195744  }
  0x36   : > { %369 = vst.msk [vmem:[#allocation2 + $0xa9] sm:$0xff] (!%p3723_p10), %vm356_vm2, %v335_v14  ;;  %368 = vst.msk [vmem:[#allocation2 + $0x99] sm:$0xff] (!%p3723_p10), %vm356_vm2, %v334_v15  ;;  %v336_v17 = vld [vmem:[%s4057_s10 + $0x68] sm:$0xff] (!%p3723_p10)  ;;  %v339_v18 = vld [vmem:[%s4057_s10 + $0x80] sm:$0xff] (!%p3723_p10)  ;;  %vm1579_vm9 = vcmask (!%p3723_p10), 228544   ;;  %vm1772_vm10 = vcmask (!%p3723_p10), 261344  }
  0x37   : > { %371 = vst.msk [vmem:[#allocation2 + $0xc1] sm:$0xff] %vm356_vm2, %v337_v16  ;;  %370 = vst.msk [vmem:[#allocation2 + $0xb1] sm:$0xff] %vm356_vm2, %v336_v17  ;;  %v338_v19 = vld [vmem:[%s4057_s10 + $0x78] sm:$0xff]  ;;  %v341_v20 = vld [vmem:[%s4057_s10 + $0x90] sm:$0xff]  ;;  %vm1965_vm11 = vcmask 294144   ;;  %vm2042_vm12 = vcmask 293888  }
  0x38   : > { %373 = vst.msk [vmem:[#allocation2 + $0xd9] sm:$0xff] %vm356_vm2, %v339_v18  ;;  %v340_v21 = vld [vmem:[%s4057_s10 + $0x88] sm:$0xff]  ;;  %372 = vst.msk [vmem:[#allocation2 + $0xc9] sm:$0xff] %vm356_vm2, %v338_v19  ;;  %v343_v22 = vld [vmem:[%s4057_s10 + $0xa0] sm:$0xff] }
  0x39   : > { %375 = vst.msk [vmem:[#allocation2 + $0xf1] sm:$0xff] %vm356_vm2, %v341_v20  ;;  %374 = vst.msk [vmem:[#allocation2 + $0xe1] sm:$0xff] %vm356_vm2, %v340_v21  ;;  %v342_v23 = vld [vmem:[%s4057_s10 + $0x98] sm:$0xff]  ;;  %v345_v24 = vld [vmem:[%s4057_s10 + $0xb0] sm:$0xff] }
  0x3a   : > { %v4157_v25 = vld [vmem:[#allocation2 + $0x19] sm:$0xff]  ;;  %377 = vst.msk [vmem:[#allocation2 + $0x109] sm:$0xff] %vm356_vm2, %v343_v22  ;;  %376 = vst.msk [vmem:[#allocation2 + $0xf9] sm:$0xff] %vm356_vm2, %v342_v23  ;;  %v344_v26 = vld [vmem:[%s4057_s10 + $0xa8] sm:$0xff] }
  0x3b   : > { %379 = vst.msk [vmem:[#allocation2 + $0x121] sm:$0xff] %vm356_vm2, %v345_v24  ;;  %v347_v27 = vld [vmem:[%s4057_s10 + $0xc0] sm:$0xff]  ;;  %521 = vrot.lane.b32.xlu1 %v4157_v25, %s3970_s11  ;;  %v4166_v28 = vld [vmem:[#allocation2 + $0x31] sm:$0xff]  ;;  %378 = vst.msk [vmem:[#allocation2 + $0x111] sm:$0xff] %vm356_vm2, %v344_v26 }
  0x3c   : > { %381 = vst.msk [vmem:[#allocation2 + $0x139] sm:$0xff] %vm356_vm2, %v347_v27  ;;  %525 = vrot.lane.b32.xlu0 %v4166_v28, %s3970_s11  ;;  %v4172_v29 = vld [vmem:[#allocation2 + $0x21] sm:$0xff]  ;;  %v4174_v30 = vld [vmem:[#allocation2 + $0x49] sm:$0xff]  ;;  %v4180_v31 = vld [vmem:[#allocation2 + $0x39] sm:$0xff] }
  0x3d   : > { %v4182_v32 = vld [vmem:[#allocation2 + $0x61] sm:$0xff]  ;;  %v346_v33 = vld [vmem:[%s4057_s10 + $0xb8] sm:$0xff]  ;;  %v349_v34 = vld [vmem:[%s4057_s10 + $0xd0] sm:$0xff] }
  0x3e   : > { %380 = vst.msk [vmem:[#allocation2 + $0x129] sm:$0xff] %vm356_vm2, %v346_v33  ;;  %v348_v35 = vld [vmem:[%s4057_s10 + $0xc8] sm:$0xff]  ;;  %v351_v36 = vld [vmem:[%s4057_s10 + $0xe0] sm:$0xff]  ;;  %v4193_v37 = vld [vmem:[#allocation2 + $0x51] sm:$0xff] }
  0x3f   : > { %523 = vrot.lane.b32.xlu1 %v4172_v29, %s3970_s11  ;;  %383 = vst.msk [vmem:[#allocation2 + $0x151] sm:$0xff] %vm356_vm2, %v349_v34  ;;  %382 = vst.msk [vmem:[#allocation2 + $0x141] sm:$0xff] %vm356_vm2, %v348_v35  ;;  %v350_v38 = vld [vmem:[%s4057_s10 + $0xd8] sm:$0xff]  ;;  %v352_v39 = vld [vmem:[%s4057_s10 + $0xe8] sm:$0xff] }
  0x40   : > { %529 = vrot.lane.b32.xlu0 %v4174_v30, %s3970_s11  ;;  %385 = vst.msk [vmem:[#allocation2 + $0x169] sm:$0xff] %vm356_vm2, %v351_v36  ;;  %v4200_v40 = vld [vmem:[#allocation2 + $0x79] sm:$0xff]  ;;  %384 = vst.msk [vmem:[#allocation2 + $0x159] sm:$0xff] %vm356_vm2, %v350_v38  ;;  %v4208_v41 = vld [vmem:[#allocation2 + $0x69] sm:$0xff] }
  0x41   : > { %386 = vst.msk [vmem:[#allocation2 + $0x171] sm:$0xff] %vm356_vm2, %v352_v39  ;;  %v4210_v42 = vld [vmem:[#allocation2 + $0x91] sm:$0xff]  ;;  %v4216_v43 = vld [vmem:[#allocation2 + $0x81] sm:$0xff]  ;;  %v4218_v44 = vld [vmem:[#allocation2 + $0xa9] sm:$0xff] }
  0x42   : > { %v389_v45 = vld [vmem:[#allocation2] sm:$0xff]  ;;  %v390_v46 = vld [vmem:[#allocation2 + $0x8] sm:$0xff]  ;;  %v4228_v48 = vld [vmem:[#allocation2 + $0x18] sm:$0xff] }
  0x43   : > { %527 = vrot.lane.b32.xlu1 %v4180_v31, %s3970_s11  ;;  %421 = vst.msk [vmem:[#allocation3] sm:$0xff] %vm356_vm2, %v389_v45  ;;  %v4225_v47 = vld [vmem:[#allocation2 + $0x99] sm:$0xff]  ;;  %422 = vst.msk [vmem:[#allocation3 + $0x8] sm:$0xff] %vm356_vm2, %v390_v46  ;;  %v469_v49 = vld [vmem:[#allocation2 + $0xc1] sm:$0xff] }
  0x44   : > { %533 = vrot.lane.b32.xlu0 %v4182_v32, %s3970_s11  ;;  %423 = vst.msk [vmem:[#allocation3 + $0x10] sm:$0xff] %vm356_vm2, %v4228_v48  ;;  %v4232_v50 = vld [vmem:[#allocation2 + $0x30] sm:$0xff]  ;;  %v4238_v52 = vld [vmem:[#allocation2 + $0x20] sm:$0xff]  ;;  %v4240_v53 = vld [vmem:[#allocation2 + $0x48] sm:$0xff] }
  0x45   : > { %v4234_v51 = vld [vmem:[#allocation2 + $0xb1] sm:$0xff]  ;;  %425 = vst.msk [vmem:[#allocation3 + $0x20] sm:$0xff] %vm356_vm2, %v4232_v50  ;;  %v471_v54 = vld [vmem:[#allocation2 + $0xd9] sm:$0xff]  ;;  %424 = vst.msk [vmem:[#allocation3 + $0x18] sm:$0xff] %vm356_vm2, %v4238_v52 }
  0x46   : > { %427 = vst.msk [vmem:[#allocation3 + $0x30] sm:$0xff] %vm356_vm2, %v4240_v53  ;;  %v4248_v55 = vld [vmem:[#allocation2 + $0x38] sm:$0xff]  ;;  %v4250_v56 = vld [vmem:[#allocation2 + $0x60] sm:$0xff]  ;;  %v4257_v57 = vld [vmem:[#allocation2 + $0x50] sm:$0xff] }
  0x47   : > { %531 = vrot.lane.b32.xlu1 %v4193_v37, %s3970_s11  ;;  %426 = vst.msk [vmem:[#allocation3 + $0x28] sm:$0xff] %vm356_vm2, %v4248_v55  ;;  %429 = vst.msk [vmem:[#allocation3 + $0x40] sm:$0xff] %vm356_vm2, %v4250_v56  ;;  %v4259_v58 = vld [vmem:[#allocation2 + $0x78] sm:$0xff]  ;;  %v4261_v59 = vld [vmem:[#allocation2 + $0x68] sm:$0xff] }
  0x48   : > { %537 = vrot.lane.b32.xlu0 %v4200_v40, %s3970_s11  ;;  %428 = vst.msk [vmem:[#allocation3 + $0x38] sm:$0xff] %vm356_vm2, %v4257_v57  ;;  %431 = vst.msk [vmem:[#allocation3 + $0x50] sm:$0xff] %vm356_vm2, %v4259_v58  ;;  %v4269_v60 = vld [vmem:[#allocation2 + $0x90] sm:$0xff]  ;;  %v4271_v61 = vld [vmem:[#allocation2 + $0x80] sm:$0xff] }
  0x49   : > { %430 = vst.msk [vmem:[#allocation3 + $0x48] sm:$0xff] %vm356_vm2, %v4261_v59  ;;  %v4273_v62 = vld [vmem:[#allocation2 + $0xa8] sm:$0xff]  ;;  %433 = vst.msk [vmem:[#allocation3 + $0x60] sm:$0xff] %vm356_vm2, %v4269_v60  ;;  %v4281_v0 = vld [vmem:[#allocation2 + $0x98] sm:$0xff] }
  0x4a   : > { %v470_v63 = vld [vmem:[#allocation2 + $0xc9] sm:$0xff]  ;;  %432 = vst.msk [vmem:[#allocation3 + $0x58] sm:$0xff] %vm356_vm2, %v4271_v61  ;;  %435 = vst.msk [vmem:[#allocation3 + $0x70] sm:$0xff] %vm356_vm2, %v4273_v62  ;;  %v4283_v1 = vld [vmem:[#allocation2 + $0xc0] sm:$0xff] }
  0x4b   : > { %535 = vrot.lane.b32.xlu1 %v4208_v41, %s3970_s11  ;;  %v4285_v2 = vld [vmem:[#allocation2 + $0xb0] sm:$0xff]  ;;  %434 = vst.msk [vmem:[#allocation3 + $0x68] sm:$0xff] %vm356_vm2, %v4281_v0  ;;  %437 = vst.msk [vmem:[#allocation3 + $0x80] sm:$0xff] %vm356_vm2, %v4283_v1  ;;  %v4295_v3 = vld [vmem:[#allocation2 + $0xd8] sm:$0xff] }
  0x4c   : > { %541 = vrot.lane.b32.xlu0 %v4210_v42, %s3970_s11  ;;  %436 = vst.msk [vmem:[#allocation3 + $0x78] sm:$0xff] %vm356_vm2, %v4285_v2  ;;  %v4297_v4 = vld [vmem:[#allocation2 + $0xc8] sm:$0xff]  ;;  %v4299_v5 = vld [vmem:[#allocation2 + $0xf0] sm:$0xff]  ;;  %439 = vst.msk [vmem:[#allocation3 + $0x90] sm:$0xff] %vm356_vm2, %v4295_v3 }
  0x4d   : > { %438 = vst.msk [vmem:[#allocation3 + $0x88] sm:$0xff] %vm356_vm2, %v4297_v4  ;;  %441 = vst.msk [vmem:[#allocation3 + $0xa0] sm:$0xff] %vm356_vm2, %v4299_v5  ;;  %v4308_v6 = vld [vmem:[#allocation2 + $0xe0] sm:$0xff]  ;;  %v4310_v7 = vld [vmem:[#allocation2 + $0x108] sm:$0xff] }
  0x4e   : > { %v4312_v8 = vld [vmem:[#allocation2 + $0xf8] sm:$0xff]  ;;  %440 = vst.msk [vmem:[#allocation3 + $0x98] sm:$0xff] %vm356_vm2, %v4308_v6  ;;  %443 = vst.msk [vmem:[#allocation3 + $0xb0] sm:$0xff] %vm356_vm2, %v4310_v7  ;;  %v4320_v10 = vld [vmem:[#allocation2 + $0x120] sm:$0xff] }
  0x4f   : > { %539 = vrot.lane.b32.xlu1 %v4216_v43, %s3970_s11  ;;  %v473_v9 = vld [vmem:[#allocation2 + $0xf1] sm:$0xff]  ;;  %442 = vst.msk [vmem:[#allocation3 + $0xa8] sm:$0xff] %vm356_vm2, %v4312_v8  ;;  %445 = vst.msk [vmem:[#allocation3 + $0xc0] sm:$0xff] %vm356_vm2, %v4320_v10  ;;  %v472_v13 = vld [vmem:[#allocation2 + $0xe1] sm:$0xff] }
  0x50   : > { %545 = vrot.lane.b32.xlu0 %v4218_v44, %s3970_s11  ;;  %v4322_v11 = vld [vmem:[#allocation2 + $0x110] sm:$0xff]  ;;  %v415_v12 = vld [vmem:[#allocation2 + $0x138] sm:$0xff]  ;;  %v4331_v14 = vld [vmem:[#allocation2 + $0x128] sm:$0xff] }
  0x51   : > { %444 = vst.msk [vmem:[#allocation3 + $0xb8] sm:$0xff] %vm356_vm2, %v4322_v11  ;;  %447 = vst.msk [vmem:[#allocation3 + $0xd0] sm:$0xff] %vm356_vm2, %v415_v12  ;;  %v475_v15 = vld [vmem:[#allocation2 + $0x109] sm:$0xff]  ;;  %v474_v17 = vld [vmem:[#allocation2 + $0xf9] sm:$0xff] }
  0x52   : > { %446 = vst.msk [vmem:[#allocation3 + $0xc8] sm:$0xff] %vm356_vm2, %v4331_v14  ;;  %v417_v16 = vld [vmem:[#allocation2 + $0x150] sm:$0xff]  ;;  %v416_v18 = vld [vmem:[#allocation2 + $0x140] sm:$0xff]  ;;  %v419_v20 = vld [vmem:[#allocation2 + $0x168] sm:$0xff] }
  0x53   : > { %543 = vrot.lane.b32.xlu1 %v4225_v47, %s3970_s11  ;;  %449 = vst.msk [vmem:[#allocation3 + $0xe0] sm:$0xff] %vm356_vm2, %v417_v16  ;;  %v477_v19 = vld [vmem:[#allocation2 + $0x121] sm:$0xff]  ;;  %448 = vst.msk [vmem:[#allocation3 + $0xd8] sm:$0xff] %vm356_vm2, %v416_v18  ;;  %v476_v21 = vld [vmem:[#allocation2 + $0x111] sm:$0xff] }
  0x54   : > { %549 = vrot.lane.b32.xlu0 %v469_v49, %s3970_s11  ;;  %451 = vst.msk [vmem:[#allocation3 + $0xf0] sm:$0xff] %vm356_vm2, %v419_v20  ;;  %v418_v22 = vld [vmem:[#allocation2 + $0x158] sm:$0xff]  ;;  %v478_v24 = vld [vmem:[#allocation2 + $0x129] sm:$0xff]  ;;  %v480_v33 = vld [vmem:[#allocation2 + $0x141] sm:$0xff] }
  0x55   : > { %v479_v23 = vld [vmem:[#allocation2 + $0x139] sm:$0xff]  ;;  %450 = vst.msk [vmem:[#allocation3 + $0xe8] sm:$0xff] %vm356_vm2, %v418_v22  ;;  %v420_v26 = vld [vmem:[#allocation2 + $0x170] sm:$0xff]  ;;  %v646_v36 = vld [vmem:[#allocation2 + $0x2] sm:$0xff] }
  0x56   : > { %v481_v27 = vld [vmem:[#allocation2 + $0x151] sm:$0xff]  ;;  %452 = vst.msk [vmem:[#allocation3 + $0xf8] sm:$0xff] %vm356_vm2, %v420_v26  ;;  %v483_v34 = vld [vmem:[#allocation2 + $0x169] sm:$0xff]  ;;  %v482_v35 = vld [vmem:[#allocation2 + $0x159] sm:$0xff] }
  0x57   : > { %547 = vrot.lane.b32.xlu1 %v4234_v51, %s3970_s11  ;;  %v484_v38 = vld [vmem:[#allocation2 + $0x171] sm:$0xff]  ;;  %v4352_v39 = vld [vmem:[#allocation2 + $0x1a] sm:$0xff]  ;;  %v4362_v49 = vld [vmem:[#allocation2 + $0x22] sm:$0xff] }
  0x58   : > { %553 = vrot.lane.b32.xlu0 %v471_v54, %s3970_s11  ;;  %v647_v45 = vld [vmem:[#allocation2 + $0xa] sm:$0xff]  ;;  %v4357_v46 = vld [vmem:[#allocation2 + $0x32] sm:$0xff]  ;;  %v4404_v20 = vld [vmem:[#allocation2 + $0xc2] sm:$0xff] }
  0x59   : > { %v4364_v54 = vld [vmem:[#allocation2 + $0x4a] sm:$0xff]  ;;  %v4378_v12 = vld [vmem:[#allocation2 + $0x52] sm:$0xff]  ;;  %v664_v22 = vld [vmem:[#allocation2 + $0xda] sm:$0xff] }
  0x5a   : > { %v4388_v16 = vld [vmem:[#allocation2 + $0x92] sm:$0xff]  ;;  %v4396_v18 = vld [vmem:[#allocation2 + $0xaa] sm:$0xff]  ;;  %v665_v26 = vld [vmem:[#allocation2 + $0xe2] sm:$0xff] }
  0x5b   : > { %551 = vrot.lane.b32.xlu1 %v470_v63, %s3970_s11  ;;  %v4370_v63 = vld [vmem:[#allocation2 + $0x3a] sm:$0xff] }
  0x5c   : > { %557 = vrot.lane.b32.xlu0 %v473_v9, %s3970_s11  ;;  %v4372_v9 = vld [vmem:[#allocation2 + $0x62] sm:$0xff] }
  0x5f   : > { %555 = vrot.lane.b32.xlu1 %v472_v13, %s3970_s11  ;;  %v4380_v13 = vld [vmem:[#allocation2 + $0x7a] sm:$0xff] }
  0x60   : > { %561 = vrot.lane.b32.xlu0 %v475_v15, %s3970_s11  ;;  %v4386_v15 = vld [vmem:[#allocation2 + $0x6a] sm:$0xff] }
  0x63   : > { %559 = vrot.lane.b32.xlu1 %v474_v17, %s3970_s11  ;;  %v4394_v17 = vld [vmem:[#allocation2 + $0x82] sm:$0xff] }
  0x64   : > { %565 = vrot.lane.b32.xlu0 %v477_v19, %s3970_s11  ;;  %v4402_v19 = vld [vmem:[#allocation2 + $0x9a] sm:$0xff] }
  0x67   : > { %563 = vrot.lane.b32.xlu1 %v476_v21, %s3970_s11  ;;  %v4410_v21 = vld [vmem:[#allocation2 + $0xb2] sm:$0xff] }
  0x68   : > { %569 = vrot.lane.b32.xlu0 %v479_v23, %s3970_s11  ;;  %v4415_v23 = vld [vmem:[#allocation2 + $0xca] sm:$0xff] }
  0x6b   : > { %567 = vrot.lane.b32.xlu1 %v478_v24, %s3970_s11  ;;  %v666_v24 = vld [vmem:[#allocation2 + $0xf2] sm:$0xff] }
  0x6c   : > { %573 = vrot.lane.b32.xlu0 %v481_v27, %s3970_s11  ;;  %v668_v27 = vld [vmem:[#allocation2 + $0x10a] sm:$0xff] }
  0x6f   : > { %571 = vrot.lane.b32.xlu1 %v480_v33, %s3970_s11  ;;  %v667_v33 = vld [vmem:[#allocation2 + $0xfa] sm:$0xff] }
  0x70   : > { %577 = vrot.lane.b32.xlu0 %v483_v34, %s3970_s11  ;;  %v670_v34 = vld [vmem:[#allocation2 + $0x122] sm:$0xff] }
  0x73   : > { %575 = vrot.lane.b32.xlu1 %v482_v35, %s3970_s11  ;;  %v669_v35 = vld [vmem:[#allocation2 + $0x112] sm:$0xff] }
  0x74   : > { %710 = vrot.lane.b32.xlu0 %v646_v36, %s3971_s12 }
  0x77   : > { %579 = vrot.lane.b32.xlu1 %v484_v38, %s3970_s11  ;;  %v672_v38 = vld [vmem:[#allocation2 + $0x13a] sm:$0xff] }
  0x78   : > { %714 = vrot.lane.b32.xlu0 %v4352_v39, %s3971_s12 }
  0x7b   : > { %712 = vrot.lane.b32.xlu1 %v647_v45, %s3971_s12  ;;  %v671_v45 = vld [vmem:[#allocation2 + $0x12a] sm:$0xff] }
  0x7c   : > { %718 = vrot.lane.b32.xlu0 %v4357_v46, %s3971_s12 }
  0x7f   : > { %716 = vrot.lane.b32.xlu1 %v4362_v49, %s3971_s12 }
  0x80   : > { %722 = vrot.lane.b32.xlu0 %v4364_v54, %s3971_s12 }
  0x83   : > { %720 = vrot.lane.b32.xlu1 %v4370_v63, %s3971_s12 }
  0x84   : > { %726 = vrot.lane.b32.xlu0 %v4372_v9, %s3971_s12 }
  0x87   : > { %724 = vrot.lane.b32.xlu1 %v4378_v12, %s3971_s12 }
  0x88   : > { %730 = vrot.lane.b32.xlu0 %v4380_v13, %s3971_s12 }
  0x8b   : > { %728 = vrot.lane.b32.xlu1 %v4386_v15, %s3971_s12 }
  0x8c   : > { %734 = vrot.lane.b32.xlu0 %v4388_v16, %s3971_s12 }
  0x8f   : > { %732 = vrot.lane.b32.xlu1 %v4394_v17, %s3971_s12 }
  0x90   : > { %738 = vrot.lane.b32.xlu0 %v4396_v18, %s3971_s12 }
  0x93   : > { %736 = vrot.lane.b32.xlu1 %v4402_v19, %s3971_s12 }
  0x94   : > { %742 = vrot.lane.b32.xlu0 %v4404_v20, %s3971_s12 }
  0x97   : > { %740 = vrot.lane.b32.xlu1 %v4410_v21, %s3971_s12 }
  0x98   : > { %746 = vrot.lane.b32.xlu0 %v664_v22, %s3971_s12 }
  0x9b   : > { %744 = vrot.lane.b32.xlu1 %v4415_v23, %s3971_s12 }
  0x9c   : > { %750 = vrot.lane.b32.xlu0 %v666_v24, %s3971_s12  ;;  %v674_v24 = vld [vmem:[#allocation2 + $0x152] sm:$0xff] }
  0x9f   : > { %748 = vrot.lane.b32.xlu1 %v665_v26, %s3971_s12  ;;  %v673_v26 = vld [vmem:[#allocation2 + $0x142] sm:$0xff] }
  0xa0   : > { %754 = vrot.lane.b32.xlu0 %v668_v27, %s3971_s12 }
  0xa2   : > { %v518_v36 = vpop.permute.xlu0 %517 }
  0xa3   : > { %752 = vrot.lane.b32.xlu1 %v667_v33, %s3971_s12  ;;  %614 = vst.msk [vmem:[#allocation3] sm:$0xff] %vm613_vm3, %v518_v36  ;;  %v676_v33 = vld [vmem:[#allocation2 + $0x16a] sm:$0xff] }
  0xa4   : > { %758 = vrot.lane.b32.xlu0 %v670_v34, %s3971_s12 }
  0xa6   : > { %v520_v22 = vpop.permute.xlu0 %519 }
  0xa7   : > { %756 = vrot.lane.b32.xlu1 %v669_v35, %s3971_s12  ;;  %615 = vst.msk [vmem:[#allocation3 + $0x8] sm:$0xff] %vm613_vm3, %v520_v22  ;;  %v675_v35 = vld [vmem:[#allocation2 + $0x15a] sm:$0xff] }
  0xa8   : > { %762 = vrot.lane.b32.xlu0 %v672_v38, %s3971_s12 }
  0xab   : > { %760 = vrot.lane.b32.xlu1 %v671_v45, %s3971_s12  ;;  %v677_v45 = vld [vmem:[#allocation2 + $0x172] sm:$0xff] }
  0xac   : > { %766 = vrot.lane.b32.xlu0 %v674_v24, %s3971_s12 }
  0xad   : > { %v522_v27 = vpop.permute.xlu1 %521 }
  0xae   : > { %616 = vst.msk [vmem:[#allocation3 + $0x10] sm:$0xff] %vm613_vm3, %v522_v27  ;;  %v526_v34 = vpop.permute.xlu0 %525 }
  0xaf   : > { %618 = vst.msk [vmem:[#allocation3 + $0x20] sm:$0xff] %vm613_vm3, %v526_v34  ;;  %764 = vrot.lane.b32.xlu1 %v673_v26, %s3971_s12 }
  0xb0   : > { %770 = vrot.lane.b32.xlu0 %v676_v33, %s3971_s12 }
  0xb1   : > { %v524_v36 = vpop.permute.xlu1 %523 }
  0xb2   : > { %617 = vst.msk [vmem:[#allocation3 + $0x18] sm:$0xff] %vm613_vm3, %v524_v36  ;;  %v530_v38 = vpop.permute.xlu0 %529 }
  0xb3   : > { %620 = vst.msk [vmem:[#allocation3 + $0x30] sm:$0xff] %vm613_vm3, %v530_v38  ;;  %768 = vrot.lane.b32.xlu1 %v675_v35, %s3971_s12 }
  0xb4   : > { %903 = vrot.lane.b32.xlu0 %v4228_v48, %s3972_s13 }
  0xb5   : > { %v528_v22 = vpop.permute.xlu1 %527 }
  0xb6   : > { %619 = vst.msk [vmem:[#allocation3 + $0x28] sm:$0xff] %vm613_vm3, %v528_v22  ;;  %v534_v24 = vpop.permute.xlu0 %533 }
  0xb7   : > { %622 = vst.msk [vmem:[#allocation3 + $0x40] sm:$0xff] %vm613_vm3, %v534_v24  ;;  %772 = vrot.lane.b32.xlu1 %v677_v45, %s3971_s12  ;;  %s3977_s12 = smov 32  }
  0xb8   : > { %907 = vrot.lane.b32.xlu0 %v4232_v50, %s3972_s13 }
  0xb9   : > { %v532_v26 = vpop.permute.xlu1 %531 }
  0xba   : > { %621 = vst.msk [vmem:[#allocation3 + $0x38] sm:$0xff] %vm613_vm3, %v532_v26  ;;  %v538_v27 = vpop.permute.xlu0 %537 }
  0xbb   : > { %624 = vst.msk [vmem:[#allocation3 + $0x50] sm:$0xff] %vm613_vm3, %v538_v27  ;;  %905 = vrot.lane.b32.xlu1 %v4238_v52, %s3972_s13  ;;  %v2033_v27 = vld [vmem:[%s5869_s1 + $0x18] sm:$0xff] }
  0xbc   : > { %911 = vrot.lane.b32.xlu0 %v4240_v53, %s3972_s13 }
  0xbd   : > { %v536_v48 = vpop.permute.xlu1 %535 }
  0xbe   : > { %623 = vst.msk [vmem:[#allocation3 + $0x48] sm:$0xff] %vm613_vm3, %v536_v48  ;;  %v542_v33 = vpop.permute.xlu0 %541 }
  0xbf   : > { %626 = vst.msk [vmem:[#allocation3 + $0x60] sm:$0xff] %vm613_vm3, %v542_v33  ;;  %909 = vrot.lane.b32.xlu1 %v4248_v55, %s3972_s13 }
  0xc0   : > { %915 = vrot.lane.b32.xlu0 %v4250_v56, %s3972_s13 }
  0xc1   : > { %v540_v34 = vpop.permute.xlu1 %539 }
  0xc2   : > { %625 = vst.msk [vmem:[#allocation3 + $0x58] sm:$0xff] %vm613_vm3, %v540_v34  ;;  %v546_v35 = vpop.permute.xlu0 %545 }
  0xc3   : > { %628 = vst.msk [vmem:[#allocation3 + $0x70] sm:$0xff] %vm613_vm3, %v546_v35  ;;  %913 = vrot.lane.b32.xlu1 %v4257_v57, %s3972_s13  ;;  %v2034_v35 = vld [vmem:[%s5869_s1 + $0x20] sm:$0xf] }
  0xc4   : > { %1096 = vrot.lane.b32.xlu0 %v4157_v25, %s3973_s14 }
  0xc5   : > { %v544_v52 = vpop.permute.xlu1 %543 }
  0xc6   : > { %627 = vst.msk [vmem:[#allocation3 + $0x68] sm:$0xff] %vm613_vm3, %v544_v52  ;;  %v550_v36 = vpop.permute.xlu0 %549 }
  0xc7   : > { %630 = vst.msk [vmem:[#allocation3 + $0x80] sm:$0xff] %vm613_vm3, %v550_v36  ;;  %917 = vrot.lane.b32.xlu1 %v4261_v59, %s3972_s13 }
  0xc8   : > { %1289 = vrot.lane.b32.xlu0 %v4352_v39, %s3974_s15  ;;  %v2030_v39 = vld [vmem:[%s5869_s1] sm:$0xff] }
  0xc9   : > { %v548_v38 = vpop.permute.xlu1 %547 }
  0xca   : > { %629 = vst.msk [vmem:[#allocation3 + $0x78] sm:$0xff] %vm613_vm3, %v548_v38  ;;  %v554_v45 = vpop.permute.xlu0 %553 }
  0xcb   : > { %632 = vst.msk [vmem:[#allocation3 + $0x90] sm:$0xff] %vm613_vm3, %v554_v45  ;;  %1098 = vrot.lane.b32.xlu1 %v4172_v29, %s3973_s14  ;;  %v2031_v29 = vld [vmem:[%s5869_s1 + $0x8] sm:$0xff] }
  0xcc   : > { %1483 = vrot.lane.b32.xlu0 %v4232_v50, %s3975_s16  ;;  %v3863_v50 = vpack.c.bf16 %v2031_v29, %v2030_v39 }
  0xcd   : > { %v552_v25 = vpop.permute.xlu1 %551 }
  0xce   : > { %631 = vst.msk [vmem:[#allocation3 + $0x88] sm:$0xff] %vm613_vm3, %v552_v25  ;;  %v558_v22 = vpop.permute.xlu0 %557  ;;  %3864 = vmatprep.subr.bf16.mxu0 %v3863_v50  ;;  %3871 = vmatprep.subr.bf16.mxu1 %v3863_v50 }
  0xcf   : > { %634 = vst.msk [vmem:[#allocation3 + $0xa0] sm:$0xff] %vm613_vm3, %v558_v22  ;;  %1291 = vrot.lane.b32.xlu1 %v4362_v49, %s3974_s15  ;;  %3866 = vmatpush3.bf16.msra.mxu0 %v3863_v50  ;;  %v2032_v49 = vld [vmem:[%s5869_s1 + $0x10] sm:$0xff] }
  0xd0   : > { %1676 = vrot.lane.b32.xlu0 %v4166_v28, %s3976_s28  ;;  %v3867_v48 = vpack.c.bf16 %v2033_v27, %v2032_v49  ;;  %3874 = vmatpush3.bf16.msra.mxu1 %v3863_v50 }
  0xd1   : > { %v556_v24 = vpop.permute.xlu1 %555 }
  0xd2   : > { %633 = vst.msk [vmem:[#allocation3 + $0x98] sm:$0xff] %vm613_vm3, %v556_v24  ;;  %v562_v26 = vpop.permute.xlu0 %561  ;;  %3868 = vmatprep.subr.bf16.mxu0 %v3867_v48  ;;  %3872 = vmatprep.subr.bf16.mxu1 %v3867_v48 }
  0xd3   : > { %636 = vst.msk [vmem:[#allocation3 + $0xb0] sm:$0xff] %vm613_vm3, %v562_v26  ;;  %1485 = vrot.lane.b32.xlu1 %v4248_v55, %s3975_s16  ;;  %3870 = vmatpush3.bf16.msra.mxu0 %v3867_v48 }
  0xd4   : > { %1678 = vrot.lane.b32.xlu0 %v4180_v31, %s3976_s28  ;;  %3875 = vmatpush3.bf16.msra.mxu1 %v3867_v48 }
  0xd5   : > { %v560_v33 = vpop.permute.xlu1 %559  ;;  %3813 = vmatprep.subr.msk.mxu0 %vm2139_vm4, %v2034_v35  ;;  %3873 = vmatprep.subr.msk.mxu1 %vm2139_vm4, %v2034_v35 }
  0xd6   : > { %635 = vst.msk [vmem:[#allocation3 + $0xa8] sm:$0xff] %vm613_vm3, %v560_v33  ;;  %v566_v34 = vpop.permute.xlu0 %565 }
  0xd7   : > { %638 = vst.msk [vmem:[#allocation3 + $0xc0] sm:$0xff] %vm613_vm3, %v566_v34  ;;  %1100 = vrot.lane.b32.xlu1 %v4166_v28, %s3973_s14  ;;  %3814 = vmatpush3.msk.msra.mxu0 %vm2139_vm4, %v2034_v35 }
  0xd8   : > { %1102 = vrot.lane.b32.xlu0 %v4180_v31, %s3973_s14  ;;  %3876 = vmatpush3.msk.msra.mxu1 %vm2139_vm4, %v2034_v35 }
  0xd9   : > { %v564_v55 = vpop.permute.xlu1 %563 }
  0xda   : > { %637 = vst.msk [vmem:[#allocation3 + $0xb8] sm:$0xff] %vm613_vm3, %v564_v55  ;;  %v570_v52 = vpop.permute.xlu0 %569 }
  0xdb   : > { %640 = vst.msk [vmem:[#allocation3 + $0xd0] sm:$0xff] %vm613_vm3, %v570_v52  ;;  %1869 = vrot.lane.b32.xlu1 %v4357_v46, %s3977_s12 }
  0xdc   : > { %1871 = vrot.lane.b32.xlu0 %v4370_v63, %s3977_s12 }
  0xdd   : > { %v568_v28 = vpop.permute.xlu1 %567 }
  0xde   : > { %639 = vst.msk [vmem:[#allocation3 + $0xc8] sm:$0xff] %vm613_vm3, %v568_v28  ;;  %v574_v31 = vpop.permute.xlu0 %573 }
  0xdf   : > { %642 = vst.msk [vmem:[#allocation3 + $0xe0] sm:$0xff] %vm613_vm3, %v574_v31  ;;  %1293 = vrot.lane.b32.xlu1 %v4357_v46, %s3974_s15 }
  0xe0   : > { %1487 = vrot.lane.b32.xlu0 %v4240_v53, %s3975_s16 }
  0xe1   : > { %v572_v36 = vpop.permute.xlu1 %571 }
  0xe2   : > { %641 = vst.msk [vmem:[#allocation3 + $0xd8] sm:$0xff] %vm613_vm3, %v572_v36  ;;  %v578_v38 = vpop.permute.xlu0 %577 }
  0xe3   : > { %644 = vst.msk [vmem:[#allocation3 + $0xf0] sm:$0xff] %vm613_vm3, %v578_v38  ;;  %1295 = vrot.lane.b32.xlu1 %v4370_v63, %s3974_s15 }
  0xe4   : > { %1680 = vrot.lane.b32.xlu0 %v4174_v30, %s3976_s28 }
  0xe5   : > { %v576_v45 = vpop.permute.xlu1 %575 }
  0xe6   : > { %643 = vst.msk [vmem:[#allocation3 + $0xe8] sm:$0xff] %vm613_vm3, %v576_v45  ;;  %v711_v46 = vpop.permute.xlu0 %710 }
  0xe7   : > { %807 = vst.msk [vmem:[#allocation3] sm:$0xff] %vm806_vm5, %v711_v46  ;;  %1489 = vrot.lane.b32.xlu1 %v4257_v57, %s3975_s16 }
  0xe8   : > { %1682 = vrot.lane.b32.xlu0 %v4193_v37, %s3976_s28 }
  0xe9   : > { %v580_v53 = vpop.permute.xlu1 %579 }
  0xea   : > { %645 = vst.msk [vmem:[#allocation3 + $0xf8] sm:$0xff] %vm613_vm3, %v580_v53  ;;  %v715_v63 = vpop.permute.xlu0 %714  ;;  %v1044_v53 = vld [vmem:[#allocation2 + $0xa9] sm:$0xff] }
  0xeb   : > { %809 = vst.msk [vmem:[#allocation3 + $0x10] sm:$0xff] %vm806_vm5, %v715_v63  ;;  %1104 = vrot.lane.b32.xlu1 %v4174_v30, %s3973_s14 }
  0xec   : > { %1106 = vrot.lane.b32.xlu0 %v4193_v37, %s3973_s14 }
  0xed   : > { %v713_v25 = vpop.permute.xlu1 %712 }
  0xee   : > { %808 = vst.msk [vmem:[#allocation3 + $0x8] sm:$0xff] %vm806_vm5, %v713_v25  ;;  %v719_v22 = vpop.permute.xlu0 %718 }
  0xef   : > { %811 = vst.msk [vmem:[#allocation3 + $0x20] sm:$0xff] %vm806_vm5, %v719_v22  ;;  %1873 = vrot.lane.b32.xlu1 %v4364_v54, %s3977_s12 }
  0xf0   : > { %1875 = vrot.lane.b32.xlu0 %v4378_v12, %s3977_s12 }
  0xf1   : > { %v717_v57 = vpop.permute.xlu1 %716 }
  0xf2   : > { %810 = vst.msk [vmem:[#allocation3 + $0x18] sm:$0xff] %vm806_vm5, %v717_v57  ;;  %v723_v39 = vpop.permute.xlu0 %722 }
  0xf3   : > { %813 = vst.msk [vmem:[#allocation3 + $0x30] sm:$0xff] %vm806_vm5, %v723_v39  ;;  %1297 = vrot.lane.b32.xlu1 %v4364_v54, %s3974_s15 }
  0xf4   : > { %1491 = vrot.lane.b32.xlu0 %v4250_v56, %s3975_s16 }
  0xf5   : > { %v721_v30 = vpop.permute.xlu1 %720 }
  0xf6   : > { %812 = vst.msk [vmem:[#allocation3 + $0x28] sm:$0xff] %vm806_vm5, %v721_v30  ;;  %v727_v37 = vpop.permute.xlu0 %726 }
  0xf7   : > { %815 = vst.msk [vmem:[#allocation3 + $0x40] sm:$0xff] %vm806_vm5, %v727_v37  ;;  %1299 = vrot.lane.b32.xlu1 %v4378_v12, %s3974_s15 }
  0xf8   : > { %1684 = vrot.lane.b32.xlu0 %v4182_v32, %s3976_s28 }
  0xf9   : > { %v725_v29 = vpop.permute.xlu1 %724 }
  0xfa   : > { %814 = vst.msk [vmem:[#allocation3 + $0x38] sm:$0xff] %vm806_vm5, %v725_v29  ;;  %v731_v50 = vpop.permute.xlu0 %730 }
  0xfb   : > { %817 = vst.msk [vmem:[#allocation3 + $0x50] sm:$0xff] %vm806_vm5, %v731_v50  ;;  %1493 = vrot.lane.b32.xlu1 %v4261_v59, %s3975_s16  ;;  %v1625_v50 = vld [vmem:[#allocation2 + $0xc9] sm:$0xff] }
  0xfc   : > { %1686 = vrot.lane.b32.xlu0 %v4208_v41, %s3976_s28 }
  0xfd   : > { %v729_v56 = vpop.permute.xlu1 %728 }
  0xfe   : > { %816 = vst.msk [vmem:[#allocation3 + $0x48] sm:$0xff] %vm806_vm5, %v729_v56  ;;  %v735_v54 = vpop.permute.xlu0 %734 }
  0xff   : > { %819 = vst.msk [vmem:[#allocation3 + $0x60] sm:$0xff] %vm806_vm5, %v735_v54  ;;  %1108 = vrot.lane.b32.xlu1 %v4182_v32, %s3973_s14 }
 0x100   : > { %1110 = vrot.lane.b32.xlu0 %v4208_v41, %s3973_s14 }
 0x101   : > { %v733_v12 = vpop.permute.xlu1 %732 }
 0x102   : > { %818 = vst.msk [vmem:[#allocation3 + $0x58] sm:$0xff] %vm806_vm5, %v733_v12  ;;  %v739_v24 = vpop.permute.xlu0 %738 }
 0x103   : > { %821 = vst.msk [vmem:[#allocation3 + $0x70] sm:$0xff] %vm806_vm5, %v739_v24  ;;  %1877 = vrot.lane.b32.xlu1 %v4372_v9, %s3977_s12 }
 0x104   : > { %1879 = vrot.lane.b32.xlu0 %v4386_v15, %s3977_s12 }
 0x105   : > { %v737_v59 = vpop.permute.xlu1 %736 }
 0x106   : > { %820 = vst.msk [vmem:[#allocation3 + $0x68] sm:$0xff] %vm806_vm5, %v737_v59  ;;  %v743_v26 = vpop.permute.xlu0 %742 }
 0x107   : > { %823 = vst.msk [vmem:[#allocation3 + $0x80] sm:$0xff] %vm806_vm5, %v743_v26  ;;  %1301 = vrot.lane.b32.xlu1 %v4372_v9, %s3974_s15 }
 0x108   : > { %1495 = vrot.lane.b32.xlu0 %v4259_v58, %s3975_s16 }
 0x109   : > { %v741_v32 = vpop.permute.xlu1 %740 }
 0x10a   : > { %822 = vst.msk [vmem:[#allocation3 + $0x78] sm:$0xff] %vm806_vm5, %v741_v32  ;;  %v747_v41 = vpop.permute.xlu0 %746 }
 0x10b   : > { %825 = vst.msk [vmem:[#allocation3 + $0x90] sm:$0xff] %vm806_vm5, %v747_v41  ;;  %1303 = vrot.lane.b32.xlu1 %v4386_v15, %s3974_s15 }
 0x10c   : > { %1497 = vrot.lane.b32.xlu0 %v4271_v61, %s3975_s16 }
 0x10d   : > { %v745_v49 = vpop.permute.xlu1 %744 }
 0x10e   : > { %824 = vst.msk [vmem:[#allocation3 + $0x88] sm:$0xff] %vm806_vm5, %v745_v49  ;;  %v751_v27 = vpop.permute.xlu0 %750 }
 0x10f   : > { %827 = vst.msk [vmem:[#allocation3 + $0xa0] sm:$0xff] %vm806_vm5, %v751_v27  ;;  %919 = vrot.lane.b32.xlu1 %v4259_v58, %s3972_s13 }
 0x110   : > { %921 = vrot.lane.b32.xlu0 %v4271_v61, %s3972_s13 }
 0x111   : > { %v749_v9 = vpop.permute.xlu1 %748 }
 0x112   : > { %826 = vst.msk [vmem:[#allocation3 + $0x98] sm:$0xff] %vm806_vm5, %v749_v9  ;;  %v755_v48 = vpop.permute.xlu0 %754  ;;  %v1626_v9 = vld [vmem:[#allocation2 + $0xd9] sm:$0xff] }
 0x113   : > { %829 = vst.msk [vmem:[#allocation3 + $0xb0] sm:$0xff] %vm806_vm5, %v755_v48  ;;  %1688 = vrot.lane.b32.xlu1 %v4200_v40, %s3976_s28 }
 0x114   : > { %1690 = vrot.lane.b32.xlu0 %v4216_v43, %s3976_s28 }
 0x115   : > { %v753_v15 = vpop.permute.xlu1 %752 }
 0x116   : > { %828 = vst.msk [vmem:[#allocation3 + $0xa8] sm:$0xff] %vm806_vm5, %v753_v15  ;;  %v759_v33 = vpop.permute.xlu0 %758 }
 0x117   : > { %831 = vst.msk [vmem:[#allocation3 + $0xc0] sm:$0xff] %vm806_vm5, %v759_v33  ;;  %1112 = vrot.lane.b32.xlu1 %v4200_v40, %s3973_s14 }
 0x118   : > { %1114 = vrot.lane.b32.xlu0 %v4216_v43, %s3973_s14 }
 0x119   : > { %v757_v58 = vpop.permute.xlu1 %756 }
 0x11a   : > { %830 = vst.msk [vmem:[#allocation3 + $0xb8] sm:$0xff] %vm806_vm5, %v757_v58  ;;  %v763_v61 = vpop.permute.xlu0 %762 }
 0x11b   : > { %833 = vst.msk [vmem:[#allocation3 + $0xd0] sm:$0xff] %vm806_vm5, %v763_v61  ;;  %1881 = vrot.lane.b32.xlu1 %v4380_v13, %s3977_s12  ;;  %v1820_v61 = vld [vmem:[#allocation2 + $0xe2] sm:$0xff] }
 0x11c   : > { %1883 = vrot.lane.b32.xlu0 %v4394_v17, %s3977_s12 }
 0x11d   : > { %v761_v34 = vpop.permute.xlu1 %760 }
 0x11e   : > { %832 = vst.msk [vmem:[#allocation3 + $0xc8] sm:$0xff] %vm806_vm5, %v761_v34  ;;  %v767_v55 = vpop.permute.xlu0 %766 }
 0x11f   : > { %835 = vst.msk [vmem:[#allocation3 + $0xe0] sm:$0xff] %vm806_vm5, %v767_v55  ;;  %1305 = vrot.lane.b32.xlu1 %v4380_v13, %s3974_s15 }
 0x120   : > { %1499 = vrot.lane.b32.xlu0 %v4269_v60, %s3975_s16 }
 0x121   : > { %v765_v40 = vpop.permute.xlu1 %764 }
 0x122   : > { %834 = vst.msk [vmem:[#allocation3 + $0xd8] sm:$0xff] %vm806_vm5, %v765_v40  ;;  %v771_v43 = vpop.permute.xlu0 %770 }
 0x123   : > { %837 = vst.msk [vmem:[#allocation3 + $0xf0] sm:$0xff] %vm806_vm5, %v771_v43  ;;  %1307 = vrot.lane.b32.xlu1 %v4394_v17, %s3974_s15 }
 0x124   : > { %1501 = vrot.lane.b32.xlu0 %v4281_v0, %s3975_s16 }
 0x125   : > { %v769_v35 = vpop.permute.xlu1 %768 }
 0x126   : > { %836 = vst.msk [vmem:[#allocation3 + $0xe8] sm:$0xff] %vm806_vm5, %v769_v35  ;;  %v904_v13 = vpop.permute.xlu0 %903 }
 0x127   : > { %1000 = vst.msk [vmem:[#allocation3] sm:$0xff] %vm999_vm6, %v904_v13  ;;  %923 = vrot.lane.b32.xlu1 %v4269_v60, %s3972_s13 }
 0x128   : > { %925 = vrot.lane.b32.xlu0 %v4281_v0, %s3972_s13 }
 0x129   : > { %v773_v52 = vpop.permute.xlu1 %772 }
 0x12a   : > { %838 = vst.msk [vmem:[#allocation3 + $0xf8] sm:$0xff] %vm806_vm5, %v773_v52  ;;  %v908_v17 = vpop.permute.xlu0 %907 }
 0x12b   : > { %1002 = vst.msk [vmem:[#allocation3 + $0x10] sm:$0xff] %vm999_vm6, %v908_v17  ;;  %1692 = vrot.lane.b32.xlu1 %v4210_v42, %s3976_s28 }
 0x12c   : > { %1694 = vrot.lane.b32.xlu0 %v4225_v47, %s3976_s28 }
 0x12d   : > { %v906_v28 = vpop.permute.xlu1 %905 }
 0x12e   : > { %1001 = vst.msk [vmem:[#allocation3 + $0x8] sm:$0xff] %vm999_vm6, %v906_v28  ;;  %v912_v31 = vpop.permute.xlu0 %911 }
 0x12f   : > { %1004 = vst.msk [vmem:[#allocation3 + $0x20] sm:$0xff] %vm999_vm6, %v912_v31  ;;  %1116 = vrot.lane.b32.xlu1 %v4210_v42, %s3973_s14  ;;  %v353_v31 = vld [vmem:[%s4057_s10 + $0xf0] sm:$0xff] }
 0x130   : > { %1118 = vrot.lane.b32.xlu0 %v4225_v47, %s3973_s14  ;;  %387 = vst.msk [vmem:[#allocation2 + $0x181] sm:$0xff] %vm356_vm2, %v353_v31  ;;  %v1827_v31 = vld [vmem:[#allocation2 + $0x13a] sm:$0xff] }
 0x131   : > { %v910_v60 = vpop.permute.xlu1 %909 }
 0x132   : > { %1003 = vst.msk [vmem:[#allocation3 + $0x18] sm:$0xff] %vm999_vm6, %v910_v60  ;;  %v916_v0 = vpop.permute.xlu0 %915  ;;  %v1628_v60 = vld [vmem:[#allocation2 + $0xf1] sm:$0xff] }
 0x133   : > { %1006 = vst.msk [vmem:[#allocation3 + $0x30] sm:$0xff] %vm999_vm6, %v916_v0  ;;  %1885 = vrot.lane.b32.xlu1 %v4388_v16, %s3977_s12 }
 0x134   : > { %1887 = vrot.lane.b32.xlu0 %v4402_v19, %s3977_s12 }
 0x135   : > { %v914_v36 = vpop.permute.xlu1 %913 }
 0x136   : > { %1005 = vst.msk [vmem:[#allocation3 + $0x28] sm:$0xff] %vm999_vm6, %v914_v36  ;;  %v1097_v42 = vpop.permute.xlu0 %1096  ;;  %v1629_v36 = vld [vmem:[#allocation2 + $0xf9] sm:$0xff] }
 0x137   : > { %1193 = vst.msk [vmem:[#allocation3] sm:$0xff] %vm1192_vm7, %v1097_v42  ;;  %1309 = vrot.lane.b32.xlu1 %v4388_v16, %s3974_s15 }
 0x138   : > { %1503 = vrot.lane.b32.xlu0 %v4273_v62, %s3975_s16 }
 0x139   : > { %v918_v47 = vpop.permute.xlu1 %917 }
 0x13a   : > { %1007 = vst.msk [vmem:[#allocation3 + $0x38] sm:$0xff] %vm999_vm6, %v918_v47  ;;  %v1290_v38 = vpop.permute.xlu0 %1289  ;;  %v354_v47 = vld [vmem:[%s4057_s10 + $0xf8] sm:$0xff] }
 0x13b   : > { %1386 = vst.msk [vmem:[#allocation3] sm:$0xff] %vm1385_vm8, %v1290_v38  ;;  %1311 = vrot.lane.b32.xlu1 %v4402_v19, %s3974_s15  ;;  %v1821_v38 = vld [vmem:[#allocation2 + $0xf2] sm:$0xff] }
 0x13c   : > { %1505 = vrot.lane.b32.xlu0 %v4285_v2, %s3975_s16  ;;  %388 = vst.msk [vmem:[#allocation2 + $0x189] sm:$0xff] %vm356_vm2, %v354_v47 }
 0x13d   : > { %v1099_v45 = vpop.permute.xlu1 %1098 }
 0x13e   : > { %1194 = vst.msk [vmem:[#allocation3 + $0x8] sm:$0xff] %vm1192_vm7, %v1099_v45  ;;  %v1484_v16 = vpop.permute.xlu0 %1483 }
 0x13f   : > { %1580 = vst.msk [vmem:[#allocation3] sm:$0xff] %vm1579_vm9, %v1484_v16  ;;  %927 = vrot.lane.b32.xlu1 %v4273_v62, %s3972_s13  ;;  %v1822_v16 = vld [vmem:[#allocation2 + $0xfa] sm:$0xff] }
 0x140   : > { %929 = vrot.lane.b32.xlu0 %v4285_v2, %s3972_s13 }
 0x141   : > { %v1292_v46 = vpop.permute.xlu1 %1291 }
 0x142   : > { %1387 = vst.msk [vmem:[#allocation3 + $0x8] sm:$0xff] %vm1385_vm8, %v1292_v46  ;;  %v1677_v19 = vpop.permute.xlu0 %1676 }
 0x143   : > { %1773 = vst.msk [vmem:[#allocation3] sm:$0xff] %vm1772_vm10, %v1677_v19  ;;  %1696 = vrot.lane.b32.xlu1 %v4218_v44, %s3976_s28 }
 0x144   : > { %1698 = vrot.lane.b32.xlu0 %v4234_v51, %s3976_s28 }
 0x145   : > { %v1486_v63 = vpop.permute.xlu1 %1485 }
 0x146   : > { %1581 = vst.msk [vmem:[#allocation3 + $0x8] sm:$0xff] %vm1579_vm9, %v1486_v63  ;;  %v1679_v62 = vpop.permute.xlu0 %1678 }
 0x147   : > { %1774 = vst.msk [vmem:[#allocation3 + $0x8] sm:$0xff] %vm1772_vm10, %v1679_v62  ;;  %1120 = vrot.lane.b32.xlu1 %v1044_v53, %s3973_s14 }
 0x148   : > { %1122 = vrot.lane.b32.xlu0 %v4234_v51, %s3973_s14 }
 0x149   : > { %v1101_v2 = vpop.permute.xlu1 %1100 }
 0x14a   : > { %1195 = vst.msk [vmem:[#allocation3 + $0x10] sm:$0xff] %vm1192_vm7, %v1101_v2  ;;  %v1103_v25 = vpop.permute.xlu0 %1102 }
 0x14b   : > { %1196 = vst.msk [vmem:[#allocation3 + $0x18] sm:$0xff] %vm1192_vm7, %v1103_v25  ;;  %1889 = vrot.lane.b32.xlu1 %v4396_v18, %s3977_s12 }
 0x14c   : > { %1891 = vrot.lane.b32.xlu0 %v4410_v21, %s3977_s12 }
 0x14d   : > { %v1870_v44 = vpop.permute.xlu1 %1869 }
 0x14e   : > { %1966 = vst.msk [vmem:[#allocation3] sm:$0xff] %vm1965_vm11, %v1870_v44  ;;  %v1872_v22 = vpop.permute.xlu0 %1871 }
 0x14f   : > { %1967 = vst.msk [vmem:[#allocation3 + $0x8] sm:$0xff] %vm1965_vm11, %v1872_v22  ;;  %1313 = vrot.lane.b32.xlu1 %v4396_v18, %s3974_s15 }
 0x150   : > { %1507 = vrot.lane.b32.xlu0 %v4283_v1, %s3975_s16 }
 0x151   : > { %v1294_v51 = vpop.permute.xlu1 %1293 }
 0x152   : > { %1388 = vst.msk [vmem:[#allocation3 + $0x10] sm:$0xff] %vm1385_vm8, %v1294_v51  ;;  %v1488_v57 = vpop.permute.xlu0 %1487  ;;  %v1630_v51 = vld [vmem:[#allocation2 + $0x109] sm:$0xff] }
 0x153   : > { %1582 = vst.msk [vmem:[#allocation3 + $0x10] sm:$0xff] %vm1579_vm9, %v1488_v57  ;;  %1315 = vrot.lane.b32.xlu1 %v4410_v21, %s3974_s15  ;;  %v1624_v21 = vld [vmem:[#allocation2 + $0xc1] sm:$0xff] }
 0x154   : > { %1509 = vrot.lane.b32.xlu0 %v4297_v4, %s3975_s16 }
 0x155   : > { %v1296_v39 = vpop.permute.xlu1 %1295  ;;  %v1998_v30 = vld [vmem:[#allocation3] sm:$0xff] }
 0x156   : > { %1389 = vst.msk [vmem:[#allocation3 + $0x18] sm:$0xff] %vm1385_vm8, %v1296_v39  ;;  %v1681_v18 = vpop.permute.xlu0 %1680  ;;  %3815 = vmatprep.mubr.msk.f32.mxu0 %vm2042_vm12, %v1998_v30  ;;  %v1999_v37 = vld [vmem:[#allocation3 + $0x8] sm:$0xff] }
 0x157   : > { %1775 = vst.msk [vmem:[#allocation3 + $0x10] sm:$0xff] %vm1772_vm10, %v1681_v18  ;;  %931 = vrot.lane.b32.xlu1 %v4283_v1, %s3972_s13  ;;  %3816 = vmatmul.mubr.msk.f32.vlgmr.msra.gmra.mrb[0].mxu0 %vm2042_vm12, %v1999_v37  ;;  %v1631_v39 = vld [vmem:[#allocation2 + $0x111] sm:$0xff] }
 0x158   : > { %933 = vrot.lane.b32.xlu0 %v4297_v4, %s3972_s13 }
 0x159   : > { %v1490_v29 = vpop.permute.xlu1 %1489 }
 0x15a   : > { %1583 = vst.msk [vmem:[#allocation3 + $0x18] sm:$0xff] %vm1579_vm9, %v1490_v29  ;;  %v1683_v56 = vpop.permute.xlu0 %1682 }
 0x15b   : > { %1776 = vst.msk [vmem:[#allocation3 + $0x18] sm:$0xff] %vm1772_vm10, %v1683_v56  ;;  %1700 = vrot.lane.b32.xlu1 %v1624_v21, %s3976_s28 }
 0x15c   : > { %1702 = vrot.lane.b32.xlu0 %v1625_v50, %s3976_s28 }
 0x15d   : > { %v1105_v54 = vpop.permute.xlu1 %1104 }
 0x15e   : > { %1197 = vst.msk [vmem:[#allocation3 + $0x20] sm:$0xff] %vm1192_vm7, %v1105_v54  ;;  %v1107_v1 = vpop.permute.xlu0 %1106 }
 0x15f   : > { %1198 = vst.msk [vmem:[#allocation3 + $0x28] sm:$0xff] %vm1192_vm7, %v1107_v1  ;;  %1124 = vrot.lane.b32.xlu1 %v1624_v21, %s3973_s14  ;;  %v1824_v21 = vld [vmem:[#allocation2 + $0x112] sm:$0xff] }
 0x160   : > { %1126 = vrot.lane.b32.xlu0 %v1625_v50, %s3973_s14 }
 0x161   : > { %v1874_v4 = vpop.permute.xlu1 %1873 }
 0x162   : > { %1968 = vst.msk [vmem:[#allocation3 + $0x10] sm:$0xff] %vm1965_vm11, %v1874_v4  ;;  %v1876_v12 = vpop.permute.xlu0 %1875 }
 0x163   : > { %1969 = vst.msk [vmem:[#allocation3 + $0x18] sm:$0xff] %vm1965_vm11, %v1876_v12  ;;  %1893 = vrot.lane.b32.xlu1 %v4404_v20, %s3977_s12 }
 0x164   : > { %1895 = vrot.lane.b32.xlu0 %v4415_v23, %s3977_s12 }
 0x165   : > { %v1298_v24 = vpop.permute.xlu1 %1297 }
 0x166   : > { %1390 = vst.msk [vmem:[#allocation3 + $0x20] sm:$0xff] %vm1385_vm8, %v1298_v24  ;;  %v1492_v59 = vpop.permute.xlu0 %1491 }
 0x167   : > { %1584 = vst.msk [vmem:[#allocation3 + $0x20] sm:$0xff] %vm1579_vm9, %v1492_v59  ;;  %1317 = vrot.lane.b32.xlu1 %v4404_v20, %s3974_s15 }
 0x168   : > { %1511 = vrot.lane.b32.xlu0 %v4295_v3, %s3975_s16 }
 0x169   : > { %v1300_v26 = vpop.permute.xlu1 %1299  ;;  %v2000_v32 = vld [vmem:[#allocation3 + $0x10] sm:$0xff] }
 0x16a   : > { %1391 = vst.msk [vmem:[#allocation3 + $0x28] sm:$0xff] %vm1385_vm8, %v1300_v26  ;;  %v1685_v41 = vpop.permute.xlu0 %1684  ;;  %3818 = vmatprep.mubr.msk.f32.mxu0 %vm2042_vm12, %v2000_v32  ;;  %v2001_v49 = vld [vmem:[#allocation3 + $0x18] sm:$0xff] }
 0x16b   : > { %1777 = vst.msk [vmem:[#allocation3 + $0x20] sm:$0xff] %vm1772_vm10, %v1685_v41  ;;  %1319 = vrot.lane.b32.xlu1 %v4415_v23, %s3974_s15  ;;  %3819 = vmatmul.mubr.msk.f32.gmra.mrb[2].mxu0 %vm2042_vm12, %v2001_v49  ;;  %v1627_v23 = vld [vmem:[#allocation2 + $0xe1] sm:$0xff]  ;;  %v1633_v41 = vld [vmem:[#allocation2 + $0x129] sm:$0xff] }
 0x16c   : > { %1513 = vrot.lane.b32.xlu0 %v4308_v6, %s3975_s16  ;;  %v1632_v26 = vld [vmem:[#allocation2 + $0x121] sm:$0xff] }
 0x16d   : > { %v1494_v20 = vpop.permute.xlu1 %1493 }
 0x16e   : > { %1585 = vst.msk [vmem:[#allocation3 + $0x28] sm:$0xff] %vm1579_vm9, %v1494_v20  ;;  %v1687_v27 = vpop.permute.xlu0 %1686 }
 0x16f   : > { %1778 = vst.msk [vmem:[#allocation3 + $0x28] sm:$0xff] %vm1772_vm10, %v1687_v27  ;;  %935 = vrot.lane.b32.xlu1 %v4295_v3, %s3972_s13  ;;  %v1819_v3 = vld [vmem:[#allocation2 + $0xda] sm:$0xff] }
 0x170   : > { %937 = vrot.lane.b32.xlu0 %v4308_v6, %s3972_s13 }
 0x171   : > { %v1109_v48 = vpop.permute.xlu1 %1108 }
 0x172   : > { %1199 = vst.msk [vmem:[#allocation3 + $0x30] sm:$0xff] %vm1192_vm7, %v1109_v48  ;;  %v1111_v15 = vpop.permute.xlu0 %1110 }
 0x173   : > { %1200 = vst.msk [vmem:[#allocation3 + $0x38] sm:$0xff] %vm1192_vm7, %v1111_v15  ;;  %1704 = vrot.lane.b32.xlu1 %v1626_v9, %s3976_s28 }
 0x174   : > { %1706 = vrot.lane.b32.xlu0 %v1627_v23, %s3976_s28 }
 0x175   : > { %v1878_v33 = vpop.permute.xlu1 %1877 }
 0x176   : > { %1970 = vst.msk [vmem:[#allocation3 + $0x20] sm:$0xff] %vm1965_vm11, %v1878_v33  ;;  %v1880_v58 = vpop.permute.xlu0 %1879  ;;  %v1441_v33 = vld [vmem:[#allocation2 + $0x138] sm:$0xff] }
 0x177   : > { %1971 = vst.msk [vmem:[#allocation3 + $0x28] sm:$0xff] %vm1965_vm11, %v1880_v58  ;;  %1128 = vrot.lane.b32.xlu1 %v1626_v9, %s3973_s14  ;;  %v1826_v9 = vld [vmem:[#allocation2 + $0x12a] sm:$0xff] }
 0x178   : > { %1130 = vrot.lane.b32.xlu0 %v1627_v23, %s3973_s14 }
 0x179   : > { %v1302_v6 = vpop.permute.xlu1 %1301 }
 0x17a   : > { %1392 = vst.msk [vmem:[#allocation3 + $0x30] sm:$0xff] %vm1385_vm8, %v1302_v6  ;;  %v1496_v34 = vpop.permute.xlu0 %1495 }
 0x17b   : > { %1586 = vst.msk [vmem:[#allocation3 + $0x30] sm:$0xff] %vm1579_vm9, %v1496_v34  ;;  %1897 = vrot.lane.b32.xlu1 %v1819_v3, %s3977_s12 }
 0x17c   : > { %1899 = vrot.lane.b32.xlu0 %v1820_v61, %s3977_s12 }
 0x17d   : > { %v1304_v55 = vpop.permute.xlu1 %1303  ;;  %v2002_v40 = vld [vmem:[#allocation3 + $0x20] sm:$0xff] }
 0x17e   : > { %1393 = vst.msk [vmem:[#allocation3 + $0x38] sm:$0xff] %vm1385_vm8, %v1304_v55  ;;  %v1498_v43 = vpop.permute.xlu0 %1497  ;;  %3821 = vmatprep.mubr.msk.f32.mxu0 %vm2042_vm12, %v2002_v40  ;;  %v2003_v35 = vld [vmem:[#allocation3 + $0x28] sm:$0xff] }
 0x17f   : > { %1587 = vst.msk [vmem:[#allocation3 + $0x38] sm:$0xff] %vm1579_vm9, %v1498_v43  ;;  %1321 = vrot.lane.b32.xlu1 %v1819_v3, %s3974_s15  ;;  %3822 = vmatmul.mubr.msk.f32.gmra.mrb[4].mxu0 %vm2042_vm12, %v2003_v35  ;;  %v1634_v43 = vld [vmem:[#allocation2 + $0x139] sm:$0xff] }
 0x180   : > { %1515 = vrot.lane.b32.xlu0 %v4299_v5, %s3975_s16 }
 0x181   : > { %v920_v13 = vpop.permute.xlu1 %919 }
 0x182   : > { %1008 = vst.msk [vmem:[#allocation3 + $0x40] sm:$0xff] %vm999_vm6, %v920_v13  ;;  %v922_v52 = vpop.permute.xlu0 %921  ;;  %v1635_v13 = vld [vmem:[#allocation2 + $0x141] sm:$0xff] }
 0x183   : > { %1009 = vst.msk [vmem:[#allocation3 + $0x48] sm:$0xff] %vm999_vm6, %v922_v52  ;;  %1323 = vrot.lane.b32.xlu1 %v1820_v61, %s3974_s15  ;;  %v1442_v61 = vld [vmem:[#allocation2 + $0x140] sm:$0xff] }
 0x184   : > { %1517 = vrot.lane.b32.xlu0 %v4312_v8, %s3975_s16 }
 0x185   : > { %v1689_v17 = vpop.permute.xlu1 %1688 }
 0x186   : > { %1779 = vst.msk [vmem:[#allocation3 + $0x30] sm:$0xff] %vm1772_vm10, %v1689_v17  ;;  %v1691_v28 = vpop.permute.xlu0 %1690 }
 0x187   : > { %1780 = vst.msk [vmem:[#allocation3 + $0x38] sm:$0xff] %vm1772_vm10, %v1691_v28  ;;  %939 = vrot.lane.b32.xlu1 %v4299_v5, %s3972_s13 }
 0x188   : > { %941 = vrot.lane.b32.xlu0 %v4312_v8, %s3972_s13 }
 0x189   : > { %v1113_v0 = vpop.permute.xlu1 %1112 }
 0x18a   : > { %1201 = vst.msk [vmem:[#allocation3 + $0x40] sm:$0xff] %vm1192_vm7, %v1113_v0  ;;  %v1115_v42 = vpop.permute.xlu0 %1114  ;;  %v1828_v0 = vld [vmem:[#allocation2 + $0x142] sm:$0xff] }
 0x18b   : > { %1202 = vst.msk [vmem:[#allocation3 + $0x48] sm:$0xff] %vm1192_vm7, %v1115_v42  ;;  %1708 = vrot.lane.b32.xlu1 %v1628_v60, %s3976_s28 }
 0x18c   : > { %1710 = vrot.lane.b32.xlu0 %v1629_v36, %s3976_s28 }
 0x18d   : > { %v1882_v5 = vpop.permute.xlu1 %1881 }
 0x18e   : > { %1972 = vst.msk [vmem:[#allocation3 + $0x30] sm:$0xff] %vm1965_vm11, %v1882_v5  ;;  %v1884_v8 = vpop.permute.xlu0 %1883  ;;  %v1443_v5 = vld [vmem:[#allocation2 + $0x150] sm:$0xff] }
 0x18f   : > { %1973 = vst.msk [vmem:[#allocation3 + $0x38] sm:$0xff] %vm1965_vm11, %v1884_v8  ;;  %1132 = vrot.lane.b32.xlu1 %v1628_v60, %s3973_s14 }
 0x190   : > { %1134 = vrot.lane.b32.xlu0 %v1629_v36, %s3973_s14 }
 0x191   : > { %v1306_v45 = vpop.permute.xlu1 %1305 }
 0x192   : > { %1394 = vst.msk [vmem:[#allocation3 + $0x40] sm:$0xff] %vm1385_vm8, %v1306_v45  ;;  %v1500_v46 = vpop.permute.xlu0 %1499 }
 0x193   : > { %1588 = vst.msk [vmem:[#allocation3 + $0x40] sm:$0xff] %vm1579_vm9, %v1500_v46  ;;  %1901 = vrot.lane.b32.xlu1 %v1821_v38, %s3977_s12 }
 0x194   : > { %1903 = vrot.lane.b32.xlu0 %v1822_v16, %s3977_s12 }
 0x195   : > { %v1308_v19 = vpop.permute.xlu1 %1307  ;;  %v2004_v53 = vld [vmem:[#allocation3 + $0x30] sm:$0xff] }
 0x196   : > { %1395 = vst.msk [vmem:[#allocation3 + $0x48] sm:$0xff] %vm1385_vm8, %v1308_v19  ;;  %v1502_v63 = vpop.permute.xlu0 %1501  ;;  %3824 = vmatprep.mubr.msk.f32.mxu0 %vm2042_vm12, %v2004_v53  ;;  %v2005_v62 = vld [vmem:[#allocation3 + $0x38] sm:$0xff] }
 0x197   : > { %1589 = vst.msk [vmem:[#allocation3 + $0x48] sm:$0xff] %vm1579_vm9, %v1502_v63  ;;  %1325 = vrot.lane.b32.xlu1 %v1821_v38, %s3974_s15  ;;  %3825 = vmatmul.mubr.msk.f32.gmra.mrb[6].mxu0 %vm2042_vm12, %v2005_v62  ;;  %v1636_v63 = vld [vmem:[#allocation2 + $0x151] sm:$0xff] }
 0x198   : > { %1519 = vrot.lane.b32.xlu0 %v4310_v7, %s3975_s16 }
 0x199   : > { %v924_v2 = vpop.permute.xlu1 %923 }
 0x19a   : > { %1010 = vst.msk [vmem:[#allocation3 + $0x50] sm:$0xff] %vm999_vm6, %v924_v2  ;;  %v926_v25 = vpop.permute.xlu0 %925  ;;  %v1637_v2 = vld [vmem:[#allocation2 + $0x159] sm:$0xff] }
 0x19b   : > { %1011 = vst.msk [vmem:[#allocation3 + $0x58] sm:$0xff] %vm999_vm6, %v926_v25  ;;  %1327 = vrot.lane.b32.xlu1 %v1822_v16, %s3974_s15  ;;  %v1444_v16 = vld [vmem:[#allocation2 + $0x158] sm:$0xff] }
 0x19c   : > { %1521 = vrot.lane.b32.xlu0 %v4322_v11, %s3975_s16 }
 0x19d   : > { %v1693_v44 = vpop.permute.xlu1 %1692 }
 0x19e   : > { %1781 = vst.msk [vmem:[#allocation3 + $0x40] sm:$0xff] %vm1772_vm10, %v1693_v44  ;;  %v1695_v22 = vpop.permute.xlu0 %1694 }
 0x19f   : > { %1782 = vst.msk [vmem:[#allocation3 + $0x48] sm:$0xff] %vm1772_vm10, %v1695_v22  ;;  %943 = vrot.lane.b32.xlu1 %v4310_v7, %s3972_s13  ;;  %v1823_v7 = vld [vmem:[#allocation2 + $0x10a] sm:$0xff] }
 0x1a0   : > { %945 = vrot.lane.b32.xlu0 %v4322_v11, %s3972_s13 }
 0x1a1   : > { %v1117_v57 = vpop.permute.xlu1 %1116 }
 0x1a2   : > { %1203 = vst.msk [vmem:[#allocation3 + $0x50] sm:$0xff] %vm1192_vm7, %v1117_v57  ;;  %v1119_v30 = vpop.permute.xlu0 %1118 }
 0x1a3   : > { %1204 = vst.msk [vmem:[#allocation3 + $0x58] sm:$0xff] %vm1192_vm7, %v1119_v30  ;;  %1712 = vrot.lane.b32.xlu1 %v1630_v51, %s3976_s28 }
 0x1a4   : > { %1714 = vrot.lane.b32.xlu0 %v1631_v39, %s3976_s28 }
 0x1a5   : > { %v1886_v18 = vpop.permute.xlu1 %1885 }
 0x1a6   : > { %1974 = vst.msk [vmem:[#allocation3 + $0x40] sm:$0xff] %vm1965_vm11, %v1886_v18  ;;  %v1888_v37 = vpop.permute.xlu0 %1887 }
 0x1a7   : > { %1975 = vst.msk [vmem:[#allocation3 + $0x48] sm:$0xff] %vm1965_vm11, %v1888_v37  ;;  %1136 = vrot.lane.b32.xlu1 %v1630_v51, %s3973_s14  ;;  %v1829_v51 = vld [vmem:[#allocation2 + $0x152] sm:$0xff] }
 0x1a8   : > { %1138 = vrot.lane.b32.xlu0 %v1631_v39, %s3973_s14  ;;  %v1830_v39 = vld [vmem:[#allocation2 + $0x15a] sm:$0xff] }
 0x1a9   : > { %v1310_v11 = vpop.permute.xlu1 %1309 }
 0x1aa   : > { %1396 = vst.msk [vmem:[#allocation3 + $0x50] sm:$0xff] %vm1385_vm8, %v1310_v11  ;;  %v1504_v29 = vpop.permute.xlu0 %1503 }
 0x1ab   : > { %1590 = vst.msk [vmem:[#allocation3 + $0x50] sm:$0xff] %vm1579_vm9, %v1504_v29  ;;  %1905 = vrot.lane.b32.xlu1 %v1823_v7, %s3977_s12 }
 0x1ac   : > { %1907 = vrot.lane.b32.xlu0 %v1824_v21, %s3977_s12 }
 0x1ad   : > { %v1312_v50 = vpop.permute.xlu1 %1311  ;;  %v2006_v56 = vld [vmem:[#allocation3 + $0x40] sm:$0xff] }
 0x1ae   : > { %1397 = vst.msk [vmem:[#allocation3 + $0x58] sm:$0xff] %vm1385_vm8, %v1312_v50  ;;  %v1506_v54 = vpop.permute.xlu0 %1505  ;;  %3827 = vmatprep.mubr.msk.f32.mxu0 %vm2042_vm12, %v2006_v56  ;;  %v2007_v1 = vld [vmem:[#allocation3 + $0x48] sm:$0xff]  ;;  %v1446_v50 = vld [vmem:[#allocation2 + $0x170] sm:$0xff] }
 0x1af   : > { %1591 = vst.msk [vmem:[#allocation3 + $0x58] sm:$0xff] %vm1579_vm9, %v1506_v54  ;;  %1329 = vrot.lane.b32.xlu1 %v1823_v7, %s3974_s15  ;;  %3828 = vmatmul.mubr.msk.f32.gmra.mrb[8].mxu0 %vm2042_vm12, %v2007_v1  ;;  %v1445_v7 = vld [vmem:[#allocation2 + $0x168] sm:$0xff] }
 0x1b0   : > { %1523 = vrot.lane.b32.xlu0 %v4320_v10, %s3975_s16 }
 0x1b1   : > { %v928_v4 = vpop.permute.xlu1 %927 }
 0x1b2   : > { %1012 = vst.msk [vmem:[#allocation3 + $0x60] sm:$0xff] %vm999_vm6, %v928_v4  ;;  %v930_v12 = vpop.permute.xlu0 %929  ;;  %v1638_v4 = vld [vmem:[#allocation2 + $0x169] sm:$0xff] }
 0x1b3   : > { %1013 = vst.msk [vmem:[#allocation3 + $0x68] sm:$0xff] %vm999_vm6, %v930_v12  ;;  %1331 = vrot.lane.b32.xlu1 %v1824_v21, %s3974_s15 }
 0x1b4   : > { %1525 = vrot.lane.b32.xlu0 %v4331_v14, %s3975_s16 }
 0x1b5   : > { %v1697_v24 = vpop.permute.xlu1 %1696 }
 0x1b6   : > { %1783 = vst.msk [vmem:[#allocation3 + $0x50] sm:$0xff] %vm1772_vm10, %v1697_v24  ;;  %v1699_v59 = vpop.permute.xlu0 %1698  ;;  %v1639_v24 = vld [vmem:[#allocation2 + $0x171] sm:$0xff] }
 0x1b7   : > { %1784 = vst.msk [vmem:[#allocation3 + $0x58] sm:$0xff] %vm1772_vm10, %v1699_v59  ;;  %947 = vrot.lane.b32.xlu1 %v4320_v10, %s3972_s13  ;;  %v1825_v10 = vld [vmem:[#allocation2 + $0x122] sm:$0xff] }
 0x1b8   : > { %949 = vrot.lane.b32.xlu0 %v4331_v14, %s3972_s13 }
 0x1b9   : > { %v1121_v32 = vpop.permute.xlu1 %1120 }
 0x1ba   : > { %1205 = vst.msk [vmem:[#allocation3 + $0x60] sm:$0xff] %vm1192_vm7, %v1121_v32  ;;  %v1123_v49 = vpop.permute.xlu0 %1122 }
 0x1bb   : > { %1206 = vst.msk [vmem:[#allocation3 + $0x68] sm:$0xff] %vm1192_vm7, %v1123_v49  ;;  %1716 = vrot.lane.b32.xlu1 %v1632_v26, %s3976_s28 }
 0x1bc   : > { %1718 = vrot.lane.b32.xlu0 %v1633_v41, %s3976_s28 }
 0x1bd   : > { %v1890_v20 = vpop.permute.xlu1 %1889 }
 0x1be   : > { %1976 = vst.msk [vmem:[#allocation3 + $0x50] sm:$0xff] %vm1965_vm11, %v1890_v20  ;;  %v1892_v27 = vpop.permute.xlu0 %1891  ;;  %v1832_v20 = vld [vmem:[#allocation2 + $0x172] sm:$0xff] }
 0x1bf   : > { %1977 = vst.msk [vmem:[#allocation3 + $0x58] sm:$0xff] %vm1965_vm11, %v1892_v27  ;;  %1140 = vrot.lane.b32.xlu1 %v1632_v26, %s3973_s14 }
 0x1c0   : > { %1142 = vrot.lane.b32.xlu0 %v1633_v41, %s3973_s14  ;;  %v1831_v41 = vld [vmem:[#allocation2 + $0x16a] sm:$0xff] }
 0x1c1   : > { %v1314_v14 = vpop.permute.xlu1 %1313 }
 0x1c2   : > { %1398 = vst.msk [vmem:[#allocation3 + $0x60] sm:$0xff] %vm1385_vm8, %v1314_v14  ;;  %v1508_v48 = vpop.permute.xlu0 %1507 }
 0x1c3   : > { %1592 = vst.msk [vmem:[#allocation3 + $0x60] sm:$0xff] %vm1579_vm9, %v1508_v48  ;;  %1909 = vrot.lane.b32.xlu1 %v1825_v10, %s3977_s12 }
 0x1c4   : > { %1911 = vrot.lane.b32.xlu0 %v1826_v9, %s3977_s12 }
 0x1c5   : > { %v1316_v23 = vpop.permute.xlu1 %1315  ;;  %v2008_v15 = vld [vmem:[#allocation3 + $0x50] sm:$0xff] }
 0x1c6   : > { %1399 = vst.msk [vmem:[#allocation3 + $0x68] sm:$0xff] %vm1385_vm8, %v1316_v23  ;;  %v1510_v58 = vpop.permute.xlu0 %1509  ;;  %3830 = vmatprep.mubr.msk.f32.mxu0 %vm2042_vm12, %v2008_v15  ;;  %v2009_v3 = vld [vmem:[#allocation3 + $0x58] sm:$0xff] }
 0x1c7   : > { %1593 = vst.msk [vmem:[#allocation3 + $0x68] sm:$0xff] %vm1579_vm9, %v1510_v58  ;;  %1333 = vrot.lane.b32.xlu1 %v1825_v10, %s3974_s15  ;;  %3831 = vmatmul.mubr.msk.f32.gmra.mrb[10].mxu0 %vm2042_vm12, %v2009_v3 }
 0x1c8   : > { %1527 = vrot.lane.b32.xlu0 %v1441_v33, %s3975_s16 }
 0x1c9   : > { %v932_v6 = vpop.permute.xlu1 %931 }
 0x1ca   : > { %1014 = vst.msk [vmem:[#allocation3 + $0x70] sm:$0xff] %vm999_vm6, %v932_v6  ;;  %v934_v34 = vpop.permute.xlu0 %933 }
 0x1cb   : > { %1015 = vst.msk [vmem:[#allocation3 + $0x78] sm:$0xff] %vm999_vm6, %v934_v34  ;;  %1335 = vrot.lane.b32.xlu1 %v1826_v9, %s3974_s15  ;;  %v1447_v9 = vld [vmem:[#allocation2 + $0x180] sm:$0xff] }
 0x1cc   : > { %1529 = vrot.lane.b32.xlu0 %v1442_v61, %s3975_s16 }
 0x1cd   : > { %v1701_v55 = vpop.permute.xlu1 %1700 }
 0x1ce   : > { %1785 = vst.msk [vmem:[#allocation3 + $0x60] sm:$0xff] %vm1772_vm10, %v1701_v55  ;;  %v1703_v40 = vpop.permute.xlu0 %1702  ;;  %v1641_v55 = vld [vmem:[#allocation2 + $0x189] sm:$0xff] }
 0x1cf   : > { %1786 = vst.msk [vmem:[#allocation3 + $0x68] sm:$0xff] %vm1772_vm10, %v1703_v40  ;;  %951 = vrot.lane.b32.xlu1 %v1441_v33, %s3972_s13  ;;  %v1448_v33 = vld [vmem:[#allocation2 + $0x188] sm:$0xff] }
 0x1d0   : > { %953 = vrot.lane.b32.xlu0 %v1442_v61, %s3972_s13  ;;  %v1640_v61 = vld [vmem:[#allocation2 + $0x181] sm:$0xff] }
 0x1d1   : > { %v1125_v35 = vpop.permute.xlu1 %1124 }
 0x1d2   : > { %1207 = vst.msk [vmem:[#allocation3 + $0x70] sm:$0xff] %vm1192_vm7, %v1125_v35  ;;  %v1127_v52 = vpop.permute.xlu0 %1126 }
 0x1d3   : > { %1208 = vst.msk [vmem:[#allocation3 + $0x78] sm:$0xff] %vm1192_vm7, %v1127_v52  ;;  %1720 = vrot.lane.b32.xlu1 %v1634_v43, %s3976_s28 }
 0x1d4   : > { %1722 = vrot.lane.b32.xlu0 %v1635_v13, %s3976_s28 }
 0x1d5   : > { %v1894_v17 = vpop.permute.xlu1 %1893 }
 0x1d6   : > { %1978 = vst.msk [vmem:[#allocation3 + $0x60] sm:$0xff] %vm1965_vm11, %v1894_v17  ;;  %v1896_v28 = vpop.permute.xlu0 %1895  ;;  %v1834_v17 = vld [vmem:[#allocation2 + $0x18a] sm:$0xff] }
 0x1d7   : > { %1979 = vst.msk [vmem:[#allocation3 + $0x68] sm:$0xff] %vm1965_vm11, %v1896_v28  ;;  %1144 = vrot.lane.b32.xlu1 %v1634_v43, %s3973_s14 }
 0x1d8   : > { %1146 = vrot.lane.b32.xlu0 %v1635_v13, %s3973_s14  ;;  %v1833_v13 = vld [vmem:[#allocation2 + $0x182] sm:$0xff] }
 0x1d9   : > { %v1318_v60 = vpop.permute.xlu1 %1317 }
 0x1da   : > { %1400 = vst.msk [vmem:[#allocation3 + $0x70] sm:$0xff] %vm1385_vm8, %v1318_v60  ;;  %v1512_v36 = vpop.permute.xlu0 %1511 }
 0x1db   : > { %1594 = vst.msk [vmem:[#allocation3 + $0x70] sm:$0xff] %vm1579_vm9, %v1512_v36  ;;  %1913 = vrot.lane.b32.xlu1 %v1827_v31, %s3977_s12 }
 0x1dc   : > { %1915 = vrot.lane.b32.xlu0 %v1828_v0, %s3977_s12 }
 0x1dd   : > { %v1320_v42 = vpop.permute.xlu1 %1319  ;;  %v2010_v47 = vld [vmem:[#allocation3 + $0x60] sm:$0xff] }
 0x1de   : > { %1401 = vst.msk [vmem:[#allocation3 + $0x78] sm:$0xff] %vm1385_vm8, %v1320_v42  ;;  %v1514_v8 = vpop.permute.xlu0 %1513  ;;  %3833 = vmatprep.mubr.msk.f32.mxu0 %vm2042_vm12, %v2010_v47  ;;  %v2011_v38 = vld [vmem:[#allocation3 + $0x68] sm:$0xff]  ;;  %v4953_v47 = vld [vmem:[%s5870_s2] ss:$0 sm:$0xff] }
 0x1df   : > { %1595 = vst.msk [vmem:[#allocation3 + $0x78] sm:$0xff] %vm1579_vm9, %v1514_v8  ;;  %1337 = vrot.lane.b32.xlu1 %v1827_v31, %s3974_s15  ;;  %3834 = vmatmul.mubr.msk.f32.gmra.mrb[12].mxu0 %vm2042_vm12, %v2011_v38  ;;  %v1642_v8 = vld [vmem:[#allocation2 + $0x199] sm:$0xff] }
 0x1e0   : > { %1531 = vrot.lane.b32.xlu0 %v1443_v5, %s3975_s16 }
 0x1e1   : > { %v936_v45 = vpop.permute.xlu1 %935 }
 0x1e2   : > { %1016 = vst.msk [vmem:[#allocation3 + $0x80] sm:$0xff] %vm999_vm6, %v936_v45  ;;  %v938_v46 = vpop.permute.xlu0 %937 }
 0x1e3   : > { %1017 = vst.msk [vmem:[#allocation3 + $0x88] sm:$0xff] %vm999_vm6, %v938_v46  ;;  %1339 = vrot.lane.b32.xlu1 %v1828_v0, %s3974_s15  ;;  %v1449_v0 = vld [vmem:[#allocation2 + $0x198] sm:$0xff] }
 0x1e4   : > { %1533 = vrot.lane.b32.xlu0 %v1444_v16, %s3975_s16 }
 0x1e5   : > { %v1705_v19 = vpop.permute.xlu1 %1704 }
 0x1e6   : > { %1787 = vst.msk [vmem:[#allocation3 + $0x70] sm:$0xff] %vm1772_vm10, %v1705_v19  ;;  %v1707_v53 = vpop.permute.xlu0 %1706  ;;  %v1450_v19 = vld [vmem:[#allocation2 + $0x1a0] sm:$0xff] }
 0x1e7   : > { %1788 = vst.msk [vmem:[#allocation3 + $0x78] sm:$0xff] %vm1772_vm10, %v1707_v53  ;;  %955 = vrot.lane.b32.xlu1 %v1443_v5, %s3972_s13 }
 0x1e8   : > { %957 = vrot.lane.b32.xlu0 %v1444_v16, %s3972_s13 }
 0x1e9   : > { %v1129_v62 = vpop.permute.xlu1 %1128 }
 0x1ea   : > { %1209 = vst.msk [vmem:[#allocation3 + $0x80] sm:$0xff] %vm1192_vm7, %v1129_v62  ;;  %v1131_v25 = vpop.permute.xlu0 %1130 }
 0x1eb   : > { %1210 = vst.msk [vmem:[#allocation3 + $0x88] sm:$0xff] %vm1192_vm7, %v1131_v25  ;;  %1724 = vrot.lane.b32.xlu1 %v1636_v63, %s3976_s28 }
 0x1ec   : > { %1726 = vrot.lane.b32.xlu0 %v1637_v2, %s3976_s28 }
 0x1ed   : > { %v1898_v44 = vpop.permute.xlu1 %1897 }
 0x1ee   : > { %1980 = vst.msk [vmem:[#allocation3 + $0x70] sm:$0xff] %vm1965_vm11, %v1898_v44  ;;  %v1900_v22 = vpop.permute.xlu0 %1899 }
 0x1ef   : > { %1981 = vst.msk [vmem:[#allocation3 + $0x78] sm:$0xff] %vm1965_vm11, %v1900_v22  ;;  %1148 = vrot.lane.b32.xlu1 %v1636_v63, %s3973_s14 }
 0x1f0   : > { %1150 = vrot.lane.b32.xlu0 %v1637_v2, %s3973_s14  ;;  %v1835_v2 = vld [vmem:[#allocation2 + $0x19a] sm:$0xff] }
 0x1f1   : > { %v1322_v57 = vpop.permute.xlu1 %1321 }
 0x1f2   : > { %1402 = vst.msk [vmem:[#allocation3 + $0x80] sm:$0xff] %vm1385_vm8, %v1322_v57  ;;  %v1516_v30 = vpop.permute.xlu0 %1515 }
 0x1f3   : > { %1596 = vst.msk [vmem:[#allocation3 + $0x80] sm:$0xff] %vm1579_vm9, %v1516_v30  ;;  %1917 = vrot.lane.b32.xlu1 %v1829_v51, %s3977_s12 }
 0x1f4   : > { %1919 = vrot.lane.b32.xlu0 %v1830_v39, %s3977_s12 }
 0x1f5   : > { %v1324_v18 = vpop.permute.xlu1 %1323  ;;  %v2012_v37 = vld [vmem:[#allocation3 + $0x70] sm:$0xff] }
 0x1f6   : > { %1403 = vst.msk [vmem:[#allocation3 + $0x88] sm:$0xff] %vm1385_vm8, %v1324_v18  ;;  %v1518_v11 = vpop.permute.xlu0 %1517  ;;  %3836 = vmatprep.mubr.msk.f32.mxu0 %vm2042_vm12, %v2012_v37  ;;  %v2013_v21 = vld [vmem:[#allocation3 + $0x78] sm:$0xff] }
 0x1f7   : > { %1597 = vst.msk [vmem:[#allocation3 + $0x88] sm:$0xff] %vm1579_vm9, %v1518_v11  ;;  %1341 = vrot.lane.b32.xlu1 %v1829_v51, %s3974_s15  ;;  %3837 = vmatmul.mubr.msk.f32.gmra.mrb[14].mxu0 %vm2042_vm12, %v2013_v21 }
 0x1f8   : > { %1535 = vrot.lane.b32.xlu0 %v1445_v7, %s3975_s16 }
 0x1f9   : > { %v940_v29 = vpop.permute.xlu1 %939 }
 0x1fa   : > { %1018 = vst.msk [vmem:[#allocation3 + $0x90] sm:$0xff] %vm999_vm6, %v940_v29  ;;  %v942_v56 = vpop.permute.xlu0 %941 }
 0x1fb   : > { %1019 = vst.msk [vmem:[#allocation3 + $0x98] sm:$0xff] %vm999_vm6, %v942_v56  ;;  %1343 = vrot.lane.b32.xlu1 %v1830_v39, %s3974_s15  ;;  %v1643_v39 = vld [vmem:[#allocation2 + $0x1a1] sm:$0xff] }
 0x1fc   : > { %1537 = vrot.lane.b32.xlu0 %v1446_v50, %s3975_s16 }
 0x1fd   : > { %v1709_v54 = vpop.permute.xlu1 %1708 }
 0x1fe   : > { %1789 = vst.msk [vmem:[#allocation3 + $0x80] sm:$0xff] %vm1772_vm10, %v1709_v54  ;;  %v1711_v1 = vpop.permute.xlu0 %1710 }
 0x1ff   : > { %1790 = vst.msk [vmem:[#allocation3 + $0x88] sm:$0xff] %vm1772_vm10, %v1711_v1  ;;  %959 = vrot.lane.b32.xlu1 %v1445_v7, %s3972_s13  ;;  %v1836_v7 = vld [vmem:[#allocation2 + $0x1a2] sm:$0xff] }
 0x200   : > { %961 = vrot.lane.b32.xlu0 %v1446_v50, %s3972_s13 }
 0x201   : > { %v1133_v12 = vpop.permute.xlu1 %1132 }
 0x202   : > { %1211 = vst.msk [vmem:[#allocation3 + $0x90] sm:$0xff] %vm1192_vm7, %v1133_v12  ;;  %v1135_v59 = vpop.permute.xlu0 %1134 }
 0x203   : > { %1212 = vst.msk [vmem:[#allocation3 + $0x98] sm:$0xff] %vm1192_vm7, %v1135_v59  ;;  %1728 = vrot.lane.b32.xlu1 %v1638_v4, %s3976_s28 }
 0x204   : > { %1730 = vrot.lane.b32.xlu0 %v1639_v24, %s3976_s28 }
 0x205   : > { %v1902_v26 = vpop.permute.xlu1 %1901 }
 0x206   : > { %1982 = vst.msk [vmem:[#allocation3 + $0x80] sm:$0xff] %vm1965_vm11, %v1902_v26  ;;  %v1904_v32 = vpop.permute.xlu0 %1903 }
 0x207   : > { %1983 = vst.msk [vmem:[#allocation3 + $0x88] sm:$0xff] %vm1965_vm11, %v1904_v32  ;;  %1152 = vrot.lane.b32.xlu1 %v1638_v4, %s3973_s14 }
 0x208   : > { %1154 = vrot.lane.b32.xlu0 %v1639_v24, %s3973_s14 }
 0x209   : > { %v1326_v49 = vpop.permute.xlu1 %1325 }
 0x20a   : > { %1404 = vst.msk [vmem:[#allocation3 + $0x90] sm:$0xff] %vm1385_vm8, %v1326_v49  ;;  %v1520_v27 = vpop.permute.xlu0 %1519 }
 0x20b   : > { %1598 = vst.msk [vmem:[#allocation3 + $0x90] sm:$0xff] %vm1579_vm9, %v1520_v27  ;;  %1921 = vrot.lane.b32.xlu1 %v1831_v41, %s3977_s12 }
 0x20c   : > { %1923 = vrot.lane.b32.xlu0 %v1832_v20, %s3977_s12 }
 0x20d   : > { %v1328_v10 = vpop.permute.xlu1 %1327  ;;  %v2014_v14 = vld [vmem:[#allocation3 + $0x80] sm:$0xff] }
 0x20e   : > { %1405 = vst.msk [vmem:[#allocation3 + $0x98] sm:$0xff] %vm1385_vm8, %v1328_v10  ;;  %v1522_v48 = vpop.permute.xlu0 %1521  ;;  %3839 = vmatprep.mubr.msk.f32.mxu1 %vm2042_vm12, %v2014_v14  ;;  %v2015_v23 = vld [vmem:[#allocation3 + $0x88] sm:$0xff] }
 0x20f   : > { %1599 = vst.msk [vmem:[#allocation3 + $0x98] sm:$0xff] %vm1579_vm9, %v1522_v48  ;;  %1345 = vrot.lane.b32.xlu1 %v1831_v41, %s3974_s15  ;;  %3840 = vmatmul.mubr.msk.f32.vlgmr.msra.gmra.mrb[0].mxu1 %vm2042_vm12, %v2015_v23 }
 0x210   : > { %1539 = vrot.lane.b32.xlu0 %v1447_v9, %s3975_s16 }
 0x211   : > { %v944_v15 = vpop.permute.xlu1 %943 }
 0x212   : > { %1020 = vst.msk [vmem:[#allocation3 + $0xa0] sm:$0xff] %vm999_vm6, %v944_v15  ;;  %v946_v58 = vpop.permute.xlu0 %945 }
 0x213   : > { %1021 = vst.msk [vmem:[#allocation3 + $0xa8] sm:$0xff] %vm999_vm6, %v946_v58  ;;  %1347 = vrot.lane.b32.xlu1 %v1832_v20, %s3974_s15 }
 0x214   : > { %1541 = vrot.lane.b32.xlu0 %v1448_v33, %s3975_s16 }
 0x215   : > { %v1713_v3 = vpop.permute.xlu1 %1712 }
 0x216   : > { %1791 = vst.msk [vmem:[#allocation3 + $0x90] sm:$0xff] %vm1772_vm10, %v1713_v3  ;;  %v1715_v6 = vpop.permute.xlu0 %1714 }
 0x217   : > { %1792 = vst.msk [vmem:[#allocation3 + $0x98] sm:$0xff] %vm1772_vm10, %v1715_v6  ;;  %963 = vrot.lane.b32.xlu1 %v1447_v9, %s3972_s13 }
 0x218   : > { %965 = vrot.lane.b32.xlu0 %v1448_v33, %s3972_s13 }
 0x219   : > { %v1137_v34 = vpop.permute.xlu1 %1136 }
 0x21a   : > { %1213 = vst.msk [vmem:[#allocation3 + $0xa0] sm:$0xff] %vm1192_vm7, %v1137_v34  ;;  %v1139_v40 = vpop.permute.xlu0 %1138 }
 0x21b   : > { %1214 = vst.msk [vmem:[#allocation3 + $0xa8] sm:$0xff] %vm1192_vm7, %v1139_v40  ;;  %1732 = vrot.lane.b32.xlu1 %v1640_v61, %s3976_s28 }
 0x21c   : > { %1734 = vrot.lane.b32.xlu0 %v1641_v55, %s3976_s28 }
 0x21d   : > { %v1906_v43 = vpop.permute.xlu1 %1905 }
 0x21e   : > { %1984 = vst.msk [vmem:[#allocation3 + $0x90] sm:$0xff] %vm1965_vm11, %v1906_v43  ;;  %v1908_v35 = vpop.permute.xlu0 %1907 }
 0x21f   : > { %1985 = vst.msk [vmem:[#allocation3 + $0x98] sm:$0xff] %vm1965_vm11, %v1908_v35  ;;  %1156 = vrot.lane.b32.xlu1 %v1640_v61, %s3973_s14 }
 0x220   : > { %1158 = vrot.lane.b32.xlu0 %v1641_v55, %s3973_s14  ;;  %s3758_s14 = sshll.u32 %s3951_s18, 8 }
 0x221   : > { %v1330_v52 = vpop.permute.xlu1 %1329  ;;  %s4964_s17 = scalar_lea.vmem [#allocation4], %s3758_s14 }
 0x222   : > { %1406 = vst.msk [vmem:[#allocation3 + $0xa0] sm:$0xff] %vm1385_vm8, %v1330_v52  ;;  %v1524_v28 = vpop.permute.xlu0 %1523 }
 0x223   : > { %1600 = vst.msk [vmem:[#allocation3 + $0xa0] sm:$0xff] %vm1579_vm9, %v1524_v28  ;;  %1925 = vrot.lane.b32.xlu1 %v1833_v13, %s3977_s12 }
 0x224   : > { %1927 = vrot.lane.b32.xlu0 %v1834_v17, %s3977_s12 }
 0x225   : > { %v1332_v31 = vpop.permute.xlu1 %1331  ;;  %v2016_v60 = vld [vmem:[#allocation3 + $0x90] sm:$0xff] }
 0x226   : > { %1407 = vst.msk [vmem:[#allocation3 + $0xa8] sm:$0xff] %vm1385_vm8, %v1332_v31  ;;  %v1526_v36 = vpop.permute.xlu0 %1525  ;;  %3842 = vmatprep.mubr.msk.f32.mxu1 %vm2042_vm12, %v2016_v60  ;;  %v2017_v42 = vld [vmem:[#allocation3 + $0x98] sm:$0xff] }
 0x227   : > { %1601 = vst.msk [vmem:[#allocation3 + $0xa8] sm:$0xff] %vm1579_vm9, %v1526_v36  ;;  %1349 = vrot.lane.b32.xlu1 %v1833_v13, %s3974_s15  ;;  %3843 = vmatmul.mubr.msk.f32.gmra.mrb[2].mxu1 %vm2042_vm12, %v2017_v42 }
 0x228   : > { %1543 = vrot.lane.b32.xlu0 %v1449_v0, %s3975_s16 }
 0x229   : > { %v948_v5 = vpop.permute.xlu1 %947 }
 0x22a   : > { %1022 = vst.msk [vmem:[#allocation3 + $0xb0] sm:$0xff] %vm999_vm6, %v948_v5  ;;  %v950_v38 = vpop.permute.xlu0 %949  ;;  %v3817_v45 = vpop.f32.mrb[0].mxu0 }
 0x22b   : > { %1023 = vst.msk [vmem:[#allocation3 + $0xb8] sm:$0xff] %vm999_vm6, %v950_v38  ;;  %1351 = vrot.lane.b32.xlu1 %v1834_v17, %s3974_s15  ;;  %v2215_v16 = vadd.f32 %v3817_v45, %v4953_v47  ;;  %v2209_v46 = vpop.f32.mrb[1].mxu0 }
 0x22c   : > { %v2210_v53 = vadd.f32 %v4953_v47, %v2209_v46  ;;  %1736 = vrot.lane.b32.xlu0 %v1642_v8, %s3976_s28 }
 0x22d   : > { %v1717_v63 = vpop.permute.xlu1 %1716  ;;  %v2369_v62 = vmax.f32 %v2215_v16, 0.0 }
 0x22e   : > { %1793 = vst.msk [vmem:[#allocation3 + $0xa0] sm:$0xff] %vm1772_vm10, %v1717_v63  ;;  %v1719_v25 = vpop.permute.xlu0 %1718  ;;  %v2368_v44 = vmax.f32 %v2210_v53, 0.0 }
 0x22f   : > { %1794 = vst.msk [vmem:[#allocation3 + $0xa8] sm:$0xff] %vm1772_vm10, %v1719_v25  ;;  %v2442_v22 = vmul.f32 %v2369_v62, %v2369_v62  ;;  %2515 = vst [vmem:[%s4964_s17 + $0x8] sm:$0xff] %v2369_v62  ;;  %1545 = vrot.lane.b32.xlu1 %v1450_v19, %s3975_s16 }
 0x230   : > { %v2401_v51 = vadd.f32 %v2369_v62, %v2368_v44  ;;  %v2441_v57 = vmul.f32 %v2368_v44, %v2368_v44  ;;  %2514 = vst [vmem:[%s4964_s17] sm:$0xff] %v2368_v44  ;;  %1929 = vrot.lane.b32.xlu0 %v1835_v2, %s3977_s12 }
 0x231   : > { %v1141_v30 = vpop.permute.xlu1 %1140 }
 0x232   : > { %v2473_v18 = vadd.f32 %v2442_v22, %v2441_v57  ;;  %1215 = vst.msk [vmem:[#allocation3 + $0xb0] sm:$0xff] %vm1192_vm7, %v1141_v30  ;;  %v1143_v37 = vpop.permute.xlu0 %1142 }
 0x233   : > { %1216 = vst.msk [vmem:[#allocation3 + $0xb8] sm:$0xff] %vm1192_vm7, %v1143_v37  ;;  %1738 = vrot.lane.b32.xlu1 %v1643_v39, %s3976_s28 }
 0x235   : > { %v1910_v11 = vpop.permute.xlu1 %1909 }
 0x236   : > { %1986 = vst.msk [vmem:[#allocation3 + $0xa0] sm:$0xff] %vm1965_vm11, %v1910_v11  ;;  %v1912_v21 = vpop.permute.xlu0 %1911 }
 0x237   : > { %1987 = vst.msk [vmem:[#allocation3 + $0xa8] sm:$0xff] %vm1965_vm11, %v1912_v21  ;;  %1931 = vrot.lane.b32.xlu1 %v1836_v7, %s3977_s12 }
 0x239   : > { %v1334_v29 = vpop.permute.xlu1 %1333 }
 0x23a   : > { %1408 = vst.msk [vmem:[#allocation3 + $0xb0] sm:$0xff] %vm1385_vm8, %v1334_v29  ;;  %v1528_v50 = vpop.permute.xlu0 %1527 }
 0x23b   : > { %1602 = vst.msk [vmem:[#allocation3 + $0xb0] sm:$0xff] %vm1579_vm9, %v1528_v50 }
 0x23d   : > { %v1336_v56 = vpop.permute.xlu1 %1335  ;;  %v2018_v54 = vld [vmem:[#allocation3 + $0xa0] sm:$0xff] }
 0x23e   : > { %1409 = vst.msk [vmem:[#allocation3 + $0xb8] sm:$0xff] %vm1385_vm8, %v1336_v56  ;;  %v1530_v1 = vpop.permute.xlu0 %1529  ;;  %v3820_v4 = vpop.f32.mrb[2].mxu0  ;;  %3845 = vmatprep.mubr.msk.f32.mxu1 %vm2042_vm12, %v2018_v54  ;;  %v2019_v12 = vld [vmem:[#allocation3 + $0xa8] sm:$0xff] }
 0x23f   : > { %1603 = vst.msk [vmem:[#allocation3 + $0xb8] sm:$0xff] %vm1579_vm9, %v1530_v1  ;;  %v2225_v24 = vadd.f32 %v3820_v4, %v4953_v47  ;;  %v2219_v59 = vpop.f32.mrb[3].mxu0  ;;  %3846 = vmatmul.mubr.msk.f32.gmra.mrb[4].mxu1 %vm2042_vm12, %v2019_v12 }
 0x240   : > { %v2220_v26 = vadd.f32 %v4953_v47, %v2219_v59 }
 0x241   : > { %v2371_v32 = vmax.f32 %v2225_v24, 0.0  ;;  %v952_v41 = vpop.permute.xlu1 %951 }
 0x242   : > { %v2370_v49 = vmax.f32 %v2220_v26, 0.0  ;;  %1024 = vst.msk [vmem:[#allocation3 + $0xc0] sm:$0xff] %vm999_vm6, %v952_v41  ;;  %v954_v20 = vpop.permute.xlu0 %953 }
 0x243   : > { %2517 = vst [vmem:[%s4964_s17 + $0x18] sm:$0xff] %v2371_v32  ;;  %1025 = vst.msk [vmem:[#allocation3 + $0xc8] sm:$0xff] %vm999_vm6, %v954_v20  ;;  %v2444_v27 = vmul.f32 %v2371_v32, %v2371_v32 }
 0x244   : > { %v2402_v10 = vadd.f32 %v2401_v51, %v2370_v49  ;;  %v2443_v14 = vmul.f32 %v2370_v49, %v2370_v49  ;;  %2516 = vst [vmem:[%s4964_s17 + $0x10] sm:$0xff] %v2370_v49 }
 0x245   : > { %v1721_v9 = vpop.permute.xlu1 %1720 }
 0x246   : > { %v2474_v48 = vadd.f32 %v2473_v18, %v2443_v14  ;;  %1795 = vst.msk [vmem:[#allocation3 + $0xb0] sm:$0xff] %vm1772_vm10, %v1721_v9  ;;  %v1723_v23 = vpop.permute.xlu0 %1722  ;;  %v2403_v15 = vadd.f32 %v2402_v10, %v2371_v32 }
 0x247   : > { %1796 = vst.msk [vmem:[#allocation3 + $0xb8] sm:$0xff] %vm1772_vm10, %v1723_v23 }
 0x248   : > { %v2475_v33 = vadd.f32 %v2474_v48, %v2444_v27 }
 0x249   : > { %v1145_v58 = vpop.permute.xlu1 %1144 }
 0x24a   : > { %1217 = vst.msk [vmem:[#allocation3 + $0xc0] sm:$0xff] %vm1192_vm7, %v1145_v58  ;;  %v1147_v3 = vpop.permute.xlu0 %1146 }
 0x24b   : > { %1218 = vst.msk [vmem:[#allocation3 + $0xc8] sm:$0xff] %vm1192_vm7, %v1147_v3 }
 0x24d   : > { %v1914_v6 = vpop.permute.xlu1 %1913 }
 0x24e   : > { %1988 = vst.msk [vmem:[#allocation3 + $0xb0] sm:$0xff] %vm1965_vm11, %v1914_v6  ;;  %v1916_v61 = vpop.permute.xlu0 %1915 }
 0x24f   : > { %1989 = vst.msk [vmem:[#allocation3 + $0xb8] sm:$0xff] %vm1965_vm11, %v1916_v61 }
 0x251   : > { %v1338_v34 = vpop.permute.xlu1 %1337 }
 0x252   : > { %1410 = vst.msk [vmem:[#allocation3 + $0xc0] sm:$0xff] %vm1385_vm8, %v1338_v34  ;;  %v1532_v55 = vpop.permute.xlu0 %1531  ;;  %v3823_v40 = vpop.f32.mrb[4].mxu0 }
 0x253   : > { %1604 = vst.msk [vmem:[#allocation3 + $0xc0] sm:$0xff] %vm1579_vm9, %v1532_v55  ;;  %v2235_v43 = vadd.f32 %v3823_v40, %v4953_v47  ;;  %v2229_v35 = vpop.f32.mrb[5].mxu0 }
 0x254   : > { %v2230_v13 = vadd.f32 %v4953_v47, %v2229_v35 }
 0x255   : > { %v2373_v52 = vmax.f32 %v2235_v43, 0.0  ;;  %v1340_v17 = vpop.permute.xlu1 %1339  ;;  %v2020_v28 = vld [vmem:[#allocation3 + $0xb0] sm:$0xff] }
 0x256   : > { %v2372_v31 = vmax.f32 %v2230_v13, 0.0  ;;  %1411 = vst.msk [vmem:[#allocation3 + $0xc8] sm:$0xff] %vm1385_vm8, %v1340_v17  ;;  %v1534_v60 = vpop.permute.xlu0 %1533  ;;  %3848 = vmatprep.mubr.msk.f32.mxu1 %vm2042_vm12, %v2020_v28  ;;  %v2021_v0 = vld [vmem:[#allocation3 + $0xb8] sm:$0xff] }
 0x257   : > { %2519 = vst [vmem:[%s4964_s17 + $0x28] sm:$0xff] %v2373_v52  ;;  %1605 = vst.msk [vmem:[#allocation3 + $0xc8] sm:$0xff] %vm1579_vm9, %v1534_v60  ;;  %3849 = vmatmul.mubr.msk.f32.gmra.mrb[6].mxu1 %vm2042_vm12, %v2021_v0  ;;  %v2446_v36 = vmul.f32 %v2373_v52, %v2373_v52 }
 0x258   : > { %v2404_v42 = vadd.f32 %v2403_v15, %v2372_v31  ;;  %v2445_v5 = vmul.f32 %v2372_v31, %v2372_v31  ;;  %2518 = vst [vmem:[%s4964_s17 + $0x20] sm:$0xff] %v2372_v31 }
 0x259   : > { %v956_v8 = vpop.permute.xlu1 %955 }
 0x25a   : > { %v2476_v38 = vadd.f32 %v2475_v33, %v2445_v5  ;;  %1026 = vst.msk [vmem:[#allocation3 + $0xd0] sm:$0xff] %vm999_vm6, %v956_v8  ;;  %v958_v45 = vpop.permute.xlu0 %957  ;;  %v2405_v16 = vadd.f32 %v2404_v42, %v2373_v52 }
 0x25b   : > { %1027 = vst.msk [vmem:[#allocation3 + $0xd8] sm:$0xff] %vm999_vm6, %v958_v45 }
 0x25c   : > { %v2477_v46 = vadd.f32 %v2476_v38, %v2446_v36 }
 0x25d   : > { %v1725_v19 = vpop.permute.xlu1 %1724 }
 0x25e   : > { %1797 = vst.msk [vmem:[#allocation3 + $0xc0] sm:$0xff] %vm1772_vm10, %v1725_v19  ;;  %v1727_v53 = vpop.permute.xlu0 %1726 }
 0x25f   : > { %1798 = vst.msk [vmem:[#allocation3 + $0xc8] sm:$0xff] %vm1772_vm10, %v1727_v53 }
 0x261   : > { %v1149_v63 = vpop.permute.xlu1 %1148 }
 0x262   : > { %1219 = vst.msk [vmem:[#allocation3 + $0xd0] sm:$0xff] %vm1192_vm7, %v1149_v63  ;;  %v1151_v62 = vpop.permute.xlu0 %1150 }
 0x263   : > { %1220 = vst.msk [vmem:[#allocation3 + $0xd8] sm:$0xff] %vm1192_vm7, %v1151_v62 }
 0x265   : > { %v1918_v2 = vpop.permute.xlu1 %1917 }
 0x266   : > { %1990 = vst.msk [vmem:[#allocation3 + $0xc0] sm:$0xff] %vm1965_vm11, %v1918_v2  ;;  %v1920_v25 = vpop.permute.xlu0 %1919 }
 0x267   : > { %1991 = vst.msk [vmem:[#allocation3 + $0xc8] sm:$0xff] %vm1965_vm11, %v1920_v25 }
 0x269   : > { %v1342_v44 = vpop.permute.xlu1 %1341 }
 0x26a   : > { %1412 = vst.msk [vmem:[#allocation3 + $0xd0] sm:$0xff] %vm1385_vm8, %v1342_v44  ;;  %v1536_v22 = vpop.permute.xlu0 %1535  ;;  %v3826_v51 = vpop.f32.mrb[6].mxu0 }
 0x26b   : > { %1606 = vst.msk [vmem:[#allocation3 + $0xd0] sm:$0xff] %vm1579_vm9, %v1536_v22  ;;  %v2245_v57 = vadd.f32 %v3826_v51, %v4953_v47  ;;  %v2239_v39 = vpop.f32.mrb[7].mxu0 }
 0x26c   : > { %v2240_v30 = vadd.f32 %v4953_v47, %v2239_v39 }
 0x26d   : > { %v2375_v18 = vmax.f32 %v2245_v57, 0.0  ;;  %v1344_v37 = vpop.permute.xlu1 %1343  ;;  %v2022_v7 = vld [vmem:[#allocation3 + $0xc0] sm:$0xff] }
 0x26e   : > { %v2374_v11 = vmax.f32 %v2240_v30, 0.0  ;;  %1413 = vst.msk [vmem:[#allocation3 + $0xd8] sm:$0xff] %vm1385_vm8, %v1344_v37  ;;  %v1538_v21 = vpop.permute.xlu0 %1537  ;;  %3851 = vmatprep.mubr.msk.f32.mxu1 %vm2042_vm12, %v2022_v7  ;;  %v2023_v29 = vld [vmem:[#allocation3 + $0xc8] sm:$0xff] }
 0x26f   : > { %2521 = vst [vmem:[%s4964_s17 + $0x38] sm:$0xff] %v2375_v18  ;;  %1607 = vst.msk [vmem:[#allocation3 + $0xd8] sm:$0xff] %vm1579_vm9, %v1538_v21  ;;  %3852 = vmatmul.mubr.msk.f32.gmra.mrb[8].mxu1 %vm2042_vm12, %v2023_v29  ;;  %v2448_v50 = vmul.f32 %v2375_v18, %v2375_v18 }
 0x270   : > { %v2406_v56 = vadd.f32 %v2405_v16, %v2374_v11  ;;  %v2447_v54 = vmul.f32 %v2374_v11, %v2374_v11  ;;  %2520 = vst [vmem:[%s4964_s17 + $0x30] sm:$0xff] %v2374_v11 }
 0x271   : > { %v960_v1 = vpop.permute.xlu1 %959 }
 0x272   : > { %v2478_v4 = vadd.f32 %v2477_v46, %v2447_v54  ;;  %1028 = vst.msk [vmem:[#allocation3 + $0xe0] sm:$0xff] %vm999_vm6, %v960_v1  ;;  %v962_v12 = vpop.permute.xlu0 %961  ;;  %v2407_v24 = vadd.f32 %v2406_v56, %v2375_v18 }
 0x273   : > { %1029 = vst.msk [vmem:[#allocation3 + $0xe8] sm:$0xff] %vm999_vm6, %v962_v12 }
 0x274   : > { %v2479_v59 = vadd.f32 %v2478_v4, %v2448_v50 }
 0x275   : > { %v1729_v26 = vpop.permute.xlu1 %1728 }
 0x276   : > { %1799 = vst.msk [vmem:[#allocation3 + $0xd0] sm:$0xff] %vm1772_vm10, %v1729_v26  ;;  %v1731_v32 = vpop.permute.xlu0 %1730 }
 0x277   : > { %1800 = vst.msk [vmem:[#allocation3 + $0xd8] sm:$0xff] %vm1772_vm10, %v1731_v32 }
 0x279   : > { %v1153_v41 = vpop.permute.xlu1 %1152 }
 0x27a   : > { %1221 = vst.msk [vmem:[#allocation3 + $0xe0] sm:$0xff] %vm1192_vm7, %v1153_v41  ;;  %v1155_v49 = vpop.permute.xlu0 %1154 }
 0x27b   : > { %1222 = vst.msk [vmem:[#allocation3 + $0xe8] sm:$0xff] %vm1192_vm7, %v1155_v49 }
 0x27d   : > { %v1922_v20 = vpop.permute.xlu1 %1921 }
 0x27e   : > { %1992 = vst.msk [vmem:[#allocation3 + $0xd0] sm:$0xff] %vm1965_vm11, %v1922_v20  ;;  %v1924_v27 = vpop.permute.xlu0 %1923 }
 0x27f   : > { %1993 = vst.msk [vmem:[#allocation3 + $0xd8] sm:$0xff] %vm1965_vm11, %v1924_v27 }
 0x281   : > { %v1346_v10 = vpop.permute.xlu1 %1345 }
 0x282   : > { %1414 = vst.msk [vmem:[#allocation3 + $0xe0] sm:$0xff] %vm1385_vm8, %v1346_v10  ;;  %v1540_v14 = vpop.permute.xlu0 %1539  ;;  %v3829_v9 = vpop.f32.mrb[8].mxu0 }
 0x283   : > { %1608 = vst.msk [vmem:[#allocation3 + $0xe0] sm:$0xff] %vm1579_vm9, %v1540_v14  ;;  %v2255_v48 = vadd.f32 %v3829_v9, %v4953_v47  ;;  %v2249_v23 = vpop.f32.mrb[9].mxu0 }
 0x284   : > { %v2250_v15 = vadd.f32 %v4953_v47, %v2249_v23 }
 0x285   : > { %v2377_v33 = vmax.f32 %v2255_v48, 0.0  ;;  %v1348_v58 = vpop.permute.xlu1 %1347  ;;  %v2024_v3 = vld [vmem:[#allocation3 + $0xd0] sm:$0xff] }
 0x286   : > { %v2376_v6 = vmax.f32 %v2250_v15, 0.0  ;;  %1415 = vst.msk [vmem:[#allocation3 + $0xe8] sm:$0xff] %vm1385_vm8, %v1348_v58  ;;  %v1542_v61 = vpop.permute.xlu0 %1541  ;;  %3854 = vmatprep.mubr.msk.f32.mxu1 %vm2042_vm12, %v2024_v3  ;;  %v2025_v34 = vld [vmem:[#allocation3 + $0xd8] sm:$0xff] }
 0x287   : > { %2523 = vst [vmem:[%s4964_s17 + $0x48] sm:$0xff] %v2377_v33  ;;  %1609 = vst.msk [vmem:[#allocation3 + $0xe8] sm:$0xff] %vm1579_vm9, %v1542_v61  ;;  %3855 = vmatmul.mubr.msk.f32.gmra.mrb[10].mxu1 %vm2042_vm12, %v2025_v34  ;;  %v2450_v55 = vmul.f32 %v2377_v33, %v2377_v33 }
 0x288   : > { %v2408_v40 = vadd.f32 %v2407_v24, %v2376_v6  ;;  %v2449_v43 = vmul.f32 %v2376_v6, %v2376_v6  ;;  %2522 = vst [vmem:[%s4964_s17 + $0x40] sm:$0xff] %v2376_v6 }
 0x289   : > { %v964_v35 = vpop.permute.xlu1 %963 }
 0x28a   : > { %v2480_v13 = vadd.f32 %v2479_v59, %v2449_v43  ;;  %1030 = vst.msk [vmem:[#allocation3 + $0xf0] sm:$0xff] %vm999_vm6, %v964_v35  ;;  %v966_v52 = vpop.permute.xlu0 %965  ;;  %v2409_v17 = vadd.f32 %v2408_v40, %v2377_v33 }
 0x28b   : > { %1031 = vst.msk [vmem:[#allocation3 + $0xf8] sm:$0xff] %vm999_vm6, %v966_v52 }
 0x28c   : > { %v2481_v28 = vadd.f32 %v2480_v13, %v2450_v55 }
 0x28d   : > { %v1733_v31 = vpop.permute.xlu1 %1732 }
 0x28e   : > { %1801 = vst.msk [vmem:[#allocation3 + $0xe0] sm:$0xff] %vm1772_vm10, %v1733_v31  ;;  %v1735_v60 = vpop.permute.xlu0 %1734 }
 0x28f   : > { %1802 = vst.msk [vmem:[#allocation3 + $0xe8] sm:$0xff] %vm1772_vm10, %v1735_v60 }
 0x291   : > { %v1157_v0 = vpop.permute.xlu1 %1156 }
 0x292   : > { %1223 = vst.msk [vmem:[#allocation3 + $0xf0] sm:$0xff] %vm1192_vm7, %v1157_v0  ;;  %v1159_v36 = vpop.permute.xlu0 %1158 }
 0x293   : > { %1224 = vst.msk [vmem:[#allocation3 + $0xf8] sm:$0xff] %vm1192_vm7, %v1159_v36 }
 0x295   : > { %v1926_v42 = vpop.permute.xlu1 %1925 }
 0x296   : > { %1994 = vst.msk [vmem:[#allocation3 + $0xe0] sm:$0xff] %vm1965_vm11, %v1926_v42  ;;  %v1928_v5 = vpop.permute.xlu0 %1927 }
 0x297   : > { %1995 = vst.msk [vmem:[#allocation3 + $0xe8] sm:$0xff] %vm1965_vm11, %v1928_v5 }
 0x299   : > { %v1350_v8 = vpop.permute.xlu1 %1349 }
 0x29a   : > { %1416 = vst.msk [vmem:[#allocation3 + $0xf0] sm:$0xff] %vm1385_vm8, %v1350_v8  ;;  %v3832_v38 = vpop.f32.mrb[10].mxu0  ;;  %v1544_v45 = vpop.permute.xlu0 %1543 }
 0x29b   : > { %v2265_v16 = vadd.f32 %v3832_v38, %v4953_v47  ;;  %v2259_v46 = vpop.f32.mrb[11].mxu0  ;;  %1610 = vst.msk [vmem:[#allocation3 + $0xf0] sm:$0xff] %vm1579_vm9, %v1544_v45 }
 0x29c   : > { %v2260_v19 = vadd.f32 %v4953_v47, %v2259_v46 }
 0x29d   : > { %v2379_v53 = vmax.f32 %v2265_v16, 0.0  ;;  %v1352_v63 = vpop.permute.xlu1 %1351  ;;  %v2026_v62 = vld [vmem:[#allocation3 + $0xe0] sm:$0xff] }
 0x29e   : > { %v2378_v2 = vmax.f32 %v2260_v19, 0.0  ;;  %1417 = vst.msk [vmem:[#allocation3 + $0xf8] sm:$0xff] %vm1385_vm8, %v1352_v63  ;;  %3857 = vmatprep.mubr.msk.f32.mxu1 %vm2042_vm12, %v2026_v62  ;;  %v2027_v25 = vld [vmem:[#allocation3 + $0xe8] sm:$0xff]  ;;  %v1737_v44 = vpop.permute.xlu0 %1736 }
 0x29f   : > { %2525 = vst [vmem:[%s4964_s17 + $0x58] sm:$0xff] %v2379_v53  ;;  %3858 = vmatmul.mubr.msk.f32.gmra.mrb[12].mxu1 %vm2042_vm12, %v2027_v25  ;;  %1803 = vst.msk [vmem:[#allocation3 + $0xf0] sm:$0xff] %vm1772_vm10, %v1737_v44  ;;  %v2452_v22 = vmul.f32 %v2379_v53, %v2379_v53 }
 0x2a0   : > { %v2410_v51 = vadd.f32 %v2409_v17, %v2378_v2  ;;  %v2451_v57 = vmul.f32 %v2378_v2, %v2378_v2  ;;  %2524 = vst [vmem:[%s4964_s17 + $0x50] sm:$0xff] %v2378_v2 }
 0x2a1   : > { %v1546_v39 = vpop.permute.xlu1 %1545 }
 0x2a2   : > { %v2482_v30 = vadd.f32 %v2481_v28, %v2451_v57  ;;  %1611 = vst.msk [vmem:[#allocation3 + $0xf8] sm:$0xff] %vm1579_vm9, %v1546_v39  ;;  %v1930_v18 = vpop.permute.xlu0 %1929  ;;  %v2411_v37 = vadd.f32 %v2410_v51, %v2379_v53 }
 0x2a3   : > { %1996 = vst.msk [vmem:[#allocation3 + $0xf0] sm:$0xff] %vm1965_vm11, %v1930_v18 }
 0x2a4   : > { %v2483_v7 = vadd.f32 %v2482_v30, %v2452_v22 }
 0x2a5   : > { %v1739_v11 = vpop.permute.xlu1 %1738 }
 0x2a6   : > { %1804 = vst.msk [vmem:[#allocation3 + $0xf8] sm:$0xff] %vm1772_vm10, %v1739_v11 }
 0x2a9   : > { %v1932_v21 = vpop.permute.xlu1 %1931 }
 0x2aa   : > { %1997 = vst.msk [vmem:[#allocation3 + $0xf8] sm:$0xff] %vm1965_vm11, %v1932_v21  ;;  %v2028_v29 = vld [vmem:[#allocation3 + $0xf0] sm:$0xff] }
 0x2ab   : > { %3860 = vmatprep.mubr.msk.f32.mxu1 %vm2042_vm12, %v2028_v29 }
 0x2b1   : > { %v2029_v50 = vld [vmem:[#allocation3 + $0xf8] sm:$0xff] }
 0x2b2   : > { %v3835_v56 = vpop.f32.mrb[12].mxu0  ;;  %3861 = vmatmul.mubr.msk.f32.gmra.mrb[14].mxu1 %vm2042_vm12, %v2029_v50 }
 0x2b3   : > { %v2275_v54 = vadd.f32 %v3835_v56, %v4953_v47  ;;  %v2269_v1 = vpop.f32.mrb[13].mxu0 }
 0x2b4   : > { %v2270_v4 = vadd.f32 %v4953_v47, %v2269_v1 }
 0x2b5   : > { %v2381_v12 = vmax.f32 %v2275_v54, 0.0 }
 0x2b6   : > { %v2380_v24 = vmax.f32 %v2270_v4, 0.0 }
 0x2b7   : > { %2527 = vst [vmem:[%s4964_s17 + $0x68] sm:$0xff] %v2381_v12  ;;  %v2454_v59 = vmul.f32 %v2381_v12, %v2381_v12 }
 0x2b8   : > { %v2412_v26 = vadd.f32 %v2411_v37, %v2380_v24  ;;  %v2453_v32 = vmul.f32 %v2380_v24, %v2380_v24  ;;  %2526 = vst [vmem:[%s4964_s17 + $0x60] sm:$0xff] %v2380_v24 }
 0x2ba   : > { %v2484_v41 = vadd.f32 %v2483_v7, %v2453_v32  ;;  %v2413_v49 = vadd.f32 %v2412_v26, %v2381_v12 }
 0x2bc   : > { %v2485_v20 = vadd.f32 %v2484_v41, %v2454_v59 }
 0x2ca   : > { %v3838_v27 = vpop.f32.mrb[14].mxu0 }
 0x2cb   : > { %v2285_v10 = vadd.f32 %v3838_v27, %v4953_v47  ;;  %v2279_v14 = vpop.f32.mrb[15].mxu0 }
 0x2cc   : > { %v2280_v9 = vadd.f32 %v4953_v47, %v2279_v14 }
 0x2cd   : > { %v2383_v48 = vmax.f32 %v2285_v10, 0.0 }
 0x2ce   : > { %v2382_v23 = vmax.f32 %v2280_v9, 0.0 }
 0x2cf   : > { %2529 = vst [vmem:[%s4964_s17 + $0x78] sm:$0xff] %v2383_v48  ;;  %v2456_v15 = vmul.f32 %v2383_v48, %v2383_v48 }
 0x2d0   : > { %v2414_v33 = vadd.f32 %v2413_v49, %v2382_v23  ;;  %v2455_v58 = vmul.f32 %v2382_v23, %v2382_v23  ;;  %2528 = vst [vmem:[%s4964_s17 + $0x70] sm:$0xff] %v2382_v23 }
 0x2d2   : > { %v2486_v3 = vadd.f32 %v2485_v20, %v2455_v58  ;;  %v2415_v6 = vadd.f32 %v2414_v33, %v2383_v48 }
 0x2d4   : > { %v2487_v61 = vadd.f32 %v2486_v3, %v2456_v15 }
 0x2e2   : > { %v3841_v34 = vpop.f32.mrb[0].mxu1 }
 0x2e3   : > { %v2295_v55 = vadd.f32 %v3841_v34, %v4953_v47  ;;  %v2289_v40 = vpop.f32.mrb[1].mxu1 }
 0x2e4   : > { %v2290_v43 = vadd.f32 %v4953_v47, %v2289_v40 }
 0x2e5   : > { %v2385_v35 = vmax.f32 %v2295_v55, 0.0 }
 0x2e6   : > { %v2384_v13 = vmax.f32 %v2290_v43, 0.0 }
 0x2e7   : > { %2531 = vst [vmem:[%s4964_s17 + $0x88] sm:$0xff] %v2385_v35  ;;  %v2458_v52 = vmul.f32 %v2385_v35, %v2385_v35 }
 0x2e8   : > { %v2416_v17 = vadd.f32 %v2415_v6, %v2384_v13  ;;  %v2457_v28 = vmul.f32 %v2384_v13, %v2384_v13  ;;  %2530 = vst [vmem:[%s4964_s17 + $0x80] sm:$0xff] %v2384_v13 }
 0x2ea   : > { %v2488_v31 = vadd.f32 %v2487_v61, %v2457_v28  ;;  %v2417_v60 = vadd.f32 %v2416_v17, %v2385_v35 }
 0x2ec   : > { %v2489_v0 = vadd.f32 %v2488_v31, %v2458_v52 }
 0x2fa   : > { %v3844_v36 = vpop.f32.mrb[2].mxu1 }
 0x2fb   : > { %v2305_v42 = vadd.f32 %v3844_v36, %v4953_v47  ;;  %v2299_v5 = vpop.f32.mrb[3].mxu1 }
 0x2fc   : > { %v2300_v8 = vadd.f32 %v4953_v47, %v2299_v5 }
 0x2fd   : > { %v2387_v38 = vmax.f32 %v2305_v42, 0.0 }
 0x2fe   : > { %v2386_v45 = vmax.f32 %v2300_v8, 0.0 }
 0x2ff   : > { %2533 = vst [vmem:[%s4964_s17 + $0x98] sm:$0xff] %v2387_v38  ;;  %v2460_v16 = vmul.f32 %v2387_v38, %v2387_v38 }
 0x300   : > { %v2418_v46 = vadd.f32 %v2417_v60, %v2386_v45  ;;  %v2459_v19 = vmul.f32 %v2386_v45, %v2386_v45  ;;  %2532 = vst [vmem:[%s4964_s17 + $0x90] sm:$0xff] %v2386_v45 }
 0x302   : > { %v2490_v53 = vadd.f32 %v2489_v0, %v2459_v19  ;;  %v2419_v63 = vadd.f32 %v2418_v46, %v2387_v38 }
 0x304   : > { %v2491_v62 = vadd.f32 %v2490_v53, %v2460_v16 }
 0x312   : > { %v3847_v2 = vpop.f32.mrb[4].mxu1 }
 0x313   : > { %v2315_v25 = vadd.f32 %v3847_v2, %v4953_v47  ;;  %v2309_v44 = vpop.f32.mrb[5].mxu1 }
 0x314   : > { %v2310_v22 = vadd.f32 %v4953_v47, %v2309_v44 }
 0x315   : > { %v2389_v51 = vmax.f32 %v2315_v25, 0.0 }
 0x316   : > { %v2388_v57 = vmax.f32 %v2310_v22, 0.0 }
 0x317   : > { %2535 = vst [vmem:[%s4964_s17 + $0xa8] sm:$0xff] %v2389_v51  ;;  %v2462_v39 = vmul.f32 %v2389_v51, %v2389_v51 }
 0x318   : > { %v2420_v30 = vadd.f32 %v2419_v63, %v2388_v57  ;;  %v2461_v18 = vmul.f32 %v2388_v57, %v2388_v57  ;;  %2534 = vst [vmem:[%s4964_s17 + $0xa0] sm:$0xff] %v2388_v57 }
 0x31a   : > { %v2492_v37 = vadd.f32 %v2491_v62, %v2461_v18  ;;  %v2421_v7 = vadd.f32 %v2420_v30, %v2389_v51 }
 0x31c   : > { %v2493_v11 = vadd.f32 %v2492_v37, %v2462_v39 }
 0x32a   : > { %v3850_v21 = vpop.f32.mrb[6].mxu1 }
 0x32b   : > { %v2325_v29 = vadd.f32 %v3850_v21, %v4953_v47  ;;  %v2319_v50 = vpop.f32.mrb[7].mxu1 }
 0x32c   : > { %v2320_v56 = vadd.f32 %v4953_v47, %v2319_v50 }
 0x32d   : > { %v2391_v54 = vmax.f32 %v2325_v29, 0.0 }
 0x32e   : > { %v2390_v1 = vmax.f32 %v2320_v56, 0.0 }
 0x32f   : > { %2537 = vst [vmem:[%s4964_s17 + $0xb8] sm:$0xff] %v2391_v54  ;;  %v2464_v4 = vmul.f32 %v2391_v54, %v2391_v54 }
 0x330   : > { %v2422_v12 = vadd.f32 %v2421_v7, %v2390_v1  ;;  %v2463_v24 = vmul.f32 %v2390_v1, %v2390_v1  ;;  %2536 = vst [vmem:[%s4964_s17 + $0xb0] sm:$0xff] %v2390_v1 }
 0x332   : > { %v2494_v59 = vadd.f32 %v2493_v11, %v2463_v24  ;;  %v2423_v26 = vadd.f32 %v2422_v12, %v2391_v54  ;;  %v2440_v24 = vld [vmem:[#allocation6] sm:$0x1] }
 0x334   : > { %v2495_v32 = vadd.f32 %v2494_v59, %v2464_v4 }
 0x342   : > { %v3853_v41 = vpop.f32.mrb[8].mxu1 }
 0x343   : > { %v2335_v49 = vadd.f32 %v3853_v41, %v4953_v47  ;;  %v2329_v20 = vpop.f32.mrb[9].mxu1 }
 0x344   : > { %v2330_v27 = vadd.f32 %v4953_v47, %v2329_v20 }
 0x345   : > { %v2393_v10 = vmax.f32 %v2335_v49, 0.0 }
 0x346   : > { %v2392_v14 = vmax.f32 %v2330_v27, 0.0 }
 0x347   : > { %2539 = vst [vmem:[%s4964_s17 + $0xc8] sm:$0xff] %v2393_v10  ;;  %v2466_v9 = vmul.f32 %v2393_v10, %v2393_v10 }
 0x348   : > { %v2424_v48 = vadd.f32 %v2423_v26, %v2392_v14  ;;  %v2465_v23 = vmul.f32 %v2392_v14, %v2392_v14  ;;  %2538 = vst [vmem:[%s4964_s17 + $0xc0] sm:$0xff] %v2392_v14 }
 0x34a   : > { %v2496_v15 = vadd.f32 %v2495_v32, %v2465_v23  ;;  %v2425_v33 = vadd.f32 %v2424_v48, %v2393_v10 }
 0x34c   : > { %v2497_v58 = vadd.f32 %v2496_v15, %v2466_v9 }
 0x35a   : > { %v3856_v3 = vpop.f32.mrb[10].mxu1 }
 0x35b   : > { %v2345_v6 = vadd.f32 %v3856_v3, %v4953_v47  ;;  %v2339_v61 = vpop.f32.mrb[11].mxu1 }
 0x35c   : > { %v2340_v34 = vadd.f32 %v4953_v47, %v2339_v61 }
 0x35d   : > { %v2395_v55 = vmax.f32 %v2345_v6, 0.0 }
 0x35e   : > { %v2394_v40 = vmax.f32 %v2340_v34, 0.0 }
 0x35f   : > { %2541 = vst [vmem:[%s4964_s17 + $0xd8] sm:$0xff] %v2395_v55  ;;  %v2468_v43 = vmul.f32 %v2395_v55, %v2395_v55 }
 0x360   : > { %v2426_v35 = vadd.f32 %v2425_v33, %v2394_v40  ;;  %v2467_v13 = vmul.f32 %v2394_v40, %v2394_v40  ;;  %2540 = vst [vmem:[%s4964_s17 + $0xd0] sm:$0xff] %v2394_v40 }
 0x362   : > { %v2498_v52 = vadd.f32 %v2497_v58, %v2467_v13  ;;  %v2427_v17 = vadd.f32 %v2426_v35, %v2395_v55 }
 0x364   : > { %v2499_v28 = vadd.f32 %v2498_v52, %v2468_v43 }
 0x372   : > { %v3859_v31 = vpop.f32.mrb[12].mxu1 }
 0x373   : > { %v2355_v60 = vadd.f32 %v3859_v31, %v4953_v47  ;;  %v2349_v0 = vpop.f32.mrb[13].mxu1 }
 0x374   : > { %v2350_v36 = vadd.f32 %v4953_v47, %v2349_v0 }
 0x375   : > { %v2397_v42 = vmax.f32 %v2355_v60, 0.0 }
 0x376   : > { %v2396_v5 = vmax.f32 %v2350_v36, 0.0 }
 0x377   : > { %2543 = vst [vmem:[%s4964_s17 + $0xe8] sm:$0xff] %v2397_v42  ;;  %v2470_v8 = vmul.f32 %v2397_v42, %v2397_v42 }
 0x378   : > { %v2428_v38 = vadd.f32 %v2427_v17, %v2396_v5  ;;  %v2469_v45 = vmul.f32 %v2396_v5, %v2396_v5  ;;  %2542 = vst [vmem:[%s4964_s17 + $0xe0] sm:$0xff] %v2396_v5 }
 0x37a   : > { %v2500_v16 = vadd.f32 %v2499_v28, %v2469_v45  ;;  %v2429_v46 = vadd.f32 %v2428_v38, %v2397_v42 }
 0x37c   : > { %v2501_v19 = vadd.f32 %v2500_v16, %v2470_v8 }
 0x385   : > { %v3862_v53 = vpop.f32.mrb[14].mxu1 }
 0x386   : > { %v2365_v63 = vadd.f32 %v3862_v53, %v4953_v47  ;;  %v2359_v62 = vpop.f32.mrb[15].mxu1 }
 0x387   : > { %v2360_v2 = vadd.f32 %v4953_v47, %v2359_v62  ;;  %v2400_v47 = vld [vmem:[#allocation5] sm:$0x1] }
 0x388   : > { %v2399_v25 = vmax.f32 %v2365_v63, 0.0 }
 0x389   : > { %v2398_v44 = vmax.f32 %v2360_v2, 0.0 }
 0x38a   : > { %2545 = vst [vmem:[%s4964_s17 + $0xf8] sm:$0xff] %v2399_v25  ;;  %v2472_v57 = vmul.f32 %v2399_v25, %v2399_v25 }
 0x38b   : > { %v2430_v22 = vadd.f32 %v2429_v46, %v2398_v44  ;;  %v2471_v51 = vmul.f32 %v2398_v44, %v2398_v44  ;;  %2544 = vst [vmem:[%s4964_s17 + $0xf0] sm:$0xff] %v2398_v44 }
 0x38d   : > { %v2431_v39 = vadd.f32 %v2430_v22, %v2399_v25  ;;  %v2502_v30 = vadd.f32 %v2501_v19, %v2471_v51 }
 0x38f   : > { %v2432_v18 = vrot.slane %v2431_v39, 4  ;;  %v2503_v37 = vadd.f32 %v2502_v30, %v2472_v57 }
 0x391   : > { %v2433_v7 = vadd.f32 %v2432_v18, %v2431_v39  ;;  %v2504_v11 = vrot.slane %v2503_v37, 4 }
 0x393   : > { %v2434_v21 = vrot.slane %v2433_v7, 2  ;;  %v2505_v29 = vadd.f32 %v2504_v11, %v2503_v37 }
 0x395   : > { %v2435_v50 = vadd.f32 %v2434_v21, %v2433_v7  ;;  %v2506_v56 = vrot.slane %v2505_v29, 2 }
 0x397   : > { %v2436_v54 = vrot.slane %v2435_v50, 1  ;;  %v2507_v1 = vadd.f32 %v2506_v56, %v2505_v29 }
 0x399   : > { %v2437_v4 = vadd.f32 %v2436_v54, %v2435_v50  ;;  %v2508_v12 = vrot.slane %v2507_v1, 1 }
 0x39b   : > { %v2438_v59 = vadd.f32 %v2437_v4, %v2400_v47  ;;  %v2509_v26 = vadd.f32 %v2508_v12, %v2507_v1 }
 0x39d   : > { %2439 = vst [vmem:[#allocation5] sm:$0x1] %v2438_v59  ;;  %v2510_v32 = vadd.f32 %v2509_v26, %v2440_v24 }
 0x39f   : > { %2511 = vst [vmem:[#allocation6] sm:$0x1] %v2510_v32 }
 0x3a0 PF: > { %p3759_p11 = scmp.ne.s32.totalorder %s3955_s19, 1 }
 0x3a2   : > { %2549 = sbr.rel (%p3759_p11) target bundleno = 1139 (0x473), region = 52 }
 0x3a9   : > { %p3760_p12 = scmp.ne.s32.totalorder %s3951_s18, 0 }
 0x3aa   : > { %v2553_v41 = vld [vmem:[#allocation5] sm:$0x1] (!%p3760_p12)  ;;  %v2555_v49 = vld [vmem:[#allocation6] sm:$0x1] (!%p3760_p12)  ;;  %v2559_v48 = vld [vmem:[%s5871_s3] sm:$0x1] (!%p3760_p12) }
 0x3ab   : > { %2552 = sbr.rel (%p3760_p12) target bundleno = 965 (0x3c5), region = 56  ;;  %v2554_v20 = vmul.f32 (!%p3760_p12), 0.001953125, %v2553_v41  ;;  %v2556_v27 = vmul.f32 (!%p3760_p12), 0.001953125, %v2555_v49  ;;  %v2564_v33 = vld [vmem:[%s5872_s4] sm:$0x1] (!%p3760_p12) }
 0x3ad   : > { %v2557_v10 = vmul.f32 (!%p3760_p12), %v2554_v20, %v2554_v20 }
 0x3af   : > { %v2558_v14 = vsub.f32 (!%p3760_p12), %v2556_v27, %v2557_v10 }
 0x3b1   : > { %v2560_v9 = vadd.f32 (!%p3760_p12), 1e-05, %v2558_v14 }
 0x3b3   : > { %3927 = vrsqrt.f32 %v2560_v9 }
 0x3bd   : > { %v3928_v23 = vpop.eup %3927 }
 0x3be   : > { %v2562_v15 = vmul.f32 %v3928_v23, %v2559_v48 }
 0x3c0   : > { %2563 = vst [vmem:[#allocation7] sm:$0x1] %v2562_v15  ;;  %v2565_v58 = vmul.f32 %v2562_v15, %v2554_v20 }
 0x3c2   : > { %v2566_v3 = vsub.f32 %v2564_v33, %v2565_v58 }
 0x3c4   : > { %2567 = vst [vmem:[#allocation8] sm:$0x1] %v2566_v3 }
 0x3c5 PF: > { %s3761_s26 = sshll.u32 %s3951_s18, 8  ;;  %v2716_v61 = vlaneseq  ;;  %v3978_v35 = vmov 1983009808   ;;  %vm3048_vm13 = vcmask 1041408   ;;  %vm3561_vm14 = vcmask 1041409  }
 0x3c6   : > { %s5117_s27 = scalar_lea.vmem [#allocation4], %s3761_s26  ;;  %v5122_v13 = vunpack.c.l.s4 %v3978_v35  ;;  %vm3563_vm15 = vcmask 1042434   ;;  %vm3565_vm0 = vcmask 1043459   ;;  %vm3567_vm1 = vcmask 1044484  }
 0x3c7   : > { %v5113_v6 = vld [vmem:[#allocation7] ss:$0 sm:$0xff]  ;;  %v2570_v55 = vld [vmem:[%s5117_s27] sm:$0xff]  ;;  %v2571_v40 = vld [vmem:[%s5117_s27 + $0x8] sm:$0xff]  ;;  %v5135_v45 = vshrl.u32 %v2716_v61, 7  ;;  %vm3569_vm2 = vcmask 1045509  }
 0x3c8   : > { %v2572_v43 = vld [vmem:[%s5117_s27 + $0x10] sm:$0xff]  ;;  %v2573_v52 = vld [vmem:[%s5117_s27 + $0x18] sm:$0xff]  ;;  %v2574_v17 = vld [vmem:[%s5117_s27 + $0x20] sm:$0xff]  ;;  %v2609_v31 = vmul.f32 %v5113_v6, %v2570_v55  ;;  %v2610_v60 = vmul.f32 %v5113_v6, %v2571_v40  ;;  %v2715_v2 = vunpack.c.0.s8 %v5122_v13  ;;  %vm3571_vm3 = vcmask 1046534  }
 0x3c9   : > { %v2575_v28 = vld [vmem:[%s5117_s27 + $0x28] sm:$0xff]  ;;  %v2576_v0 = vld [vmem:[%s5117_s27 + $0x30] sm:$0xff]  ;;  %v2577_v36 = vld [vmem:[%s5117_s27 + $0x38] sm:$0xff]  ;;  %v2611_v5 = vmul.f32 %v5113_v6, %v2572_v43  ;;  %v2612_v8 = vmul.f32 %v5113_v6, %v2573_v52  ;;  %v2613_v38 = vmul.f32 %v5113_v6, %v2574_v17  ;;  %vm3573_vm4 = vcmask 1047559  }
 0x3ca   : > { %v2578_v42 = vld [vmem:[%s5117_s27 + $0x40] sm:$0xff]  ;;  %v2579_v16 = vld [vmem:[%s5117_s27 + $0x48] sm:$0xff]  ;;  %v2580_v46 = vld [vmem:[%s5117_s27 + $0x50] sm:$0xff]  ;;  %v2614_v53 = vmul.f32 %v5113_v6, %v2575_v28  ;;  %v2615_v63 = vmul.f32 %v5113_v6, %v2576_v0  ;;  %v2616_v62 = vmul.f32 %v5113_v6, %v2577_v36 }
 0x3cb   : > { %v5115_v34 = vld [vmem:[#allocation8] ss:$0 sm:$0xff]  ;;  %v2581_v19 = vld [vmem:[%s5117_s27 + $0x58] sm:$0xff]  ;;  %v2582_v25 = vld [vmem:[%s5117_s27 + $0x60] sm:$0xff]  ;;  %v2617_v51 = vmul.f32 %v5113_v6, %v2578_v42  ;;  %v2618_v57 = vmul.f32 %v5113_v6, %v2579_v16  ;;  %v2619_v39 = vmul.f32 %v5113_v6, %v2580_v46 }
 0x3cc   : > { %v2583_v44 = vld [vmem:[%s5117_s27 + $0x68] sm:$0xff]  ;;  %v2584_v22 = vld [vmem:[%s5117_s27 + $0x70] sm:$0xff]  ;;  %v5151_v30 = vadd.f32 %v5115_v34, %v2609_v31  ;;  %v2585_v18 = vld [vmem:[%s5117_s27 + $0x78] sm:$0xff]  ;;  %v2620_v11 = vmul.f32 %v5113_v6, %v2581_v19  ;;  %v2621_v21 = vmul.f32 %v5113_v6, %v2582_v25  ;;  %v5160_v50 = vadd.f32 %v5115_v34, %v2610_v60 }
 0x3cd   : > { %v2586_v37 = vld [vmem:[%s5117_s27 + $0x80] sm:$0xff]  ;;  %v2587_v7 = vld [vmem:[%s5117_s27 + $0x88] sm:$0xff]  ;;  %v2622_v29 = vmul.f32 %v5113_v6, %v2583_v44  ;;  %v2588_v56 = vld [vmem:[%s5117_s27 + $0x90] sm:$0xff]  ;;  %v2623_v47 = vmul.f32 %v5113_v6, %v2584_v22  ;;  %v2624_v4 = vmul.f32 %v5113_v6, %v2585_v18  ;;  %v2650_v24 = vadd.f32 %v5115_v34, %v2611_v5 }
 0x3ce   : > { %v2589_v54 = vld [vmem:[%s5117_s27 + $0x98] sm:$0xff]  ;;  %v2590_v1 = vld [vmem:[%s5117_s27 + $0xa0] sm:$0xff]  ;;  %v2625_v12 = vmul.f32 %v5113_v6, %v2586_v37  ;;  %v2591_v59 = vld [vmem:[%s5117_s27 + $0xa8] sm:$0xff]  ;;  %v2626_v41 = vmul.f32 %v5113_v6, %v2587_v7  ;;  %v2627_v49 = vmul.f32 %v5113_v6, %v2588_v56  ;;  %v2651_v27 = vadd.f32 %v5115_v34, %v2612_v8 }
 0x3cf   : > { %v2592_v26 = vld [vmem:[%s5117_s27 + $0xb0] sm:$0xff]  ;;  %v2593_v32 = vld [vmem:[%s5117_s27 + $0xb8] sm:$0xff]  ;;  %v2628_v20 = vmul.f32 %v5113_v6, %v2589_v54  ;;  %v2594_v10 = vld [vmem:[%s5117_s27 + $0xc0] sm:$0xff]  ;;  %v2629_v48 = vmul.f32 %v5113_v6, %v2590_v1  ;;  %v2630_v23 = vmul.f32 %v5113_v6, %v2591_v59  ;;  %v2652_v33 = vadd.f32 %v5115_v34, %v2613_v38 }
 0x3d0   : > { %v2595_v14 = vld [vmem:[%s5117_s27 + $0xc8] sm:$0xff]  ;;  %v2596_v9 = vld [vmem:[%s5117_s27 + $0xd0] sm:$0xff]  ;;  %v2631_v15 = vmul.f32 %v5113_v6, %v2592_v26  ;;  %v2597_v58 = vld [vmem:[%s5117_s27 + $0xd8] sm:$0xff]  ;;  %v2632_v55 = vmul.f32 %v5113_v6, %v2593_v32  ;;  %v2633_v40 = vmul.f32 %v5113_v6, %v2594_v10  ;;  %v2653_v35 = vadd.f32 %v5115_v34, %v2614_v53 }
 0x3d1   : > { %v2598_v3 = vld [vmem:[%s5117_s27 + $0xe0] sm:$0xff]  ;;  %v2599_v61 = vld [vmem:[%s5117_s27 + $0xe8] sm:$0xff]  ;;  %v2634_v43 = vmul.f32 %v5113_v6, %v2595_v14  ;;  %v2600_v52 = vld [vmem:[%s5117_s27 + $0xf0] sm:$0xff]  ;;  %v2635_v28 = vmul.f32 %v5113_v6, %v2596_v9  ;;  %v2636_v31 = vmul.f32 %v5113_v6, %v2597_v58  ;;  %v2654_v0 = vadd.f32 %v5115_v34, %v2615_v63 }
 0x3d2   : > { %v2601_v17 = vld [vmem:[%s5117_s27 + $0xf8] sm:$0xff]  ;;  %v2637_v60 = vmul.f32 %v5113_v6, %v2598_v3  ;;  %v2638_v36 = vmul.f32 %v5113_v6, %v2599_v61  ;;  %v2639_v42 = vmul.f32 %v5113_v6, %v2600_v52  ;;  %v2655_v8 = vadd.f32 %v5115_v34, %v2616_v62 }
 0x3d3   : > { %v2640_v5 = vmul.f32 %v5113_v6, %v2601_v17  ;;  %v2656_v38 = vadd.f32 %v5115_v34, %v2617_v51  ;;  %v2657_v16 = vadd.f32 %v5115_v34, %v2618_v57  ;;  %v2658_v46 = vadd.f32 %v5115_v34, %v2619_v39 }
 0x3d4   : > { %v2659_v19 = vadd.f32 %v5115_v34, %v2620_v11  ;;  %v2660_v53 = vadd.f32 %v5115_v34, %v2621_v21  ;;  %v2661_v63 = vadd.f32 %v5115_v34, %v2622_v29  ;;  %v2662_v25 = vadd.f32 %v5115_v34, %v2623_v47 }
 0x3d5   : > { %v2663_v44 = vadd.f32 %v5115_v34, %v2624_v4  ;;  %v2664_v6 = vadd.f32 %v5115_v34, %v2625_v12  ;;  %v2665_v62 = vadd.f32 %v5115_v34, %v2626_v41  ;;  %v2666_v22 = vadd.f32 %v5115_v34, %v2627_v49 }
 0x3d6   : > { %v2667_v51 = vadd.f32 %v5115_v34, %v2628_v20  ;;  %v2668_v57 = vadd.f32 %v5115_v34, %v2629_v48  ;;  %v2669_v39 = vadd.f32 %v5115_v34, %v2630_v23  ;;  %v2670_v18 = vadd.f32 %v5115_v34, %v2631_v15 }
 0x3d7   : > { %v2671_v37 = vadd.f32 %v5115_v34, %v2632_v55  ;;  %v2672_v7 = vadd.f32 %v5115_v34, %v2633_v40  ;;  %v2673_v11 = vadd.f32 %v5115_v34, %v2634_v43  ;;  %v2674_v21 = vadd.f32 %v5115_v34, %v2635_v28 }
 0x3d8   : > { %v2675_v29 = vadd.f32 %v5115_v34, %v2636_v31  ;;  %v2676_v56 = vadd.f32 %v5115_v34, %v2637_v60  ;;  %v2677_v54 = vadd.f32 %v5115_v34, %v2638_v36  ;;  %v2678_v1 = vadd.f32 %v5115_v34, %v2639_v42 }
 0x3d9   : > { %v2680_v47 = vmax.f32 %v5151_v30, %v2650_v24  ;;  %v2681_v4 = vmax.f32 %v5160_v50, %v2651_v27  ;;  %v2682_v12 = vmax.f32 %v2652_v33, %v2654_v0  ;;  %v2683_v59 = vmax.f32 %v2653_v35, %v2655_v8 }
 0x3da   : > { %v2684_v26 = vmax.f32 %v2656_v38, %v2658_v46  ;;  %v2679_v32 = vadd.f32 %v5115_v34, %v2640_v5  ;;  %v2685_v41 = vmax.f32 %v2657_v16, %v2659_v19  ;;  %v2686_v49 = vmax.f32 %v2660_v53, %v2662_v25 }
 0x3db   : > { %v2687_v20 = vmax.f32 %v2661_v63, %v2663_v44  ;;  %v2688_v10 = vmax.f32 %v2664_v6, %v2666_v22  ;;  %v2689_v14 = vmax.f32 %v2665_v62, %v2667_v51  ;;  %v2690_v9 = vmax.f32 %v2668_v57, %v2670_v18 }
 0x3dc   : > { %v5226_v48 = vmax.f32 %v2669_v39, %v2671_v37  ;;  %v5228_v23 = vmax.f32 %v2672_v7, %v2674_v21  ;;  %v5230_v15 = vmax.f32 %v2673_v11, %v2675_v29  ;;  %v2712_v30 = vcombine.high %v2680_v47, %v2680_v47 }
 0x3dd   : > { %v5235_v50 = vsub.s32 %v2715_v2, %v5135_v45  ;;  %v2729_v24 = vcombine.high %v2681_v4, %v2681_v4  ;;  %v2746_v34 = vcombine.high %v2682_v12, %v2682_v12  ;;  %v2763_v27 = vcombine.high %v2683_v59, %v2683_v59 }
 0x3de   : > { %v2780_v33 = vcombine.high %v2684_v26, %v2684_v26  ;;  %v5249_v40 = vmax.f32 %v2676_v56, %v2678_v1  ;;  %v5251_v13 = vmax.f32 %v2677_v54, %v2679_v32  ;;  %v2797_v5 = vcombine.high %v2685_v41, %v2685_v41 }
 0x3df   : > { %v5238_v58 = vrot.slane %v2680_v47, %v5235_v50  ;;  %v5241_v3 = vrot.slane %v2712_v30, %v5235_v50  ;;  %v5244_v61 = vrot.slane %v2681_v4, %v5235_v50  ;;  %v5247_v55 = vrot.slane %v2682_v12, %v5235_v50 }
 0x3e0   : > { %v5254_v45 = vrot.slane %v2729_v24, %v5235_v50  ;;  %v5257_v2 = vrot.slane %v2746_v34, %v5235_v50  ;;  %v5264_v52 = vrot.slane %v2683_v59, %v5235_v50  ;;  %v5267_v17 = vrot.slane %v2763_v27, %v5235_v50 }
 0x3e1   : > { %v2727_v43 = vcombine.high %v5238_v58, %v5238_v58  ;;  %v2728_v35 = vcombine.high %v5241_v3, %v5241_v3  ;;  %v2744_v28 = vcombine.high %v5244_v61, %v5244_v61  ;;  %v2761_v60 = vcombine.high %v5247_v55, %v5247_v55 }
 0x3e2   : > { %v2745_v31 = vcombine.high %v5254_v45, %v5254_v45  ;;  %v2762_v0 = vcombine.high %v5257_v2, %v5257_v2  ;;  %v5278_v36 = vrot.slane %v2684_v26, %v5235_v50  ;;  %v5281_v42 = vrot.slane %v2780_v33, %v5235_v50 }
 0x3e3   : > { %v5284_v8 = vrot.slane %v2685_v41, %v5235_v50  ;;  %v2814_v38 = vcombine.high %v2686_v49, %v2686_v49  ;;  %v5287_v16 = vrot.slane %v2686_v49, %v5235_v50  ;;  %v2831_v46 = vcombine.high %v2687_v20, %v2687_v20 }
 0x3e4   : > { %v5290_v19 = vrot.slane %v2687_v20, %v5235_v50  ;;  %v2778_v53 = vcombine.high %v5264_v52, %v5264_v52  ;;  %v2779_v63 = vcombine.high %v5267_v17, %v5267_v17  ;;  %v2795_v25 = vcombine.high %v5278_v36, %v5278_v36 }
 0x3e5   : > { %v5299_v44 = vrot.slane %v2797_v5, %v5235_v50  ;;  %v5306_v22 = vrot.slane %v2814_v38, %v5235_v50  ;;  %v5309_v51 = vrot.slane %v2831_v46, %v5235_v50  ;;  %v2848_v39 = vcombine.high %v2688_v10, %v2688_v10 }
 0x3e6   : > { %v5314_v18 = vrot.slane %v2688_v10, %v5235_v50  ;;  %v2865_v37 = vcombine.high %v2689_v14, %v2689_v14  ;;  %v5321_v21 = vrot.slane %v2689_v14, %v5235_v50  ;;  %v2882_v29 = vcombine.high %v2690_v9, %v2690_v9 }
 0x3e7   : > { %v5326_v54 = vrot.slane %v2848_v39, %v5235_v50  ;;  %v5332_v47 = vrot.slane %v2690_v9, %v5235_v50  ;;  %v2899_v59 = vcombine.high %v5226_v48, %v5226_v48  ;;  %v5343_v26 = vrot.slane %v5226_v48, %v5235_v50 }
 0x3e8   : > { %v5329_v1 = vrot.slane %v2865_v37, %v5235_v50  ;;  %v5337_v12 = vrot.slane %v2882_v29, %v5235_v50  ;;  %v2916_v20 = vcombine.high %v5228_v23, %v5228_v23  ;;  %v5362_v48 = vrot.slane %v5228_v23, %v5235_v50 }
 0x3e9   : > { %v5358_v9 = vrot.slane %v2899_v59, %v5235_v50  ;;  %v2933_v24 = vcombine.high %v5230_v15, %v5230_v15  ;;  %v5371_v34 = vrot.slane %v5230_v15, %v5235_v50  ;;  %v2950_v27 = vcombine.high %v5249_v40, %v5249_v40 }
 0x3ea   : > { %v5365_v30 = vrot.slane %v2916_v20, %v5235_v50  ;;  %v5381_v5 = vrot.slane %v5249_v40, %v5235_v50  ;;  %v2967_v38 = vcombine.high %v5251_v13, %v5251_v13  ;;  %v3049_v20 = vsel %vm3048_vm13, %v5238_v58, -inf }
 0x3eb   : > { %v5390_v39 = vrot.slane %v2933_v24, %v5235_v50  ;;  %v5393_v37 = vrot.slane %v2950_v27, %v5235_v50  ;;  %v5405_v46 = vrot.slane %v5251_v13, %v5235_v50  ;;  %v3050_v27 = vrot.slane %v3049_v20, 4 }
 0x3ec   : > { %v5408_v24 = vrot.slane %v2967_v38, %v5235_v50  ;;  %v3056_v29 = vsel %vm3048_vm13, %v2727_v43, -inf  ;;  %v3063_v13 = vsel %vm3048_vm13, %v5241_v3, -inf  ;;  %v3070_v50 = vsel %vm3048_vm13, %v2728_v35, -inf }
 0x3ed   : > { %v3057_v15 = vrot.slane %v3056_v29, 4  ;;  %v3051_v23 = vmax.f32 %v3049_v20, %v3050_v27  ;;  %v3064_v33 = vrot.slane %v3063_v13, 4  ;;  %v3077_v58 = vsel %vm3048_vm13, %v5244_v61, -inf }
 0x3ee   : > { %v3071_v38 = vrot.slane %v3070_v50, 4  ;;  %v3078_v40 = vrot.slane %v3077_v58, 4  ;;  %v3084_v59 = vsel %vm3048_vm13, %v2744_v28, -inf  ;;  %v3091_v27 = vsel %vm3048_vm13, %v5254_v45, -inf }
 0x3ef   : > { %v3058_v43 = vmax.f32 %v3056_v29, %v3057_v15  ;;  %v3052_v14 = vrot.slane %v3051_v23, 2  ;;  %v3065_v10 = vmax.f32 %v3063_v13, %v3064_v33  ;;  %v3085_v20 = vrot.slane %v3084_v59, 4 }
 0x3f0   : > { %v3072_v49 = vmax.f32 %v3070_v50, %v3071_v38  ;;  %v3079_v35 = vmax.f32 %v3077_v58, %v3078_v40  ;;  %v3092_v41 = vrot.slane %v3091_v27, 4  ;;  %v3098_v61 = vsel %vm3048_vm13, %v2745_v31, -inf }
 0x3f1   : > { %v3059_v3 = vrot.slane %v3058_v43, 2  ;;  %v3053_v32 = vmax.f32 %v3051_v23, %v3052_v14  ;;  %v3066_v4 = vrot.slane %v3065_v10, 2  ;;  %v3086_v15 = vmax.f32 %v3084_v59, %v3085_v20 }
 0x3f2   : > { %v3073_v28 = vrot.slane %v3072_v49, 2  ;;  %v3080_v11 = vrot.slane %v3079_v35, 2  ;;  %v3093_v33 = vmax.f32 %v3091_v27, %v3092_v41  ;;  %v3099_v7 = vrot.slane %v3098_v61, 4 }
 0x3f3   : > { %v3060_v29 = vmax.f32 %v3058_v43, %v3059_v3  ;;  %v3054_v13 = vrot.slane %v3053_v32, 1  ;;  %v3067_v56 = vmax.f32 %v3065_v10, %v3066_v4  ;;  %v3087_v57 = vrot.slane %v3086_v15, 2 }
 0x3f4   : > { %v3074_v50 = vmax.f32 %v3072_v49, %v3073_v28  ;;  %v3081_v40 = vmax.f32 %v3079_v35, %v3080_v11  ;;  %v3094_v58 = vrot.slane %v3093_v33, 2  ;;  %v3100_v45 = vmax.f32 %v3098_v61, %v3099_v7 }
 0x3f5   : > { %v3061_v62 = vrot.slane %v3060_v29, 1  ;;  %v3068_v23 = vrot.slane %v3067_v56, 1  ;;  %v3088_v59 = vmax.f32 %v3086_v15, %v3087_v57  ;;  %v5440_v20 = vmax.f32 %v3053_v32, %v3054_v13 }
 0x3f6   : > { %v3075_v43 = vrot.slane %v3074_v50, 1  ;;  %v3082_v38 = vrot.slane %v3081_v40, 1  ;;  %v3095_v41 = vmax.f32 %v3093_v33, %v3094_v58  ;;  %v3101_v10 = vrot.slane %v3100_v45, 2 }
 0x3f7   : > { %v3089_v4 = vrot.slane %v3088_v59, 1  ;;  %v3105_v11 = vsel %vm3048_vm13, %v5247_v55, -inf  ;;  %v5444_v49 = vmax.f32 %v3060_v29, %v3061_v62  ;;  %v5446_v27 = vmax.f32 %v3067_v56, %v3068_v23 }
 0x3f8   : > { %v5448_v3 = vmax.f32 %v3074_v50, %v3075_v43  ;;  %v3106_v57 = vrot.slane %v3105_v11, 4  ;;  %v5450_v7 = vmax.f32 %v3081_v40, %v3082_v38  ;;  %v3102_v35 = vmax.f32 %v3100_v45, %v3101_v10 }
 0x3f9   : > { %v3112_v32 = vsel %vm3048_vm13, %v2761_v60, -inf  ;;  %v3119_v15 = vsel %vm3048_vm13, %v5257_v2, -inf  ;;  %v3096_v61 = vrot.slane %v3095_v41, 1  ;;  %v5458_v56 = vmax.f32 %v3088_v59, %v3089_v4 }
 0x3fa   : > { %v3107_v28 = vmax.f32 %v3105_v11, %v3106_v57  ;;  %v3113_v62 = vrot.slane %v3112_v32, 4  ;;  %v3120_v29 = vrot.slane %v3119_v15, 4  ;;  %v3126_v33 = vsel %vm3048_vm13, %v2762_v0, -inf }
 0x3fb   : > { %v3133_v13 = vsel %vm3048_vm13, %v5264_v52, -inf  ;;  %v3140_v55 = vsel %vm3048_vm13, %v2778_v53, -inf  ;;  %v3127_v58 = vrot.slane %v3126_v33, 4  ;;  %v3103_v23 = vrot.slane %v3102_v35, 1 }
 0x3fc   : > { %v3108_v60 = vrot.slane %v3107_v28, 2  ;;  %v3114_v50 = vmax.f32 %v3112_v32, %v3113_v62  ;;  %v3121_v40 = vmax.f32 %v3119_v15, %v3120_v29  ;;  %v3134_v59 = vrot.slane %v3133_v13, 4 }
 0x3fd   : > { %v3141_v45 = vrot.slane %v3140_v55, 4  ;;  %v3147_v2 = vsel %vm3048_vm13, %v5267_v17, -inf  ;;  %v3128_v4 = vmax.f32 %v3126_v33, %v3127_v58  ;;  %v3154_v52 = vsel %vm3048_vm13, %v2779_v63, -inf }
 0x3fe   : > { %v3109_v43 = vmax.f32 %v3107_v28, %v3108_v60  ;;  %v3115_v0 = vrot.slane %v3114_v50, 2  ;;  %v3122_v38 = vrot.slane %v3121_v40, 2  ;;  %v3135_v10 = vmax.f32 %v3133_v13, %v3134_v59 }
 0x3ff   : > { %v3142_v11 = vmax.f32 %v3140_v55, %v3141_v45  ;;  %v3148_v57 = vrot.slane %v3147_v2, 4  ;;  %v3129_v62 = vrot.slane %v3128_v4, 2  ;;  %v3155_v6 = vrot.slane %v3154_v52, 4 }
 0x400   : > { %v3110_v53 = vrot.slane %v3109_v43, 1  ;;  %v3116_v32 = vmax.f32 %v3114_v50, %v3115_v0  ;;  %v3123_v15 = vmax.f32 %v3121_v40, %v3122_v38  ;;  %v3136_v29 = vrot.slane %v3135_v10, 2 }
 0x401   : > { %v3143_v31 = vrot.slane %v3142_v11, 2  ;;  %v3149_v14 = vmax.f32 %v3147_v2, %v3148_v57  ;;  %v5476_v28 = vmax.f32 %v3095_v41, %v3096_v61  ;;  %v3130_v13 = vmax.f32 %v3128_v4, %v3129_v62 }
 0x402   : > { %v3117_v60 = vrot.slane %v3116_v32, 1  ;;  %v3124_v33 = vrot.slane %v3123_v15, 1  ;;  %v3137_v55 = vmax.f32 %v3135_v10, %v3136_v29  ;;  %v3156_v45 = vmax.f32 %v3154_v52, %v3155_v6 }
 0x403   : > { %v3144_v58 = vmax.f32 %v3142_v11, %v3143_v31  ;;  %v3150_v59 = vrot.slane %v3149_v14, 2  ;;  %v5478_v17 = vmax.f32 %v3102_v35, %v3103_v23  ;;  %v5480_v63 = vmax.f32 %v3109_v43, %v3110_v53 }
 0x404   : > { %v3131_v50 = vrot.slane %v3130_v13, 1  ;;  %v3161_v40 = vsel %vm3048_vm13, %v5278_v36, -inf  ;;  %v3138_v0 = vrot.slane %v3137_v55, 1  ;;  %v3157_v41 = vrot.slane %v3156_v45, 2 }
 0x405   : > { %5874 = vst [vmem:[#allocation9_spill] sm:$0xff] %v5478_v17  ;;  %v3145_v2 = vrot.slane %v3144_v58, 1  ;;  %v3151_v38 = vmax.f32 %v3149_v14, %v3150_v59  ;;  %v5484_v61 = vmax.f32 %v3116_v32, %v3117_v60  ;;  %v3162_v57 = vrot.slane %v3161_v40, 4 }
 0x406   : > { %v3168_v6 = vsel %vm3048_vm13, %v2795_v25, -inf  ;;  %v3175_v31 = vsel %vm3048_vm13, %v5281_v42, -inf  ;;  %v5492_v35 = vmax.f32 %v3123_v15, %v3124_v33  ;;  %v5494_v23 = vmax.f32 %v3130_v13, %v3131_v50 }
 0x407   : > { %v5496_v43 = vmax.f32 %v3137_v55, %v3138_v0  ;;  %v3158_v4 = vmax.f32 %v3156_v45, %v3157_v41  ;;  %v3163_v14 = vmax.f32 %v3161_v40, %v3162_v57  ;;  %v3169_v10 = vrot.slane %v3168_v6, 4 }
 0x408   : > { %5875 = vst [vmem:[#allocation10_spill] sm:$0xff] %v5492_v35  ;;  %5876 = vst [vmem:[#allocation11_spill] sm:$0xff] %v5494_v23  ;;  %v3176_v11 = vrot.slane %v3175_v31, 4  ;;  %v5878_v52 = vcombine.high %v5281_v42, %v5281_v42  ;;  %v5502_v53 = vmax.f32 %v3144_v58, %v3145_v2  ;;  %v3152_v25 = vrot.slane %v3151_v38, 1 }
 0x409   : > { %5877 = vst [vmem:[#allocation12_spill] sm:$0xff] %v5496_v43  ;;  %v3189_v15 = vsel %vm3048_vm13, %v5284_v8, -inf  ;;  %v3164_v62 = vrot.slane %v3163_v14, 2  ;;  %v3170_v29 = vmax.f32 %v3168_v6, %v3169_v10  ;;  %v3159_v13 = vrot.slane %v3158_v4, 1 }
 0x40a   : > { %v3182_v36 = vsel %vm3048_vm13, %v5878_v52, -inf  ;;  %5879 = vst [vmem:[#allocation13_spill] sm:$0xff] %v5502_v53  ;;  %v3177_v60 = vmax.f32 %v3175_v31, %v3176_v11  ;;  %v3190_v33 = vrot.slane %v3189_v15, 4  ;;  %v5880_v59 = vcombine.high %v5284_v8, %v5284_v8 }
 0x40b   : > { %v3183_v32 = vrot.slane %v3182_v36, 4  ;;  %v3203_v58 = vsel %vm3048_vm13, %v5299_v44, -inf  ;;  %v3165_v45 = vmax.f32 %v3163_v14, %v3164_v62  ;;  %v3171_v50 = vrot.slane %v3170_v29, 2 }
 0x40c   : > { %v3196_v42 = vsel %vm3048_vm13, %v5880_v59, -inf  ;;  %v3178_v40 = vrot.slane %v3177_v60, 2  ;;  %v3191_v0 = vmax.f32 %v3189_v15, %v3190_v33  ;;  %v3204_v57 = vrot.slane %v3203_v58, 4 }
 0x40d   : > { %v3184_v55 = vmax.f32 %v3182_v36, %v3183_v32  ;;  %v3197_v41 = vrot.slane %v3196_v42, 4  ;;  %v5881_v6 = vcombine.high %v5299_v44, %v5299_v44  ;;  %v3166_v10 = vrot.slane %v3165_v45, 1 }
 0x40e   : > { %v3172_v11 = vmax.f32 %v3170_v29, %v3171_v50  ;;  %v3179_v8 = vmax.f32 %v3177_v60, %v3178_v40  ;;  %v3192_v52 = vrot.slane %v3191_v0, 2  ;;  %v3205_v59 = vmax.f32 %v3203_v58, %v3204_v57 }
 0x40f   : > { %v3185_v2 = vrot.slane %v3184_v55, 2  ;;  %v3210_v31 = vsel %vm3048_vm13, %v5881_v6, -inf  ;;  %v3198_v32 = vmax.f32 %v3196_v42, %v3197_v41  ;;  %v5516_v14 = vmax.f32 %v3151_v38, %v3152_v25 }
 0x410   : > { %v3211_v53 = vrot.slane %v3210_v31, 4  ;;  %v3173_v62 = vrot.slane %v3172_v11, 1  ;;  %v3180_v15 = vrot.slane %v3179_v8, 1  ;;  %v3193_v33 = vmax.f32 %v3191_v0, %v3192_v52 }
 0x411   : > { %v3186_v36 = vmax.f32 %v3184_v55, %v3185_v2  ;;  %5882 = vst [vmem:[#allocation14_spill] sm:$0xff] %v5516_v14  ;;  %v3199_v23 = vrot.slane %v3198_v32, 2  ;;  %v3206_v17 = vrot.slane %v3205_v59, 2  ;;  %v5518_v44 = vmax.f32 %v3158_v4, %v3159_v13 }
 0x412   : > { %v3212_v35 = vmax.f32 %v3210_v31, %v3211_v53  ;;  %v5520_v6 = vmax.f32 %v3165_v45, %v3166_v10  ;;  %v5522_v29 = vmax.f32 %v3172_v11, %v3173_v62  ;;  %v3217_v60 = vsel %vm3048_vm13, %v5287_v16, -inf }
 0x413   : > { %v3187_v43 = vrot.slane %v3186_v36, 1  ;;  %5883 = vst [vmem:[#allocation15_spill] sm:$0xff] %v5518_v44  ;;  %v3194_v55 = vrot.slane %v3193_v33, 1  ;;  %v3200_v42 = vmax.f32 %v3198_v32, %v3199_v23  ;;  %v3207_v38 = vmax.f32 %v3205_v59, %v3206_v17 }
 0x414   : > { %v3213_v25 = vrot.slane %v3212_v35, 2  ;;  %v5526_v58 = vmax.f32 %v3179_v8, %v3180_v15  ;;  %v3218_v50 = vrot.slane %v3217_v60, 4  ;;  %v5884_v40 = vcombine.high %v5287_v16, %v5287_v16 }
 0x415   : > { %v3231_v53 = vsel %vm3048_vm13, %v5306_v22, -inf  ;;  %v5534_v13 = vmax.f32 %v3186_v36, %v3187_v43  ;;  %v3201_v45 = vrot.slane %v3200_v42, 1  ;;  %v5885_v17 = vcombine.high %v5306_v22, %v5306_v22 }
 0x416   : > { %v3224_v4 = vsel %vm3048_vm13, %v5884_v40, -inf  ;;  %v3214_v0 = vmax.f32 %v3212_v35, %v3213_v25  ;;  %v3219_v41 = vmax.f32 %v3217_v60, %v3218_v50  ;;  %v3232_v23 = vrot.slane %v3231_v53, 4 }
 0x417   : > { %v3225_v2 = vrot.slane %v3224_v4, 4  ;;  %v3238_v57 = vsel %vm3048_vm13, %v5885_v17, -inf  ;;  %v3245_v16 = vsel %vm3048_vm13, %v5290_v19, -inf  ;;  %v5542_v31 = vmax.f32 %v3193_v33, %v3194_v55 }
 0x418   : > { %v5544_v10 = vmax.f32 %v3200_v42, %v3201_v45  ;;  %v3208_v11 = vrot.slane %v3207_v38, 1  ;;  %v3220_v8 = vrot.slane %v3219_v41, 2  ;;  %v3233_v52 = vmax.f32 %v3231_v53, %v3232_v23 }
 0x419   : > { %v3226_v43 = vmax.f32 %v3224_v4, %v3225_v2  ;;  %v3239_v35 = vrot.slane %v3238_v57, 4  ;;  %v3246_v36 = vrot.slane %v3245_v16, 4  ;;  %v3215_v32 = vrot.slane %v3214_v0, 1 }
 0x41a   : > { %v5886_v22 = vcombine.high %v5290_v19, %v5290_v19  ;;  %v3259_v15 = vsel %vm3048_vm13, %v5309_v51, -inf  ;;  %v3221_v33 = vmax.f32 %v3219_v41, %v3220_v8  ;;  %v3234_v60 = vrot.slane %v3233_v52, 2 }
 0x41b   : > { %v3227_v59 = vrot.slane %v3226_v43, 2  ;;  %v3240_v55 = vmax.f32 %v3238_v57, %v3239_v35  ;;  %v3247_v42 = vmax.f32 %v3245_v16, %v3246_v36  ;;  %v3260_v40 = vrot.slane %v3259_v15, 4 }
 0x41c   : > { %v3252_v62 = vsel %vm3048_vm13, %v5886_v22, -inf  ;;  %v5887_v4 = vcombine.high %v5309_v51, %v5309_v51  ;;  %v3222_v45 = vrot.slane %v3221_v33, 1  ;;  %v3235_v2 = vmax.f32 %v3233_v52, %v3234_v60 }
 0x41d   : > { %v3228_v25 = vmax.f32 %v3226_v43, %v3227_v59  ;;  %v3253_v50 = vrot.slane %v3252_v62, 4  ;;  %v3241_v19 = vrot.slane %v3240_v55, 2  ;;  %v3248_v23 = vrot.slane %v3247_v42, 2 }
 0x41e   : > { %v3266_v53 = vsel %vm3048_vm13, %v5887_v4, -inf  ;;  %v5556_v17 = vmax.f32 %v3207_v38, %v3208_v11  ;;  %v3261_v44 = vmax.f32 %v3259_v15, %v3260_v40  ;;  %v3236_v57 = vrot.slane %v3235_v2, 1 }
 0x41f   : > { %v3254_v22 = vmax.f32 %v3252_v62, %v3253_v50  ;;  %v3267_v41 = vrot.slane %v3266_v53, 4  ;;  %v3229_v8 = vrot.slane %v3228_v25, 1  ;;  %v3242_v16 = vmax.f32 %v3240_v55, %v3241_v19 }
 0x420   : > { %5888 = vst [vmem:[#allocation16_spill] sm:$0xff] %v5556_v17  ;;  %v3249_v43 = vmax.f32 %v3247_v42, %v3248_v23  ;;  %v5558_v35 = vmax.f32 %v3214_v0, %v3215_v32  ;;  %v3262_v59 = vrot.slane %v3261_v44, 2  ;;  %v5560_v14 = vmax.f32 %v3221_v33, %v3222_v45 }
 0x421   : > { %v3255_v36 = vrot.slane %v3254_v22, 2  ;;  %v3268_v51 = vmax.f32 %v3266_v53, %v3267_v41  ;;  %v3243_v4 = vrot.slane %v3242_v16, 1  ;;  %v3273_v38 = vsel %vm3048_vm13, %v5314_v18, -inf }
 0x422   : > { %5889 = vst [vmem:[#allocation17_spill] sm:$0xff] %v5558_v35  ;;  %v3250_v52 = vrot.slane %v3249_v43, 1  ;;  %v3263_v62 = vmax.f32 %v3261_v44, %v3262_v59  ;;  %v3274_v60 = vrot.slane %v3273_v38, 4  ;;  %v5564_v50 = vmax.f32 %v3228_v25, %v3229_v8 }
 0x423   : > { %v3256_v11 = vmax.f32 %v3254_v22, %v3255_v36  ;;  %v3269_v15 = vrot.slane %v3268_v51, 2  ;;  %v5566_v55 = vmax.f32 %v3235_v2, %v3236_v57  ;;  %v5890_v0 = vcombine.high %v5314_v18, %v5314_v18 }
 0x424   : > { %v3287_v33 = vsel %vm3048_vm13, %v5326_v54, -inf  ;;  %v5574_v42 = vmax.f32 %v3242_v16, %v3243_v4  ;;  %v3275_v45 = vmax.f32 %v3273_v38, %v3274_v60  ;;  %v5892_v25 = vcombine.high %v5326_v54, %v5326_v54 }
 0x425   : > { %v3280_v32 = vsel %vm3048_vm13, %v5890_v0, -inf  ;;  %v3257_v40 = vrot.slane %v3256_v11, 1  ;;  %v3270_v53 = vmax.f32 %v3268_v51, %v3269_v15  ;;  %v3288_v19 = vrot.slane %v3287_v33, 4 }
 0x426   : > { %5891 = vst [vmem:[#allocation18_spill] sm:$0xff] %v5574_v42  ;;  %v3281_v44 = vrot.slane %v3280_v32, 4  ;;  %v3294_v2 = vsel %vm3048_vm13, %v5892_v25, -inf  ;;  %v3301_v18 = vsel %vm3048_vm13, %v5321_v21, -inf  ;;  %v5582_v23 = vmax.f32 %v3249_v43, %v3250_v52 }
 0x427   : > { %v5584_v22 = vmax.f32 %v3256_v11, %v3257_v40  ;;  %v3264_v41 = vrot.slane %v3263_v62, 1  ;;  %v3276_v8 = vrot.slane %v3275_v45, 2  ;;  %v3289_v16 = vmax.f32 %v3287_v33, %v3288_v19 }
 0x428   : > { %5893 = vst [vmem:[#allocation19_spill] sm:$0xff] %v5582_v23  ;;  %v3282_v57 = vmax.f32 %v3280_v32, %v3281_v44  ;;  %v3295_v36 = vrot.slane %v3294_v2, 4  ;;  %v3302_v59 = vrot.slane %v3301_v18, 4  ;;  %v3271_v51 = vrot.slane %v3270_v53, 1 }
 0x429   : > { %5894 = vst [vmem:[#allocation20_spill] sm:$0xff] %v5584_v22  ;;  %v3277_v4 = vmax.f32 %v3275_v45, %v3276_v8  ;;  %v5895_v54 = vcombine.high %v5321_v21, %v5321_v21  ;;  %v3315_v15 = vsel %vm3048_vm13, %v5329_v1, -inf  ;;  %v3290_v52 = vrot.slane %v3289_v16, 2 }
 0x42a   : > { %v3283_v43 = vrot.slane %v3282_v57, 2  ;;  %v3296_v11 = vmax.f32 %v3294_v2, %v3295_v36  ;;  %v3303_v60 = vmax.f32 %v3301_v18, %v3302_v59  ;;  %v3316_v32 = vrot.slane %v3315_v15, 4 }
 0x42b   : > { %v3308_v38 = vsel %vm3048_vm13, %v5895_v54, -inf  ;;  %v3278_v0 = vrot.slane %v3277_v4, 1  ;;  %v5896_v33 = vcombine.high %v5329_v1, %v5329_v1  ;;  %v3291_v19 = vmax.f32 %v3289_v16, %v3290_v52 }
 0x42c   : > { %v3309_v40 = vrot.slane %v3308_v38, 4  ;;  %v3284_v44 = vmax.f32 %v3282_v57, %v3283_v43  ;;  %v3297_v21 = vrot.slane %v3296_v11, 2  ;;  %v3304_v25 = vrot.slane %v3303_v60, 2 }
 0x42d   : > { %v3322_v45 = vsel %vm3048_vm13, %v5896_v33, -inf  ;;  %v5596_v8 = vmax.f32 %v3263_v62, %v3264_v41  ;;  %v3317_v22 = vmax.f32 %v3315_v15, %v3316_v32  ;;  %v3292_v2 = vrot.slane %v3291_v19, 1 }
 0x42e   : > { %v3310_v54 = vmax.f32 %v3308_v38, %v3309_v40  ;;  %v3323_v35 = vrot.slane %v3322_v45, 4  ;;  %v3285_v23 = vrot.slane %v3284_v44, 1  ;;  %v3298_v18 = vmax.f32 %v3296_v11, %v3297_v21 }
 0x42f   : > { %5897 = vst [vmem:[#allocation21_spill] sm:$0xff] %v5596_v8  ;;  %v3305_v36 = vmax.f32 %v3303_v60, %v3304_v25  ;;  %v3318_v17 = vrot.slane %v3317_v22, 2  ;;  %v3329_v1 = vsel %vm3048_vm13, %v5332_v47, -inf  ;;  %v5600_v33 = vmax.f32 %v3270_v53, %v3271_v51 }
 0x430   : > { %v3311_v59 = vrot.slane %v3310_v54, 2  ;;  %v3324_v42 = vmax.f32 %v3322_v45, %v3323_v35  ;;  %v5602_v57 = vmax.f32 %v3277_v4, %v3278_v0  ;;  %v3299_v16 = vrot.slane %v3298_v18, 1 }
 0x431   : > { %5898 = vst [vmem:[#allocation22_spill] sm:$0xff] %v5600_v33  ;;  %v3306_v62 = vrot.slane %v3305_v36, 1  ;;  %v3319_v38 = vmax.f32 %v3317_v22, %v3318_v17  ;;  %v3330_v43 = vrot.slane %v3329_v1, 4  ;;  %v5604_v52 = vmax.f32 %v3284_v44, %v3285_v23 }
 0x432   : > { %v3312_v41 = vmax.f32 %v3310_v54, %v3311_v59  ;;  %v3325_v15 = vrot.slane %v3324_v42, 2  ;;  %v5606_v11 = vmax.f32 %v3291_v19, %v3292_v2  ;;  %v5899_v35 = vcombine.high %v5332_v47, %v5332_v47 }
 0x433   : > { %v3343_v53 = vsel %vm3048_vm13, %v5337_v12, -inf  ;;  %v5614_v51 = vmax.f32 %v3298_v18, %v3299_v16  ;;  %v3331_v40 = vmax.f32 %v3329_v1, %v3330_v43  ;;  %v5900_v23 = vcombine.high %v5337_v12, %v5337_v12 }
 0x434   : > { %v3336_v60 = vsel %vm3048_vm13, %v5899_v35, -inf  ;;  %v3313_v4 = vrot.slane %v3312_v41, 1  ;;  %v3326_v0 = vmax.f32 %v3324_v42, %v3325_v15  ;;  %v3344_v22 = vrot.slane %v3343_v53, 4 }
 0x435   : > { %v3337_v17 = vrot.slane %v3336_v60, 4  ;;  %v3350_v32 = vsel %vm3048_vm13, %v5900_v23, -inf  ;;  %v3357_v47 = vsel %vm3048_vm13, %v5343_v26, -inf  ;;  %v5622_v45 = vmax.f32 %v3305_v36, %v3306_v62 }
 0x436   : > { %v5624_v44 = vmax.f32 %v3312_v41, %v3313_v4  ;;  %v3320_v19 = vrot.slane %v3319_v38, 1  ;;  %v3332_v21 = vrot.slane %v3331_v40, 2  ;;  %v3345_v54 = vmax.f32 %v3343_v53, %v3344_v22 }
 0x437   : > { %5901 = vst [vmem:[#allocation23_spill] sm:$0xff] %v5622_v45  ;;  %v3338_v25 = vmax.f32 %v3336_v60, %v3337_v17  ;;  %v3351_v42 = vrot.slane %v3350_v32, 4  ;;  %v3358_v2 = vrot.slane %v3357_v47, 4  ;;  %v3327_v18 = vrot.slane %v3326_v0, 1 }
 0x438   : > { %5902 = vst [vmem:[#allocation24_spill] sm:$0xff] %v5624_v44  ;;  %v3333_v59 = vmax.f32 %v3331_v40, %v3332_v21  ;;  %v5903_v12 = vcombine.high %v5343_v26, %v5343_v26  ;;  %v3371_v16 = vsel %vm3048_vm13, %v5358_v9, -inf  ;;  %v3346_v62 = vrot.slane %v3345_v54, 2 }
 0x439   : > { %v3339_v36 = vrot.slane %v3338_v25, 2  ;;  %v3352_v41 = vmax.f32 %v3350_v32, %v3351_v42  ;;  %v3359_v15 = vmax.f32 %v3357_v47, %v3358_v2  ;;  %v3372_v60 = vrot.slane %v3371_v16, 4 }
 0x43a   : > { %v3364_v1 = vsel %vm3048_vm13, %v5903_v12, -inf  ;;  %v3334_v43 = vrot.slane %v3333_v59, 1  ;;  %v5904_v53 = vcombine.high %v5358_v9, %v5358_v9  ;;  %v3347_v17 = vmax.f32 %v3345_v54, %v3346_v62 }
 0x43b   : > { %v3365_v35 = vrot.slane %v3364_v1, 4  ;;  %v3340_v40 = vmax.f32 %v3338_v25, %v3339_v36  ;;  %v3353_v26 = vrot.slane %v3352_v41, 2  ;;  %v3360_v22 = vrot.slane %v3359_v15, 2 }
 0x43c   : > { %v3378_v4 = vsel %vm3048_vm13, %v5904_v53, -inf  ;;  %v5636_v23 = vmax.f32 %v3319_v38, %v3320_v19  ;;  %v3373_v12 = vmax.f32 %v3371_v16, %v3372_v60  ;;  %v3348_v32 = vrot.slane %v3347_v17, 1 }
 0x43d   : > { %v3366_v21 = vmax.f32 %v3364_v1, %v3365_v35  ;;  %v3379_v33 = vrot.slane %v3378_v4, 4  ;;  %v3341_v44 = vrot.slane %v3340_v40, 1  ;;  %v3354_v47 = vmax.f32 %v3352_v41, %v3353_v26 }
 0x43e   : > { %v3361_v42 = vmax.f32 %v3359_v15, %v3360_v22  ;;  %v3374_v8 = vrot.slane %v3373_v12, 2  ;;  %v3385_v9 = vsel %vm3048_vm13, %v5362_v48, -inf  ;;  %v5640_v53 = vmax.f32 %v3326_v0, %v3327_v18 }
 0x43f   : > { %v3367_v2 = vrot.slane %v3366_v21, 2  ;;  %v3380_v45 = vmax.f32 %v3378_v4, %v3379_v33  ;;  %v5642_v25 = vmax.f32 %v3333_v59, %v3334_v43  ;;  %v3355_v54 = vrot.slane %v3354_v47, 1 }
 0x440   : > { %5905 = vst [vmem:[#allocation25_spill] sm:$0xff] %v5640_v53  ;;  %v3362_v38 = vrot.slane %v3361_v42, 1  ;;  %v3375_v1 = vmax.f32 %v3373_v12, %v3374_v8  ;;  %v3386_v36 = vrot.slane %v3385_v9, 4  ;;  %v5644_v62 = vmax.f32 %v3340_v40, %v3341_v44 }
 0x441   : > { %v3368_v19 = vmax.f32 %v3366_v21, %v3367_v2  ;;  %v3381_v16 = vrot.slane %v3380_v45, 2  ;;  %v5646_v41 = vmax.f32 %v3347_v17, %v3348_v32  ;;  %v5906_v33 = vcombine.high %v5362_v48, %v5362_v48 }
 0x442   : > { %v3399_v0 = vsel %vm3048_vm13, %v5365_v30, -inf  ;;  %v5654_v18 = vmax.f32 %v3354_v47, %v3355_v54  ;;  %v3387_v35 = vmax.f32 %v3385_v9, %v3386_v36  ;;  %v5908_v44 = vcombine.high %v5365_v30, %v5365_v30 }
 0x443   : > { %v3392_v15 = vsel %vm3048_vm13, %v5906_v33, -inf  ;;  %v3369_v59 = vrot.slane %v3368_v19, 1  ;;  %v3382_v43 = vmax.f32 %v3380_v45, %v3381_v16  ;;  %v3400_v60 = vrot.slane %v3399_v0, 4 }
 0x444   : > { %5907 = vst [vmem:[#allocation26_spill] sm:$0xff] %v5654_v18  ;;  %v3393_v8 = vrot.slane %v3392_v15, 4  ;;  %v3406_v4 = vsel %vm3048_vm13, %v5908_v44, -inf  ;;  %v3413_v48 = vsel %vm3048_vm13, %v5371_v34, -inf  ;;  %v5662_v40 = vmax.f32 %v3361_v42, %v3362_v38 }
 0x445   : > { %v5664_v17 = vmax.f32 %v3368_v19, %v3369_v59  ;;  %v3376_v26 = vrot.slane %v3375_v1, 1  ;;  %v3388_v22 = vrot.slane %v3387_v35, 2  ;;  %v3401_v12 = vmax.f32 %v3399_v0, %v3400_v60 }
 0x446   : > { %5909 = vst [vmem:[#allocation27_spill] sm:$0xff] %v5662_v40  ;;  %v3394_v21 = vmax.f32 %v3392_v15, %v3393_v8  ;;  %v3407_v45 = vrot.slane %v3406_v4, 4  ;;  %v3414_v32 = vrot.slane %v3413_v48, 4  ;;  %v3383_v47 = vrot.slane %v3382_v43, 1 }
 0x447   : > { %5910 = vst [vmem:[#allocation28_spill] sm:$0xff] %v5664_v17  ;;  %v3389_v2 = vmax.f32 %v3387_v35, %v3388_v22  ;;  %v5911_v30 = vcombine.high %v5371_v34, %v5371_v34  ;;  %v3427_v54 = vsel %vm3048_vm13, %v5390_v39, -inf  ;;  %v3402_v38 = vrot.slane %v3401_v12, 2 }
 0x448   : > { %v3395_v42 = vrot.slane %v3394_v21, 2  ;;  %v3408_v19 = vmax.f32 %v3406_v4, %v3407_v45  ;;  %v3415_v16 = vmax.f32 %v3413_v48, %v3414_v32  ;;  %v3428_v15 = vrot.slane %v3427_v54, 4 }
 0x449   : > { %v3420_v9 = vsel %vm3048_vm13, %v5911_v30, -inf  ;;  %v3390_v36 = vrot.slane %v3389_v2, 1  ;;  %v5912_v0 = vcombine.high %v5390_v39, %v5390_v39  ;;  %v3403_v8 = vmax.f32 %v3401_v12, %v3402_v38 }
 0x44a   : > { %v3421_v33 = vrot.slane %v3420_v9, 4  ;;  %v3396_v35 = vmax.f32 %v3394_v21, %v3395_v42  ;;  %v3409_v34 = vrot.slane %v3408_v19, 2  ;;  %v3416_v60 = vrot.slane %v3415_v16, 2 }
 0x44b   : > { %v3434_v59 = vsel %vm3048_vm13, %v5912_v0, -inf  ;;  %v5676_v44 = vmax.f32 %v3375_v1, %v3376_v26  ;;  %v3429_v30 = vmax.f32 %v3427_v54, %v3428_v15  ;;  %v3404_v4 = vrot.slane %v3403_v8, 1 }
 0x44c   : > { %v3422_v22 = vmax.f32 %v3420_v9, %v3421_v33  ;;  %v3435_v17 = vrot.slane %v3434_v59, 4  ;;  %v3397_v40 = vrot.slane %v3396_v35, 1  ;;  %v3410_v48 = vmax.f32 %v3408_v19, %v3409_v34 }
 0x44d   : > { %5913 = vst [vmem:[#allocation29_spill] sm:$0xff] %v5676_v44  ;;  %v3417_v45 = vmax.f32 %v3415_v16, %v3416_v60  ;;  %v3430_v18 = vrot.slane %v3429_v30, 2  ;;  %v3441_v39 = vsel %vm3048_vm13, %v5381_v5, -inf  ;;  %v5680_v0 = vmax.f32 %v3382_v43, %v3383_v47 }
 0x44e   : > { %v3423_v32 = vrot.slane %v3422_v22, 2  ;;  %v3436_v53 = vmax.f32 %v3434_v59, %v3435_v17  ;;  %v5682_v21 = vmax.f32 %v3389_v2, %v3390_v36  ;;  %v3411_v12 = vrot.slane %v3410_v48, 1 }
 0x44f   : > { %5914 = vst [vmem:[#allocation30_spill] sm:$0xff] %v5680_v0  ;;  %v3418_v1 = vrot.slane %v3417_v45, 1  ;;  %v3431_v9 = vmax.f32 %v3429_v30, %v3430_v18  ;;  %v3442_v42 = vrot.slane %v3441_v39, 4  ;;  %v5684_v38 = vmax.f32 %v3396_v35, %v3397_v40 }
 0x450   : > { %v3424_v26 = vmax.f32 %v3422_v22, %v3423_v32  ;;  %v3437_v54 = vrot.slane %v3436_v53, 2  ;;  %v5686_v19 = vmax.f32 %v3403_v8, %v3404_v4  ;;  %v5915_v17 = vcombine.high %v5381_v5, %v5381_v5 }
 0x451   : > { %v3455_v43 = vsel %vm3048_vm13, %v5393_v37, -inf  ;;  %v5694_v47 = vmax.f32 %v3410_v48, %v3411_v12  ;;  %v3443_v33 = vmax.f32 %v3441_v39, %v3442_v42  ;;  %v5916_v40 = vcombine.high %v5393_v37, %v5393_v37 }
 0x452   : > { %v3448_v16 = vsel %vm3048_vm13, %v5915_v17, -inf  ;;  %v3425_v2 = vrot.slane %v3424_v26, 1  ;;  %v3438_v36 = vmax.f32 %v3436_v53, %v3437_v54  ;;  %v3456_v15 = vrot.slane %v3455_v43, 4 }
 0x453   : > { %v3449_v18 = vrot.slane %v3448_v16, 4  ;;  %v3462_v59 = vsel %vm3048_vm13, %v5916_v40, -inf  ;;  %v3469_v5 = vsel %vm3048_vm13, %v5405_v46, -inf  ;;  %v5702_v35 = vmax.f32 %v3417_v45, %v3418_v1 }
 0x454   : > { %v5704_v8 = vmax.f32 %v3424_v26, %v3425_v2  ;;  %v3432_v34 = vrot.slane %v3431_v9, 1  ;;  %v3444_v60 = vrot.slane %v3443_v33, 2  ;;  %v3457_v30 = vmax.f32 %v3455_v43, %v3456_v15 }
 0x455   : > { %5917 = vst [vmem:[#allocation31_spill] sm:$0xff] %v5702_v35  ;;  %v3450_v22 = vmax.f32 %v3448_v16, %v3449_v18  ;;  %v3463_v53 = vrot.slane %v3462_v59, 4  ;;  %v3470_v4 = vrot.slane %v3469_v5, 4  ;;  %v3439_v48 = vrot.slane %v3438_v36, 1 }
 0x456   : > { %5918 = vst [vmem:[#allocation32_spill] sm:$0xff] %v5704_v8  ;;  %v3445_v32 = vmax.f32 %v3443_v33, %v3444_v60  ;;  %v5919_v37 = vcombine.high %v5405_v46, %v5405_v46  ;;  %v3483_v12 = vsel %vm3048_vm13, %v5408_v24, -inf  ;;  %v3458_v1 = vrot.slane %v3457_v30, 2 }
 0x457   : > { %v3451_v45 = vrot.slane %v3450_v22, 2  ;;  %v3464_v26 = vmax.f32 %v3462_v59, %v3463_v53  ;;  %v3471_v54 = vmax.f32 %v3469_v5, %v3470_v4  ;;  %v3484_v16 = vrot.slane %v3483_v12, 4 }
 0x458   : > { %v3476_v39 = vsel %vm3048_vm13, %v5919_v37, -inf  ;;  %v3446_v42 = vrot.slane %v3445_v32, 1  ;;  %v5920_v43 = vcombine.high %v5408_v24, %v5408_v24  ;;  %v3459_v18 = vmax.f32 %v3457_v30, %v3458_v1 }
 0x459   : > { %v3477_v17 = vrot.slane %v3476_v39, 4  ;;  %v3452_v33 = vmax.f32 %v3450_v22, %v3451_v45  ;;  %v3465_v46 = vrot.slane %v3464_v26, 2  ;;  %v3472_v15 = vrot.slane %v3471_v54, 2 }
 0x45a   : > { %v3490_v2 = vsel %vm3048_vm13, %v5920_v43, -inf  ;;  %v5716_v40 = vmax.f32 %v3431_v9, %v3432_v34  ;;  %v3485_v37 = vmax.f32 %v3483_v12, %v3484_v16  ;;  %v3460_v59 = vrot.slane %v3459_v18, 1  ;;  %v5922_v16 = vld [vmem:[#allocation9_spill] sm:$0xff] }
 0x45b   : > { %v3478_v60 = vmax.f32 %v3476_v39, %v3477_v17  ;;  %v3491_v0 = vrot.slane %v3490_v2, 4  ;;  %v3453_v44 = vrot.slane %v3452_v33, 1  ;;  %v3466_v5 = vmax.f32 %v3464_v26, %v3465_v46  ;;  %v5921_v17 = vld [vmem:[#allocation10_spill] sm:$0xff] }
 0x45c   : > { %v3473_v53 = vmax.f32 %v3471_v54, %v3472_v15  ;;  %v3486_v8 = vrot.slane %v3485_v37, 2  ;;  %v5718_v24 = vmax.f32 %v3438_v36, %v3439_v48  ;;  %v5720_v43 = vmax.f32 %v3445_v32, %v3446_v42  ;;  %v5925_v15 = vld [vmem:[#allocation13_spill] sm:$0xff] }
 0x45d   : > { %v3479_v4 = vrot.slane %v3478_v60, 2  ;;  %v3492_v35 = vmax.f32 %v3490_v2, %v3491_v0  ;;  %v3467_v22 = vrot.slane %v3466_v5, 1  ;;  %v3562_v39 = vsel %vm3561_vm14, %v5444_v49, %v5440_v20 }
 0x45e   : > { %v3474_v30 = vrot.slane %v3473_v53, 1  ;;  %v5722_v9 = vmax.f32 %v3485_v37, %v3486_v8  ;;  %v3454_v12 = vmax.f32 %v3452_v33, %v3453_v44  ;;  %v5727_v1 = vmax.f32 %v3459_v18, %v3460_v59  ;;  %v5923_v33 = vld [vmem:[#allocation11_spill] sm:$0xff]  ;;  %v5928_v59 = vld [vmem:[#allocation16_spill] sm:$0xff] }
 0x45f   : > { %v3480_v45 = vmax.f32 %v3478_v60, %v3479_v4  ;;  %v3493_v34 = vrot.slane %v3492_v35, 2  ;;  %v5729_v0 = vmax.f32 %v3466_v5, %v3467_v22  ;;  %v3564_v32 = vsel %vm3563_vm15, %v5446_v27, %v3562_v39  ;;  %v5931_v22 = vld [vmem:[#allocation17_spill] sm:$0xff] }
 0x460   : > { %v3566_v8 = vsel %vm3565_vm0, %v5448_v3, %v3564_v32  ;;  %v3475_v26 = vmax.f32 %v3473_v53, %v3474_v30  ;;  %v3488_v49 = vrot.slane %v5722_v9, 1  ;;  %v3575_v27 = vsel %vm3561_vm14, %v5484_v61, %v5480_v63 }
 0x461   : > { %v3481_v36 = vrot.slane %v3480_v45, 1  ;;  %v3494_v48 = vmax.f32 %v3492_v35, %v3493_v34  ;;  %v3568_v44 = vsel %vm3567_vm1, %v5450_v7, %v3566_v8  ;;  %v3582_v3 = vsel %vm3561_vm14, %v5522_v29, %v5520_v6  ;;  %v5933_v34 = vld [vmem:[#allocation23_spill] sm:$0xff]  ;;  %v5935_v8 = vld [vmem:[#allocation24_spill] sm:$0xff] }
 0x462   : > { %v3570_v54 = vsel %vm3569_vm2, %v5458_v56, %v3568_v44  ;;  %v3576_v7 = vsel %vm3563_vm15, %v5921_v17, %v3575_v27  ;;  %v3583_v56 = vsel %vm3563_vm15, %v5526_v58, %v3582_v3  ;;  %v3589_v6 = vsel %vm3561_vm14, %v5564_v50, %v5560_v14  ;;  %v5926_v50 = vld [vmem:[#allocation18_spill] sm:$0xff] }
 0x463   : > { %v3482_v20 = vmax.f32 %v3480_v45, %v3481_v36  ;;  %v3495_v35 = vrot.slane %v3494_v48, 1  ;;  %v3572_v42 = vsel %vm3571_vm3, %v5476_v28, %v3570_v54  ;;  %v3577_v63 = vsel %vm3565_vm0, %v5923_v33, %v3576_v7  ;;  %v5924_v28 = vld [vmem:[#allocation12_spill] sm:$0xff]  ;;  %v5934_v36 = vld [vmem:[#allocation21_spill] sm:$0xff]  ;;  %v5936_v27 = vld [vmem:[#allocation22_spill] sm:$0xff] }
 0x464   : > { %v3574_v2 = vsel %vm3573_vm4, %v5922_v16, %v3572_v42  ;;  %v3584_v61 = vsel %vm3565_vm0, %v5534_v13, %v3583_v56  ;;  %v3578_v29 = vsel %vm3567_vm1, %v5924_v28, %v3577_v63  ;;  %v3590_v58 = vsel %vm3563_vm15, %v5566_v55, %v3589_v6  ;;  %v5927_v55 = vld [vmem:[#allocation14_spill] sm:$0xff]  ;;  %v5932_v45 = vld [vmem:[#allocation20_spill] sm:$0xff]  ;;  %v5943_v6 = vld [vmem:[#allocation29_spill] sm:$0xff] }
 0x465   : > { %v3585_v18 = vsel %vm3567_vm1, %v5542_v31, %v3584_v61  ;;  %v3596_v46 = vsel %vm3561_vm14, %v5604_v52, %v5602_v57  ;;  %3632 = vst [vmem:[%s4052_s7] sm:$0xff] %v3574_v2  ;;  %v3579_v13 = vsel %vm3569_vm2, %v5925_v15, %v3578_v29  ;;  %v3591_v60 = vsel %vm3565_vm0, %v5926_v50, %v3590_v58  ;;  %v5929_v52 = vld [vmem:[#allocation19_spill] sm:$0xff]  ;;  %v5938_v56 = vld [vmem:[#allocation26_spill] sm:$0xff]  ;;  %v5941_v61 = vld [vmem:[#allocation28_spill] sm:$0xff] }
 0x466   : > { %v3586_v14 = vsel %vm3569_vm2, %v5544_v10, %v3585_v18  ;;  %v3597_v31 = vsel %vm3563_vm15, %v5606_v11, %v3596_v46  ;;  %v3580_v37 = vsel %vm3571_vm3, %v5927_v55, %v3579_v13  ;;  %v3592_v5 = vsel %vm3567_vm1, %v5929_v52, %v3591_v60  ;;  %v5930_v10 = vld [vmem:[#allocation15_spill] sm:$0xff]  ;;  %v5944_v18 = vld [vmem:[#allocation30_spill] sm:$0xff] }
 0x467   : > { %v3587_v57 = vsel %vm3571_vm3, %v5928_v59, %v3586_v14  ;;  %v3598_v53 = vsel %vm3565_vm0, %v5614_v51, %v3597_v31  ;;  %v3581_v4 = vsel %vm3573_vm4, %v5930_v10, %v3580_v37  ;;  %v3593_v11 = vsel %vm3569_vm2, %v5932_v45, %v3592_v5  ;;  %v5939_v2 = vld [vmem:[#allocation27_spill] sm:$0xff] }
 0x468   : > { %v3588_v30 = vsel %vm3573_vm4, %v5931_v22, %v3587_v57  ;;  %v3599_v39 = vsel %vm3567_vm1, %v5933_v34, %v3598_v53  ;;  %v3594_v32 = vsel %vm3571_vm3, %v5934_v36, %v3593_v11  ;;  %v3603_v51 = vsel %vm3561_vm14, %v5644_v62, %v5642_v25  ;;  %3633 = vst [vmem:[%s4052_s7 + $0x8] sm:$0xff] %v3581_v4  ;;  %v5937_v25 = vld [vmem:[#allocation25_spill] sm:$0xff] }
 0x469   : > { %v3600_v44 = vsel %vm3569_vm2, %v5935_v8, %v3599_v39  ;;  %v3610_v54 = vsel %vm3561_vm14, %v5684_v38, %v5682_v21  ;;  %3634 = vst [vmem:[%s4052_s7 + $0x10] sm:$0xff] %v3588_v30  ;;  %v3595_v3 = vsel %vm3573_vm4, %v5936_v27, %v3594_v32  ;;  %v3604_v17 = vsel %vm3563_vm15, %v5646_v41, %v3603_v51 }
 0x46a   : > { %v3601_v42 = vsel %vm3571_vm3, %v5636_v23, %v3600_v44  ;;  %v3611_v7 = vsel %vm3563_vm15, %v5686_v19, %v3610_v54  ;;  %v3605_v21 = vsel %vm3565_vm0, %v5938_v56, %v3604_v17  ;;  %v3617_v16 = vsel %vm3561_vm14, %v3454_v12, %v5720_v43  ;;  %3635 = vst [vmem:[%s4052_s7 + $0x18] sm:$0xff] %v3595_v3  ;;  %v5940_v19 = vld [vmem:[#allocation31_spill] sm:$0xff]  ;;  %v5942_v12 = vld [vmem:[#allocation32_spill] sm:$0xff] }
 0x46b   : > { %v3602_v62 = vsel %vm3573_vm4, %v5937_v25, %v3601_v42  ;;  %v3612_v38 = vsel %vm3565_vm0, %v5694_v47, %v3611_v7  ;;  %v3489_v23 = vmax.f32 %v5722_v9, %v3488_v49  ;;  %v3606_v41 = vsel %vm3567_vm1, %v5939_v2, %v3605_v21 }
 0x46c   : > { %v3613_v33 = vsel %vm3567_vm1, %v5940_v19, %v3612_v38  ;;  %v3618_v63 = vsel %vm3563_vm15, %v5727_v1, %v3617_v16  ;;  %3636 = vst [vmem:[%s4052_s7 + $0x20] sm:$0xff] %v3602_v62  ;;  %v3496_v47 = vmax.f32 %v3494_v48, %v3495_v35  ;;  %v3607_v43 = vsel %vm3569_vm2, %v5941_v61, %v3606_v41 }
 0x46d   : > { %v3614_v9 = vsel %vm3569_vm2, %v5942_v12, %v3613_v33  ;;  %v3619_v49 = vsel %vm3565_vm0, %v5729_v0, %v3618_v63  ;;  %v3608_v28 = vsel %vm3571_vm3, %v5943_v6, %v3607_v43 }
 0x46e   : > { %v3615_v29 = vsel %vm3571_vm3, %v5716_v40, %v3614_v9  ;;  %v3620_v1 = vsel %vm3567_vm1, %v3475_v26, %v3619_v49  ;;  %v3609_v48 = vsel %vm3573_vm4, %v5944_v18, %v3608_v28 }
 0x46f   : > { %v3616_v35 = vsel %vm3573_vm4, %v5718_v24, %v3615_v29  ;;  %v3621_v58 = vsel %vm3569_vm2, %v3482_v20, %v3620_v1  ;;  %3637 = vst [vmem:[%s4052_s7 + $0x28] sm:$0xff] %v3609_v48 }
 0x470   : > { %v3622_v46 = vsel %vm3571_vm3, %v3489_v23, %v3621_v58  ;;  %3638 = vst [vmem:[%s4052_s7 + $0x30] sm:$0xff] %v3616_v35 }
 0x471   : > { %v3623_v0 = vsel %vm3573_vm4, %v3496_v47, %v3622_v46 }
 0x472   : > { %3639 = vst [vmem:[%s4052_s7 + $0x38] sm:$0xff] %v3623_v0 }
 0x473 PF: > { %s15_s22 = sadd.s32 1, %s3967_s22   ;;  %s5945_s18 = smov %s3959_s20 }
 0x474   : > { %p12_p13 = scmp.ge.s32.totalorder %s15_s22, 6   ;;  %s5946_s19 = smov %s3963_s21 }
 0x475   : > { %s5947_s20 = smov %s5950_s23  ;;  %s5948_s21 = smov %s5954_s24 }
 0x476   :  { %14 = sbr.rel (!%p12_p13) target bundleno = 3 (0x3), region = 90 }

</bundles_post_ra>
